<compile_context>
chip_gen: v7x
topology: tpu7x:2x2x1
jax: 0.10.0
libtpu: 0.0.40
codegen_flags: <defaults>
</compile_context>

<pallas_src>
import functools

import jax
import jax.numpy as jnp
from jax.experimental import pallas as pl
from jax.experimental.pallas import tpu as pltpu


C_PAD = 128                      # class dim zero-padded to one full lane width
VMEM_LIMIT = 32 * 1024 * 1024    # explicit scoped-VMEM budget (fits v5e..v7x)
NEG = -1e30


def _round_up(v, m):
    return (v + m - 1) // m * m


def _log_softmax_masked(x, num_classes):
    """log_softmax over the first `num_classes` lanes; padded lanes -> 0."""
    lane = jax.lax.broadcasted_iota(jnp.int32, x.shape, 1)
    valid = lane < num_classes
    masked = jnp.where(valid, x, NEG)
    m = jnp.max(masked, axis=1, keepdims=True)
    z = masked - m
    p = jnp.where(valid, jnp.exp(z), 0.0)
    lse = jnp.log(jnp.sum(p, axis=1, keepdims=True))
    return jnp.where(valid, z - lse, 0.0)


# ------------------------- fused whole-graph fast path ------------------------

def _fused_forward_kernel(x_ref, w1_ref, b1_ref, w2_ref, b2_ref, adj_ref,
                          o_ref, h0_ref, *, K, alpha, num_classes):
    """Entire forward in one kernel (small/medium graphs, everything in VMEM).

    x_ref  : [N, F]      f32
    w1_ref : [F, H]      bf16
    b1_ref : [1, H]      f32
    w2_ref : [H, C_PAD]  bf16 (zero-padded beyond num_classes)
    b2_ref : [1, C_PAD]  f32
    adj_ref: [N, N]      bf16 (A_hat)
    o_ref  : [N, C_PAD]  f32  (also used as the running propagation state)
    h0_ref : [N, C_PAD]  f32  VMEM scratch holding the teleport term
    """
    xb = x_ref[...].astype(jnp.bfloat16)
    h = jnp.dot(xb, w1_ref[...], preferred_element_type=jnp.float32) + b1_ref[...]
    h = jnp.maximum(h, 0.0)                                        # ReLU
    h0_ref[...] = jnp.dot(h.astype(jnp.bfloat16), w2_ref[...],
                          preferred_element_type=jnp.float32) + b2_ref[...]
    o_ref[...] = h0_ref[...]

    # K is a static Python int -> unrolled propagation loop; A_hat is read
    # straight from its resident VMEM input buffer each step (loaded from HBM
    # only once for all K steps).
    for _ in range(K):
        xk = o_ref[...].astype(jnp.bfloat16)
        o_ref[...] = ((1.0 - alpha)
                      * jnp.dot(adj_ref[...], xk,
                                preferred_element_type=jnp.float32)
                      + alpha * h0_ref[...])

    o_ref[...] = _log_softmax_masked(o_ref[...], num_classes)


def _fused_forward_call(x, adj_bf16, w1, b1, w2p, b2p, *, K, alpha, num_classes):
    n, f = x.shape
    h = w1.shape[1]
    cpad = w2p.shape[1]
    kernel = functools.partial(_fused_forward_kernel, K=K, alpha=alpha,
                               num_classes=num_classes)
    return pl.pallas_call(
        kernel,
        out_shape=jax.ShapeDtypeStruct((n, cpad), jnp.float32),
        grid=(1,),
        in_specs=[
            pl.BlockSpec((n, f), lambda i: (0, 0)),
            pl.BlockSpec((f, h), lambda i: (0, 0)),
            pl.BlockSpec((1, h), lambda i: (0, 0)),
            pl.BlockSpec((h, cpad), lambda i: (0, 0)),
            pl.BlockSpec((1, cpad), lambda i: (0, 0)),
            pl.BlockSpec((n, n), lambda i: (0, 0)),
        ],
        out_specs=pl.BlockSpec((n, cpad), lambda i: (0, 0)),
        scratch_shapes=[pltpu.VMEM((n, cpad), jnp.float32)],
        compiler_params=pltpu.CompilerParams(
            dimension_semantics=("arbitrary",),
            vmem_limit_bytes=VMEM_LIMIT),
    )(x, w1, b1, w2p, b2p, adj_bf16)


# ------------------------------ tiled fallback path ---------------------------

def _mlp_kernel(x_ref, w1_ref, b1_ref, w2_ref, b2_ref, o_ref):
    """h0 = lin2(relu(lin1(x))) for one tile of node rows."""
    x = x_ref[...].astype(jnp.bfloat16)
    h = jnp.dot(x, w1_ref[...], preferred_element_type=jnp.float32) + b1_ref[...]
    h = jnp.maximum(h, 0.0)
    o_ref[...] = jnp.dot(h.astype(jnp.bfloat16), w2_ref[...],
                         preferred_element_type=jnp.float32) + b2_ref[...]


def _appnp_step_kernel(adj_ref, xp_ref, h0_ref, o_ref, acc_ref, *,
                       alpha, num_classes, last_step):
    """One APPNP step for one row tile, accumulated over column tiles."""
    j = pl.program_id(1)

    @pl.when(j == 0)
    def _():
        acc_ref[...] = jnp.zeros_like(acc_ref)

    acc_ref[...] += jnp.dot(adj_ref[...], xp_ref[...].astype(jnp.bfloat16),
                            preferred_element_type=jnp.float32)

    @pl.when(j == pl.num_programs(1) - 1)
    def _():
        out = (1.0 - alpha) * acc_ref[...] + alpha * h0_ref[...]
        if last_step:
            out = _log_softmax_masked(out, num_classes)
        o_ref[...] = out


def _mlp_call(x, w1, b1, w2p, b2p, *, tile):
    n, f = x.shape
    h = w1.shape[1]
    cpad = w2p.shape[1]
    return pl.pallas_call(
        _mlp_kernel,
        out_shape=jax.ShapeDtypeStruct((n, cpad), jnp.float32),
        grid=(n // tile,),
        in_specs=[
            pl.BlockSpec((tile, f), lambda i: (i, 0)),      # node-row tile
            pl.BlockSpec((f, h), lambda i: (0, 0)),         # W1 (loaded once)
            pl.BlockSpec((1, h), lambda i: (0, 0)),
            pl.BlockSpec((h, cpad), lambda i: (0, 0)),      # W2 (padded)
            pl.BlockSpec((1, cpad), lambda i: (0, 0)),
        ],
        out_specs=pl.BlockSpec((tile, cpad), lambda i: (i, 0)),
        compiler_params=pltpu.CompilerParams(
            dimension_semantics=("parallel",),
            vmem_limit_bytes=VMEM_LIMIT),
    )(x, w1, b1, w2p, b2p)


def _appnp_step_call(adj, x_prev, h0, *, alpha, num_classes, last_step,
                     row_tile, col_tile):
    n = adj.shape[0]
    cpad = x_prev.shape[1]
    kernel = functools.partial(_appnp_step_kernel, alpha=alpha,
                               num_classes=num_classes, last_step=last_step)
    return pl.pallas_call(
        kernel,
        out_shape=jax.ShapeDtypeStruct((n, cpad), jnp.float32),
        grid=(n // row_tile, n // col_tile),
        in_specs=[
            pl.BlockSpec((row_tile, col_tile), lambda i, j: (i, j)),  # A_hat tile
            pl.BlockSpec((col_tile, cpad), lambda i, j: (j, 0)),      # x_k col block
            pl.BlockSpec((row_tile, cpad), lambda i, j: (i, 0)),      # h0 row block
        ],
        out_specs=pl.BlockSpec((row_tile, cpad), lambda i, j: (i, 0)),
        scratch_shapes=[pltpu.VMEM((row_tile, cpad), jnp.float32)],
        compiler_params=pltpu.CompilerParams(
            dimension_semantics=("parallel", "arbitrary"),
            vmem_limit_bytes=VMEM_LIMIT),
    )(adj, x_prev, h0)


# ---------------------------------- forward -----------------------------------

def appnp_net_forward(x, adj_bf16, w1, b1, w2p, b2p, *, K, alpha, num_classes,
                      force_tiled=False, row_tile=256, col_tile=512):
    """Full APPNP_Net forward (eval mode: dropout = identity)."""
    n, f = x.shape
    h = w1.shape[1]
    cpad = w2p.shape[1]

    # ---- fused whole-graph fast path (everything resident in VMEM) ----------
    n_small = max(128, _round_up(n, 128))
    fused_bytes = (n_small * f * 4 + n_small * n_small * 2
                   + 3 * n_small * cpad * 4
                   + f * h * 2 + h * cpad * 2 + (h + cpad) * 4)
    use_fused = (not force_tiled) and (2 * fused_bytes < VMEM_LIMIT)

    if use_fused:
        n_pad = n_small
        if n_pad != n:
            x = jnp.pad(x, ((0, n_pad - n), (0, 0)))
            adj_bf16 = jnp.pad(adj_bf16, ((0, n_pad - n), (0, n_pad - n)))
        out = _fused_forward_call(x, adj_bf16, w1, b1, w2p, b2p,
                                  K=K, alpha=alpha, num_classes=num_classes)
        return out[:n, :num_classes]

    # ---- tiled fallback (graph too large for a single VMEM-resident kernel) --
    row_tile = min(row_tile, n_small)
    col_tile = min(col_tile, n_small)
    n_pad = _round_up(n, max(row_tile, col_tile))
    if n_pad != n:
        x = jnp.pad(x, ((0, n_pad - n), (0, 0)))
        adj_bf16 = jnp.pad(adj_bf16, ((0, n_pad - n), (0, n_pad - n)))

    h0 = _mlp_call(x, w1, b1, w2p, b2p, tile=row_tile)   # lin1 -> ReLU -> lin2
    xk = h0
    for k in range(K):
        xk = _appnp_step_call(adj_bf16, xk, h0, alpha=alpha,
                              num_classes=num_classes,
                              last_step=(k == K - 1),
                              row_tile=row_tile, col_tile=col_tile)
    return xk[:n, :num_classes]


# ------------------------------------ demo ------------------------------------

if __name__ == "__main__":
    N = 256              # number of nodes
    NUM_FEATURES = 128   # dataset.num_features
    HIDDEN = 64          # args.hidden
    NUM_CLASSES = 7      # dataset.num_classes
    K = 4                # args.K
    ALPHA = 0.1          # args.alpha

    root = jax.random.PRNGKey(0)
    kx, k1, k2, k3, k4 = jax.random.split(root, 5)

    x = jax.random.normal(kx, (N, NUM_FEATURES), jnp.float32)

    # deterministic graph: ring (both directions) + chords i <-> i+37
    idx = jnp.arange(N, dtype=jnp.int32)
    src = jnp.concatenate([idx, (idx + 1) % N, idx, (idx + 37) % N])
    dst = jnp.concatenate([(idx + 1) % N, idx, (idx + 37) % N, idx])

    # dense GCN-normalized adjacency  A_hat = D^-1/2 (A + I) D^-1/2, stored bf16
    a = jnp.zeros((N, N), jnp.float32).at[dst, src].set(1.0)
    a = jnp.maximum(a, jnp.eye(N, dtype=jnp.float32))
    dinv = jax.lax.rsqrt(jnp.sum(a, axis=1))
    adj_bf = (a * dinv[:, None] * dinv[None, :]).astype(jnp.bfloat16)

    # parameters (torch.nn.Linear equivalents); weights stored bf16 for the MXU
    w1 = (jax.random.normal(k1, (NUM_FEATURES, HIDDEN), jnp.float32)
          * (1.0 / NUM_FEATURES ** 0.5)).astype(jnp.bfloat16)
    b1 = jax.random.normal(k2, (1, HIDDEN), jnp.float32) * 0.05
    w2 = (jax.random.normal(k3, (HIDDEN, NUM_CLASSES), jnp.float32)
          * (1.0 / HIDDEN ** 0.5))
    b2 = jax.random.normal(k4, (1, NUM_CLASSES), jnp.float32) * 0.05
    # zero-pad the class dimension to a full 128-lane slab (lane-dense stores)
    w2p = jnp.zeros((HIDDEN, C_PAD), jnp.float32).at[:, :NUM_CLASSES].set(w2)
    w2p = w2p.astype(jnp.bfloat16)
    b2p = jnp.zeros((1, C_PAD), jnp.float32).at[:, :NUM_CLASSES].set(b2)

    # pure-JAX reference with the same bf16 rounding points as the kernels
    def reference(x, adj_bf, w1, b1, w2p, b2p):
        h = jnp.dot(x.astype(jnp.bfloat16), w1,
                    preferred_element_type=jnp.float32) + b1
        h = jnp.maximum(h, 0.0)
        h0 = jnp.dot(h.astype(jnp.bfloat16), w2p,
                     preferred_element_type=jnp.float32) + b2p
        xk = h0
        for _ in range(K):
            xk = ((1.0 - ALPHA) * jnp.dot(adj_bf, xk.astype(jnp.bfloat16),
                                          preferred_element_type=jnp.float32)
                  + ALPHA * h0)
        return jax.nn.log_softmax(xk[:, :NUM_CLASSES], axis=1)

    ref = reference(x, adj_bf, w1, b1, w2p, b2p)

    def check(out):
        assert out.shape == (N, NUM_CLASSES)
        assert bool(jnp.all(jnp.isfinite(out)))
        assert bool(jnp.allclose(jnp.sum(jnp.exp(out), axis=1), 1.0, atol=1e-3))
        assert float(jnp.max(jnp.abs(out - ref))) < 5e-2

    # 1) fused single-kernel fast path (auto-selected for this graph size)
    fwd_fused = jax.jit(functools.partial(appnp_net_forward, K=K, alpha=ALPHA,
                                          num_classes=NUM_CLASSES))
    out_fused = jax.block_until_ready(fwd_fused(x, adj_bf, w1, b1, w2p, b2p))
    check(out_fused)

    # 2) tiled fallback path (forced, small tiles to exercise the accumulator)
    fwd_tiled = jax.jit(functools.partial(appnp_net_forward, K=K, alpha=ALPHA,
                                          num_classes=NUM_CLASSES,
                                          force_tiled=True,
                                          row_tile=128, col_tile=128))
    out_tiled = jax.block_until_ready(fwd_tiled(x, adj_bf, w1, b1, w2p, b2p))
    check(out_tiled)

    print("KERNEL_OK")
</pallas_src>

<mosaic_0001>
module attributes {stable_mosaic.version = 11 : i64} {
  func.func @_fused_forward_kernel(%arg0: i32, %arg1: memref<256x128xf32, #tpu.memory_space<vmem>>, %arg2: memref<128x64xbf16, #tpu.memory_space<vmem>>, %arg3: memref<1x64xf32, #tpu.memory_space<vmem>>, %arg4: memref<64x128xbf16, #tpu.memory_space<vmem>>, %arg5: memref<1x128xf32, #tpu.memory_space<vmem>>, %arg6: memref<256x256xbf16, #tpu.memory_space<vmem>>, %arg7: memref<256x128xf32, #tpu.memory_space<vmem>>, %arg8: memref<256x128xf32, #tpu.memory_space<vmem>>) attributes {dimension_semantics = [#tpu.dimension_semantics<arbitrary>], iteration_bounds = array<i64: 1>, scalar_prefetch = 0 : i64, scratch_operands = 1 : i64, tpu.core_type = #tpu.core_type<tc>, window_params = [{pipeline_mode = #tpu.pipeline_mode<synchronous>, transform_indices = @transform_0, window_bounds = array<i64: 256, 128>}, {pipeline_mode = #tpu.pipeline_mode<synchronous>, transform_indices = @transform_1, window_bounds = array<i64: 128, 64>}, {pipeline_mode = #tpu.pipeline_mode<synchronous>, transform_indices = @transform_2, window_bounds = array<i64: 1, 64>}, {pipeline_mode = #tpu.pipeline_mode<synchronous>, transform_indices = @transform_3, window_bounds = array<i64: 64, 128>}, {pipeline_mode = #tpu.pipeline_mode<synchronous>, transform_indices = @transform_4, window_bounds = array<i64: 1, 128>}, {pipeline_mode = #tpu.pipeline_mode<synchronous>, transform_indices = @transform_5, window_bounds = array<i64: 256, 256>}, {pipeline_mode = #tpu.pipeline_mode<synchronous>, transform_indices = @transform_6, window_bounds = array<i64: 256, 128>}]} {
    %c0 = arith.constant 0 : index
    %c0_0 = arith.constant 0 : index
    %0 = vector.load %arg1[%c0, %c0_0] : memref<256x128xf32, #tpu.memory_space<vmem>>, vector<256x128xf32>
    %1 = arith.truncf %0 : vector<256x128xf32> to vector<256x128xbf16>
    %c0_1 = arith.constant 0 : index
    %c0_2 = arith.constant 0 : index
    %2 = vector.load %arg2[%c0_1, %c0_2] : memref<128x64xbf16, #tpu.memory_space<vmem>>, vector<128x64xbf16>
    %cst = arith.constant dense<0.000000e+00> : vector<256x64xf32>
    %3 = tpu.matmul %1, %2, %cst {dimension_numbers = #tpu.dot_dimension_numbers<[1], [0], [0], [1], [0, 0, 1, 1], [], []>} : vector<256x128xbf16>, vector<128x64xbf16>, vector<256x64xf32> -> vector<256x64xf32>
    %c0_3 = arith.constant 0 : index
    %c0_4 = arith.constant 0 : index
    %4 = vector.load %arg3[%c0_3, %c0_4] : memref<1x64xf32, #tpu.memory_space<vmem>>, vector<1x64xf32>
    %5 = vector.broadcast %4 : vector<1x64xf32> to vector<256x64xf32>
    %6 = arith.addf %3, %5 : vector<256x64xf32>
    %cst_5 = arith.constant 0.000000e+00 : f32
    %7 = vector.broadcast %cst_5 : f32 to vector<256x64xf32>
    %8 = arith.maximumf %6, %7 : vector<256x64xf32>
    %9 = arith.truncf %8 : vector<256x64xf32> to vector<256x64xbf16>
    %c0_6 = arith.constant 0 : index
    %c0_7 = arith.constant 0 : index
    %10 = vector.load %arg4[%c0_6, %c0_7] : memref<64x128xbf16, #tpu.memory_space<vmem>>, vector<64x128xbf16>
    %cst_8 = arith.constant dense<0.000000e+00> : vector<256x128xf32>
    %11 = tpu.matmul %9, %10, %cst_8 {dimension_numbers = #tpu.dot_dimension_numbers<[1], [0], [0], [1], [0, 0, 1, 1], [], []>} : vector<256x64xbf16>, vector<64x128xbf16>, vector<256x128xf32> -> vector<256x128xf32>
    %c0_9 = arith.constant 0 : index
    %c0_10 = arith.constant 0 : index
    %12 = vector.load %arg5[%c0_9, %c0_10] : memref<1x128xf32, #tpu.memory_space<vmem>>, vector<1x128xf32>
    %13 = vector.broadcast %12 : vector<1x128xf32> to vector<256x128xf32>
    %14 = arith.addf %11, %13 : vector<256x128xf32>
    %c0_11 = arith.constant 0 : index
    %c0_12 = arith.constant 0 : index
    %15 = vector.load %arg8[%c0_11, %c0_12] : memref<256x128xf32, #tpu.memory_space<vmem>>, vector<256x128xf32>
    tpu.vector_store %arg8[%c0_11, %c0_12], %14 {strides = array<i32>} : memref<256x128xf32, #tpu.memory_space<vmem>>, vector<256x128xf32>,
    %c0_13 = arith.constant 0 : index
    %c0_14 = arith.constant 0 : index
    %16 = vector.load %arg8[%c0_13, %c0_14] : memref<256x128xf32, #tpu.memory_space<vmem>>, vector<256x128xf32>
    %c0_15 = arith.constant 0 : index
    %c0_16 = arith.constant 0 : index
    %17 = vector.load %arg7[%c0_15, %c0_16] : memref<256x128xf32, #tpu.memory_space<vmem>>, vector<256x128xf32>
    tpu.vector_store %arg7[%c0_15, %c0_16], %16 {strides = array<i32>} : memref<256x128xf32, #tpu.memory_space<vmem>>, vector<256x128xf32>,
    %c0_17 = arith.constant 0 : index
    %c0_18 = arith.constant 0 : index
    %18 = vector.load %arg7[%c0_17, %c0_18] : memref<256x128xf32, #tpu.memory_space<vmem>>, vector<256x128xf32>
    %19 = arith.truncf %18 : vector<256x128xf32> to vector<256x128xbf16>
    %c0_19 = arith.constant 0 : index
    %c0_20 = arith.constant 0 : index
    %20 = vector.load %arg6[%c0_19, %c0_20] : memref<256x256xbf16, #tpu.memory_space<vmem>>, vector<256x256xbf16>
    %cst_21 = arith.constant dense<0.000000e+00> : vector<256x128xf32>
    %21 = tpu.matmul %20, %19, %cst_21 {dimension_numbers = #tpu.dot_dimension_numbers<[1], [0], [0], [1], [0, 0, 1, 1], [], []>} : vector<256x256xbf16>, vector<256x128xbf16>, vector<256x128xf32> -> vector<256x128xf32>
    %cst_22 = arith.constant 0.899999976 : f32
    %22 = vector.broadcast %cst_22 : f32 to vector<256x128xf32>
    %23 = arith.mulf %22, %21 : vector<256x128xf32>
    %c0_23 = arith.constant 0 : index
    %c0_24 = arith.constant 0 : index
    %24 = vector.load %arg8[%c0_23, %c0_24] : memref<256x128xf32, #tpu.memory_space<vmem>>, vector<256x128xf32>
    %cst_25 = arith.constant 1.000000e-01 : f32
    %25 = vector.broadcast %cst_25 : f32 to vector<256x128xf32>
    %26 = arith.mulf %25, %24 : vector<256x128xf32>
    %27 = arith.addf %23, %26 : vector<256x128xf32>
    %c0_26 = arith.constant 0 : index
    %c0_27 = arith.constant 0 : index
    %28 = vector.load %arg7[%c0_26, %c0_27] : memref<256x128xf32, #tpu.memory_space<vmem>>, vector<256x128xf32>
    tpu.vector_store %arg7[%c0_26, %c0_27], %27 {strides = array<i32>} : memref<256x128xf32, #tpu.memory_space<vmem>>, vector<256x128xf32>,
    %c0_28 = arith.constant 0 : index
    %c0_29 = arith.constant 0 : index
    %29 = vector.load %arg7[%c0_28, %c0_29] : memref<256x128xf32, #tpu.memory_space<vmem>>, vector<256x128xf32>
    %30 = arith.truncf %29 : vector<256x128xf32> to vector<256x128xbf16>
    %c0_30 = arith.constant 0 : index
    %c0_31 = arith.constant 0 : index
    %31 = vector.load %arg6[%c0_30, %c0_31] : memref<256x256xbf16, #tpu.memory_space<vmem>>, vector<256x256xbf16>
    %cst_32 = arith.constant dense<0.000000e+00> : vector<256x128xf32>
    %32 = tpu.matmul %31, %30, %cst_32 {dimension_numbers = #tpu.dot_dimension_numbers<[1], [0], [0], [1], [0, 0, 1, 1], [], []>} : vector<256x256xbf16>, vector<256x128xbf16>, vector<256x128xf32> -> vector<256x128xf32>
    %cst_33 = arith.constant 0.899999976 : f32
    %33 = vector.broadcast %cst_33 : f32 to vector<256x128xf32>
    %34 = arith.mulf %33, %32 : vector<256x128xf32>
    %c0_34 = arith.constant 0 : index
    %c0_35 = arith.constant 0 : index
    %35 = vector.load %arg8[%c0_34, %c0_35] : memref<256x128xf32, #tpu.memory_space<vmem>>, vector<256x128xf32>
    %cst_36 = arith.constant 1.000000e-01 : f32
    %36 = vector.broadcast %cst_36 : f32 to vector<256x128xf32>
    %37 = arith.mulf %36, %35 : vector<256x128xf32>
    %38 = arith.addf %34, %37 : vector<256x128xf32>
    %c0_37 = arith.constant 0 : index
    %c0_38 = arith.constant 0 : index
    %39 = vector.load %arg7[%c0_37, %c0_38] : memref<256x128xf32, #tpu.memory_space<vmem>>, vector<256x128xf32>
    tpu.vector_store %arg7[%c0_37, %c0_38], %38 {strides = array<i32>} : memref<256x128xf32, #tpu.memory_space<vmem>>, vector<256x128xf32>,
    %c0_39 = arith.constant 0 : index
    %c0_40 = arith.constant 0 : index
    %40 = vector.load %arg7[%c0_39, %c0_40] : memref<256x128xf32, #tpu.memory_space<vmem>>, vector<256x128xf32>
    %41 = arith.truncf %40 : vector<256x128xf32> to vector<256x128xbf16>
    %c0_41 = arith.constant 0 : index
    %c0_42 = arith.constant 0 : index
    %42 = vector.load %arg6[%c0_41, %c0_42] : memref<256x256xbf16, #tpu.memory_space<vmem>>, vector<256x256xbf16>
    %cst_43 = arith.constant dense<0.000000e+00> : vector<256x128xf32>
    %43 = tpu.matmul %42, %41, %cst_43 {dimension_numbers = #tpu.dot_dimension_numbers<[1], [0], [0], [1], [0, 0, 1, 1], [], []>} : vector<256x256xbf16>, vector<256x128xbf16>, vector<256x128xf32> -> vector<256x128xf32>
    %cst_44 = arith.constant 0.899999976 : f32
    %44 = vector.broadcast %cst_44 : f32 to vector<256x128xf32>
    %45 = arith.mulf %44, %43 : vector<256x128xf32>
    %c0_45 = arith.constant 0 : index
    %c0_46 = arith.constant 0 : index
    %46 = vector.load %arg8[%c0_45, %c0_46] : memref<256x128xf32, #tpu.memory_space<vmem>>, vector<256x128xf32>
    %cst_47 = arith.constant 1.000000e-01 : f32
    %47 = vector.broadcast %cst_47 : f32 to vector<256x128xf32>
    %48 = arith.mulf %47, %46 : vector<256x128xf32>
    %49 = arith.addf %45, %48 : vector<256x128xf32>
    %c0_48 = arith.constant 0 : index
    %c0_49 = arith.constant 0 : index
    %50 = vector.load %arg7[%c0_48, %c0_49] : memref<256x128xf32, #tpu.memory_space<vmem>>, vector<256x128xf32>
    tpu.vector_store %arg7[%c0_48, %c0_49], %49 {strides = array<i32>} : memref<256x128xf32, #tpu.memory_space<vmem>>, vector<256x128xf32>,
    %c0_50 = arith.constant 0 : index
    %c0_51 = arith.constant 0 : index
    %51 = vector.load %arg7[%c0_50, %c0_51] : memref<256x128xf32, #tpu.memory_space<vmem>>, vector<256x128xf32>
    %52 = arith.truncf %51 : vector<256x128xf32> to vector<256x128xbf16>
    %c0_52 = arith.constant 0 : index
    %c0_53 = arith.constant 0 : index
    %53 = vector.load %arg6[%c0_52, %c0_53] : memref<256x256xbf16, #tpu.memory_space<vmem>>, vector<256x256xbf16>
    %cst_54 = arith.constant dense<0.000000e+00> : vector<256x128xf32>
    %54 = tpu.matmul %53, %52, %cst_54 {dimension_numbers = #tpu.dot_dimension_numbers<[1], [0], [0], [1], [0, 0, 1, 1], [], []>} : vector<256x256xbf16>, vector<256x128xbf16>, vector<256x128xf32> -> vector<256x128xf32>
    %cst_55 = arith.constant 0.899999976 : f32
    %55 = vector.broadcast %cst_55 : f32 to vector<256x128xf32>
    %56 = arith.mulf %55, %54 : vector<256x128xf32>
    %c0_56 = arith.constant 0 : index
    %c0_57 = arith.constant 0 : index
    %57 = vector.load %arg8[%c0_56, %c0_57] : memref<256x128xf32, #tpu.memory_space<vmem>>, vector<256x128xf32>
    %cst_58 = arith.constant 1.000000e-01 : f32
    %58 = vector.broadcast %cst_58 : f32 to vector<256x128xf32>
    %59 = arith.mulf %58, %57 : vector<256x128xf32>
    %60 = arith.addf %56, %59 : vector<256x128xf32>
    %c0_59 = arith.constant 0 : index
    %c0_60 = arith.constant 0 : index
    %61 = vector.load %arg7[%c0_59, %c0_60] : memref<256x128xf32, #tpu.memory_space<vmem>>, vector<256x128xf32>
    tpu.vector_store %arg7[%c0_59, %c0_60], %60 {strides = array<i32>} : memref<256x128xf32, #tpu.memory_space<vmem>>, vector<256x128xf32>,
    %c0_61 = arith.constant 0 : index
    %c0_62 = arith.constant 0 : index
    %62 = vector.load %arg7[%c0_61, %c0_62] : memref<256x128xf32, #tpu.memory_space<vmem>>, vector<256x128xf32>
    %63 = tpu.iota {dimensions = array<i32: 1>} : vector<256x128xi32>
    %c7_i32 = arith.constant 7 : i32
    %64 = vector.broadcast %c7_i32 : i32 to vector<256x128xi32>
    %65 = arith.cmpi slt, %63, %64 : vector<256x128xi32>
    %cst_63 = arith.constant -1.000000e+30 : f32
    %66 = vector.broadcast %cst_63 : f32 to vector<256x128xf32>
    %67 = arith.select %65, %62, %66 : vector<256x128xi1>, vector<256x128xf32>
    %cst_64 = arith.constant dense<0xFF800000> : vector<256xf32>
    %68 = vector.multi_reduction <maximumf>, %67, %cst_64 [1] : vector<256x128xf32> to vector<256xf32>
    %69 = vector.shape_cast %68 : vector<256xf32> to vector<256x1xf32>
    %70 = vector.broadcast %69 : vector<256x1xf32> to vector<256x128xf32>
    %71 = arith.subf %67, %70 : vector<256x128xf32>
    %72 = math.exp %71 : vector<256x128xf32>
    %cst_65 = arith.constant 0.000000e+00 : f32
    %73 = vector.broadcast %cst_65 : f32 to vector<256x128xf32>
    %74 = arith.select %65, %72, %73 : vector<256x128xi1>, vector<256x128xf32>
    %cst_66 = arith.constant dense<0.000000e+00> : vector<256xf32>
    %75 = vector.multi_reduction <add>, %74, %cst_66 [1] : vector<256x128xf32> to vector<256xf32>
    %76 = vector.shape_cast %75 : vector<256xf32> to vector<256x1xf32>
    %77 = math.log %76 : vector<256x1xf32>
    %78 = vector.broadcast %77 : vector<256x1xf32> to vector<256x128xf32>
    %79 = arith.subf %71, %78 : vector<256x128xf32>
    %cst_67 = arith.constant 0.000000e+00 : f32
    %80 = vector.broadcast %cst_67 : f32 to vector<256x128xf32>
    %81 = arith.select %65, %79, %80 : vector<256x128xi1>, vector<256x128xf32>
    %c0_68 = arith.constant 0 : index
    %c0_69 = arith.constant 0 : index
    %82 = vector.load %arg7[%c0_68, %c0_69] : memref<256x128xf32, #tpu.memory_space<vmem>>, vector<256x128xf32>
    tpu.vector_store %arg7[%c0_68, %c0_69], %81 {strides = array<i32>} : memref<256x128xf32, #tpu.memory_space<vmem>>, vector<256x128xf32>,
    return
  }
  func.func @transform_0(%arg0: i32) -> (i32, i32) {
    %c0_i32 = arith.constant 0 : i32
    %c0_i32_0 = arith.constant 0 : i32
    %c0_i32_1 = arith.constant 0 : i32
    return %c0_i32, %c0_i32_0 : i32, i32
  }
  func.func @transform_1(%arg0: i32) -> (i32, i32) {
    %c0_i32 = arith.constant 0 : i32
    %c0_i32_0 = arith.constant 0 : i32
    %c0_i32_1 = arith.constant 0 : i32
    return %c0_i32, %c0_i32_0 : i32, i32
  }
  func.func @transform_2(%arg0: i32) -> (i32, i32) {
    %c0_i32 = arith.constant 0 : i32
    %c0_i32_0 = arith.constant 0 : i32
    %c0_i32_1 = arith.constant 0 : i32
    return %c0_i32, %c0_i32_0 : i32, i32
  }
  func.func @transform_3(%arg0: i32) -> (i32, i32) {
    %c0_i32 = arith.constant 0 : i32
    %c0_i32_0 = arith.constant 0 : i32
    %c0_i32_1 = arith.constant 0 : i32
    return %c0_i32, %c0_i32_0 : i32, i32
  }
  func.func @transform_4(%arg0: i32) -> (i32, i32) {
    %c0_i32 = arith.constant 0 : i32
    %c0_i32_0 = arith.constant 0 : i32
    %c0_i32_1 = arith.constant 0 : i32
    return %c0_i32, %c0_i32_0 : i32, i32
  }
  func.func @transform_5(%arg0: i32) -> (i32, i32) {
    %c0_i32 = arith.constant 0 : i32
    %c0_i32_0 = arith.constant 0 : i32
    %c0_i32_1 = arith.constant 0 : i32
    return %c0_i32, %c0_i32_0 : i32, i32
  }
  func.func @transform_6(%arg0: i32) -> (i32, i32) {
    %c0_i32 = arith.constant 0 : i32
    %c0_i32_0 = arith.constant 0 : i32
    %c0_i32_1 = arith.constant 0 : i32
    return %c0_i32, %c0_i32_0 : i32, i32
  }
}

</mosaic_0001>

<bundles_post_ra>
// kernel: appnp_net_forward.1
= control target key start
LH: loop header
LB: loop body
LE: loop exit
PB: predicated region body
PF: predicated region fallthrough
CT: control target
= control target key end

     0   :  { %11 = vsyncpa [#allocation4], 0  ;;  %s5982_s0 = inlined_call_operand.hbm [shape: f32[256,128], index: 0, kind: input, shape index: {}]   ;;  %s5983_s1 = inlined_call_operand.vmem [shape: bf16[128,64], index: 1, kind: input, shape index: {}]   ;;  %s5984_s2 = inlined_call_operand.vmem [shape: f32[1,64], index: 2, kind: input, shape index: {}]   ;;  %s5985_s3 = inlined_call_operand.vmem [shape: bf16[64,128], index: 3, kind: input, shape index: {}]   ;;  %s5986_s4 = inlined_call_operand.vmem [shape: f32[1,128], index: 4, kind: input, shape index: {}]   ;;  %s5987_s5 = inlined_call_operand.hbm [shape: bf16[256,256], index: 5, kind: input, shape index: {}]   ;;  %s5988_s6 = inlined_call_operand.vmem [shape: f32[256,128], index: 6, kind: output, shape index: {}]  }
   0x1   :  { %12 = vsyncpa [#allocation6], 0  ;;  %s4500_s21 = smov [#allocation3]   ;;  %s4452_s25 = scalar_lea.hbm %s5982_s0, 4096 }
   0x2   :  { %s18_s22 = sshll.u32 %s4500_s21, 4  ;;  %p4453_p0 = scmp.ne.s32.totalorder %s5982_s0, %s4452_s25  ;;  %s19_s22 = int_to_ptr.vmem [resolvable:$true] %s18_s22 }
   0x3   :  { %p4456_p1 = scmp.lt.u32.totalorder %s4452_s25, %s5982_s0 }
   0x5   :  { %p4458_p2 = pnand %p4456_p1, %p4453_p0 }
   0x7   :  { %4461 = shalt.err (!%p4458_p2)
}
   0x8   :  { %s4462_s30 = scalar_lea.vmem %s19_s22, 4096  ;;  %p4467_p4 = scmp.lt.s32.totalorder %s19_s22, %s19_s22 }
   0x9   :  { %p4463_p3 = scmp.ne.s32.totalorder %s19_s22, %s4462_s30  ;;  %p4468_p5 = scmp.lt.s32.totalorder %s4462_s30, %s4462_s30 }
   0xb   :  { %p4469_p6 = por %p4468_p5, %p4467_p4 }
   0xd   :  { %p4470_p7 = pnand %p4469_p6, %p4463_p3 }
   0xf   :  { %4473 = shalt.err (!%p4470_p7)
}
  0x10   :  { %s4501_s7 = smov 128   ;;  %s4502_s8 = smov 8  }
  0x11   :  { %24 = dma.hbm_to_vmem [thread:$0]  %s5982_s0, 4096, %s19_s22, [#allocation4], %s4501_s7, %s4501_s7, %s4502_s8  }
  0x12   :  { %s4503_s11 = smov [#allocation5]   ;;  %s4474_s15 = scalar_lea.hbm %s5987_s5, 4096 }
  0x13   :  { %s38_s12 = sshll.u32 %s4503_s11, 4  ;;  %p4475_p8 = scmp.ne.s32.totalorder %s5987_s5, %s4474_s15  ;;  %s39_s12 = int_to_ptr.vmem [resolvable:$true] %s38_s12 }
  0x14   :  { %p4478_p9 = scmp.lt.u32.totalorder %s4474_s15, %s5987_s5 }
  0x16   :  { %p4480_p10 = pnand %p4478_p9, %p4475_p8 }
  0x18   :  { %4483 = shalt.err (!%p4480_p10)
}
  0x19   :  { %s4484_s20 = scalar_lea.vmem %s39_s12, 4096  ;;  %p4489_p12 = scmp.lt.s32.totalorder %s39_s12, %s39_s12 }
  0x1a   :  { %p4485_p11 = scmp.ne.s32.totalorder %s39_s12, %s4484_s20  ;;  %p4490_p13 = scmp.lt.s32.totalorder %s4484_s20, %s4484_s20 }
  0x1c   :  { %p4491_p0 = por %p4490_p13, %p4489_p12 }
  0x1e   :  { %p4492_p1 = pnand %p4491_p0, %p4485_p11 }
  0x20   :  { %4495 = shalt.err (!%p4492_p1)
}
  0x21   :  { %44 = dma.hbm_to_vmem [thread:$0]  %s5987_s5, 4096, %s39_s12, [#allocation6], %s4501_s7, %s4501_s7, %s4502_s8  }
  0x22   :  { %4496 = dma.done.wait [#allocation4], 4096  }
  0x23   :  { %4497 = vsyncadd [#allocation4], 4294963200 }
  0x24   :  { %4498 = dma.done.wait [#allocation6], 4096  }
  0x25   :  { %4499 = vsyncadd [#allocation6], 4294963200  ;;  %v4216_v0 = vld [vmem:[%s5983_s1] sm:$0xff]   ;;  %v4217_v1 = vld [vmem:[%s5983_s1 + $0x8] sm:$0xff]   ;;  %vm419_vm0 = vcmask 523264  }
  0x26   :  { %4108 = vmatprep.subr.bf16.mxu0 %v4216_v0  ;;  %v4218_v2 = vld [vmem:[%s5983_s1 + $0x10] sm:$0xff]   ;;  %v4219_v3 = vld [vmem:[%s5983_s1 + $0x18] sm:$0xff]   ;;  %v52_v4 = vld [vmem:[#allocation3] sm:$0xff] }
  0x27   :  { %4109 = vmatpush3.bf16.msra.mxu0 %v4216_v0  ;;  %v53_v5 = vld [vmem:[#allocation3 + $0x8] sm:$0xff]  ;;  %v4220_v7 = vld [vmem:[%s5983_s1 + $0x20] sm:$0xff]   ;;  %v4222_v9 = vld [vmem:[%s5983_s1 + $0x30] sm:$0xff]  }
  0x28   :  { %4110 = vmatprep.subr.bf16.mxu0 %v4217_v1  ;;  %v84_v6 = vpack.c.bf16 %v53_v5, %v52_v4  ;;  %v4221_v8 = vld [vmem:[%s5983_s1 + $0x28] sm:$0xff]   ;;  %v4224_v10 = vld [vmem:[%s5985_s3] sm:$0xff]   ;;  %v4223_v12 = vld [vmem:[%s5983_s1 + $0x38] sm:$0xff]  }
  0x29   :  { %v4225_v11 = vld [vmem:[%s5985_s3 + $0x8] sm:$0xff]   ;;  %4156 = vmatprep.subr.bf16.mxu1 %v4224_v10  ;;  %v54_v13 = vld [vmem:[#allocation3 + $0x10] sm:$0xff]  ;;  %v55_v14 = vld [vmem:[#allocation3 + $0x18] sm:$0xff] }
  0x2a   :  { %4124 = vmatprep.mubr.bf16.mxu0 %v84_v6  ;;  %4157 = vmatpush3.bf16.msra.mxu1 %v4224_v10  ;;  %v56_v15 = vld [vmem:[#allocation3 + $0x20] sm:$0xff]  ;;  %v57_v16 = vld [vmem:[#allocation3 + $0x28] sm:$0xff]  ;;  %v85_v17 = vpack.c.bf16 %v55_v14, %v54_v13  ;;  %v58_v19 = vld [vmem:[#allocation3 + $0x30] sm:$0xff] }
  0x2b   :  { %4111 = vmatpush3.bf16.msra.mxu0 %v4217_v1  ;;  %4158 = vmatprep.subr.bf16.mxu1 %v4225_v11  ;;  %v86_v18 = vpack.c.bf16 %v57_v16, %v56_v15  ;;  %v59_v20 = vld [vmem:[#allocation3 + $0x38] sm:$0xff]  ;;  %v60_v21 = vld [vmem:[#allocation3 + $0x40] sm:$0xff]  ;;  %v61_v22 = vld [vmem:[#allocation3 + $0x48] sm:$0xff] }
  0x2c   :  { %4112 = vmatprep.subr.bf16.mxu0 %v4218_v2  ;;  %v87_v23 = vpack.c.bf16 %v59_v20, %v58_v19  ;;  %v88_v24 = vpack.c.bf16 %v61_v22, %v60_v21  ;;  %v62_v25 = vld [vmem:[#allocation3 + $0x50] sm:$0xff]  ;;  %v63_v26 = vld [vmem:[#allocation3 + $0x58] sm:$0xff]  ;;  %v64_v27 = vld [vmem:[#allocation3 + $0x60] sm:$0xff] }
  0x2d   :  { %v65_v28 = vld [vmem:[#allocation3 + $0x68] sm:$0xff]  ;;  %v89_v29 = vpack.c.bf16 %v63_v26, %v62_v25  ;;  %v66_v31 = vld [vmem:[#allocation3 + $0x70] sm:$0xff]  ;;  %v67_v32 = vld [vmem:[#allocation3 + $0x78] sm:$0xff] }
  0x2e   :  { %4159 = vmatpush3.bf16.msra.mxu1 %v4225_v11  ;;  %v90_v30 = vpack.c.bf16 %v65_v28, %v64_v27  ;;  %v68_v33 = vld [vmem:[#allocation3 + $0x80] sm:$0xff]  ;;  %v69_v34 = vld [vmem:[#allocation3 + $0x88] sm:$0xff]  ;;  %v91_v35 = vpack.c.bf16 %v67_v32, %v66_v31  ;;  %v70_v37 = vld [vmem:[#allocation3 + $0x90] sm:$0xff] }
  0x2f   :  { %4113 = vmatpush3.bf16.msra.mxu0 %v4218_v2  ;;  %v92_v36 = vpack.c.bf16 %v69_v34, %v68_v33  ;;  %v71_v38 = vld [vmem:[#allocation3 + $0x98] sm:$0xff]  ;;  %v72_v39 = vld [vmem:[#allocation3 + $0xa0] sm:$0xff]  ;;  %v73_v40 = vld [vmem:[#allocation3 + $0xa8] sm:$0xff] }
  0x30   :  { %4114 = vmatprep.subr.bf16.mxu0 %v4219_v3  ;;  %v93_v41 = vpack.c.bf16 %v71_v38, %v70_v37  ;;  %v94_v42 = vpack.c.bf16 %v73_v40, %v72_v39  ;;  %v74_v43 = vld [vmem:[#allocation3 + $0xb0] sm:$0xff]  ;;  %v75_v44 = vld [vmem:[#allocation3 + $0xb8] sm:$0xff]  ;;  %v76_v45 = vld [vmem:[#allocation3 + $0xc0] sm:$0xff] }
  0x31   :  { %v77_v46 = vld [vmem:[#allocation3 + $0xc8] sm:$0xff]  ;;  %v95_v47 = vpack.c.bf16 %v75_v44, %v74_v43  ;;  %v78_v49 = vld [vmem:[#allocation3 + $0xd0] sm:$0xff]  ;;  %v79_v50 = vld [vmem:[#allocation3 + $0xd8] sm:$0xff] }
  0x32   :  { %v96_v48 = vpack.c.bf16 %v77_v46, %v76_v45  ;;  %v80_v51 = vld [vmem:[#allocation3 + $0xe0] sm:$0xff]  ;;  %v81_v52 = vld [vmem:[#allocation3 + $0xe8] sm:$0xff]  ;;  %v97_v53 = vpack.c.bf16 %v79_v50, %v78_v49  ;;  %v82_v55 = vld [vmem:[#allocation3 + $0xf0] sm:$0xff] }
  0x33   :  { %4115 = vmatpush3.bf16.msra.mxu0 %v4219_v3  ;;  %v98_v54 = vpack.c.bf16 %v81_v52, %v80_v51  ;;  %v83_v56 = vld [vmem:[#allocation3 + $0xf8] sm:$0xff]  ;;  %v4226_v58 = vld [vmem:[%s5985_s3 + $0x10] sm:$0xff]   ;;  %v4602_v60 = vld [vmem:[%s5984_s2] ss:$0 sm:$0xff] }
  0x34   :  { %4116 = vmatprep.subr.bf16.mxu0 %v4220_v7  ;;  %v99_v57 = vpack.c.bf16 %v83_v56, %v82_v55  ;;  %4160 = vmatprep.subr.bf16.mxu1 %v4226_v58  ;;  %v4227_v59 = vld [vmem:[%s5985_s3 + $0x18] sm:$0xff]  }
  0x35   :  { %4161 = vmatpush3.bf16.msra.mxu1 %v4226_v58 }
  0x36   :  { %4162 = vmatprep.subr.bf16.mxu1 %v4227_v59 }
  0x37   :  { %4117 = vmatpush3.bf16.msra.mxu0 %v4220_v7 }
  0x38   :  { %4118 = vmatprep.subr.bf16.mxu0 %v4221_v8 }
  0x39   :  { %4163 = vmatpush3.bf16.msra.mxu1 %v4227_v59 }
  0x3b   :  { %4119 = vmatpush3.bf16.msra.mxu0 %v4221_v8 }
  0x3c   :  { %4120 = vmatprep.subr.bf16.mxu0 %v4222_v9 }
  0x3f   :  { %4121 = vmatpush3.bf16.msra.mxu0 %v4222_v9 }
  0x40   :  { %4122 = vmatprep.subr.bf16.mxu0 %v4223_v12 }
  0x43   :  { %4123 = vmatpush3.bf16.msra.mxu0 %v4223_v12 }
  0x46   :  { %4125 = vmatmul.mubr.bf16.vlgmr.msra.gmra.mrb[0].mxu0 %v85_v17 }
  0x47   :  { %4128 = vmatprep.mubr.bf16.mxu0 %v86_v18 }
  0x4e   :  { %4129 = vmatmul.mubr.bf16.gmra.mrb[4].mxu0 %v87_v23 }
  0x4f   :  { %4132 = vmatprep.mubr.bf16.mxu0 %v88_v24 }
  0x56   :  { %4133 = vmatmul.mubr.bf16.gmra.mrb[8].mxu0 %v89_v29 }
  0x57   :  { %4136 = vmatprep.mubr.bf16.mxu0 %v90_v30 }
  0x5e   :  { %4137 = vmatmul.mubr.bf16.gmra.mrb[12].mxu0 %v91_v35 }
  0x5f   :  { %4140 = vmatprep.mubr.bf16.mxu0 %v92_v36 }
  0x66   :  { %4141 = vmatmul.mubr.bf16.gmra.mrb[16].mxu0 %v93_v41 }
  0x67   :  { %4144 = vmatprep.mubr.bf16.mxu0 %v94_v42 }
  0x6e   :  { %4145 = vmatmul.mubr.bf16.gmra.mrb[20].mxu0 %v95_v47 }
  0x6f   :  { %4148 = vmatprep.mubr.bf16.mxu0 %v96_v48 }
  0x76   :  { %4149 = vmatmul.mubr.bf16.gmra.mrb[24].mxu0 %v97_v53 }
  0x77   :  { %4152 = vmatprep.mubr.bf16.mxu0 %v98_v54 }
  0x7e   :  { %4153 = vmatmul.mubr.bf16.gmra.mrb[28].mxu0 %v99_v57 }
 0x119   :  { %v4126_v61 = vpop.f32.mrb[0].mxu0 }
 0x11a   :  { %v214_v62 = vadd.f32 %v4126_v61, %v4602_v60  ;;  %v205_v63 = vpop.f32.mrb[1].mxu0 }
 0x11b   :  { %v206_v0 = vadd.f32 %v4602_v60, %v205_v63  ;;  %v4127_v1 = vpop.f32.mrb[2].mxu0 }
 0x11c   :  { %v217_v2 = vadd.f32 %v4127_v1, %v4602_v60  ;;  %v208_v3 = vpop.f32.mrb[3].mxu0  ;;  %v334_v5 = vmax.f32 %v214_v62, 0.0 }
 0x11d   :  { %v209_v4 = vadd.f32 %v4602_v60, %v208_v3  ;;  %v332_v7 = vmax.f32 %v206_v0, 0.0 }
 0x11e   :  { %v335_v6 = vmax.f32 %v217_v2, 0.0 }
 0x11f   :  { %v333_v8 = vmax.f32 %v209_v4, 0.0 }
 0x120   :  { %v365_v9 = vpack.c.bf16 %v335_v6, %v334_v5 }
 0x121   :  { %v4130_v10 = vpop.f32.mrb[4].mxu0  ;;  %v364_v11 = vpack.c.bf16 %v333_v8, %v332_v7 }
 0x122   :  { %v230_v12 = vadd.f32 %v4130_v10, %v4602_v60  ;;  %v221_v13 = vpop.f32.mrb[5].mxu0 }
 0x123   :  { %v222_v14 = vadd.f32 %v4602_v60, %v221_v13  ;;  %v4131_v15 = vpop.f32.mrb[6].mxu0  ;;  %4164 = vmatprep.mubr.msk.bf16.mxu1 %vm419_vm0, %v364_v11 }
 0x124   :  { %v233_v16 = vadd.f32 %v4131_v15, %v4602_v60  ;;  %v224_v17 = vpop.f32.mrb[7].mxu0  ;;  %4165 = vmatmul.mubr.msk.bf16.vlgmr.msra.gmra.mrb[0].mxu1 %vm419_vm0, %v365_v9  ;;  %v338_v19 = vmax.f32 %v230_v12, 0.0 }
 0x125   :  { %v225_v18 = vadd.f32 %v4602_v60, %v224_v17  ;;  %v336_v21 = vmax.f32 %v222_v14, 0.0 }
 0x126   :  { %v339_v20 = vmax.f32 %v233_v16, 0.0 }
 0x127   :  { %v337_v22 = vmax.f32 %v225_v18, 0.0 }
 0x128   :  { %v367_v23 = vpack.c.bf16 %v339_v20, %v338_v19 }
 0x129   :  { %v366_v24 = vpack.c.bf16 %v337_v22, %v336_v21  ;;  %v4134_v25 = vpop.f32.mrb[8].mxu0 }
 0x12a   :  { %v246_v26 = vadd.f32 %v4134_v25, %v4602_v60  ;;  %v237_v27 = vpop.f32.mrb[9].mxu0 }
 0x12b   :  { %v238_v28 = vadd.f32 %v4602_v60, %v237_v27  ;;  %v4135_v29 = vpop.f32.mrb[10].mxu0  ;;  %4168 = vmatprep.mubr.msk.bf16.mxu1 %vm419_vm0, %v366_v24 }
 0x12c   :  { %v249_v30 = vadd.f32 %v4135_v29, %v4602_v60  ;;  %v240_v31 = vpop.f32.mrb[11].mxu0  ;;  %4169 = vmatmul.mubr.msk.bf16.gmra.mrb[4].mxu1 %vm419_vm0, %v367_v23  ;;  %v342_v33 = vmax.f32 %v246_v26, 0.0 }
 0x12d   :  { %v241_v32 = vadd.f32 %v4602_v60, %v240_v31  ;;  %v340_v35 = vmax.f32 %v238_v28, 0.0 }
 0x12e   :  { %v343_v34 = vmax.f32 %v249_v30, 0.0 }
 0x12f   :  { %v341_v36 = vmax.f32 %v241_v32, 0.0 }
 0x130   :  { %v369_v37 = vpack.c.bf16 %v343_v34, %v342_v33 }
 0x131   :  { %v368_v38 = vpack.c.bf16 %v341_v36, %v340_v35  ;;  %v4138_v39 = vpop.f32.mrb[12].mxu0 }
 0x132   :  { %v262_v40 = vadd.f32 %v4138_v39, %v4602_v60  ;;  %v253_v41 = vpop.f32.mrb[13].mxu0 }
 0x133   :  { %v254_v42 = vadd.f32 %v4602_v60, %v253_v41  ;;  %v4139_v43 = vpop.f32.mrb[14].mxu0  ;;  %4172 = vmatprep.mubr.msk.bf16.mxu1 %vm419_vm0, %v368_v38 }
 0x134   :  { %v265_v44 = vadd.f32 %v4139_v43, %v4602_v60  ;;  %v256_v45 = vpop.f32.mrb[15].mxu0  ;;  %4173 = vmatmul.mubr.msk.bf16.gmra.mrb[8].mxu1 %vm419_vm0, %v369_v37  ;;  %v346_v47 = vmax.f32 %v262_v40, 0.0 }
 0x135   :  { %v257_v46 = vadd.f32 %v4602_v60, %v256_v45  ;;  %v344_v49 = vmax.f32 %v254_v42, 0.0 }
 0x136   :  { %v347_v48 = vmax.f32 %v265_v44, 0.0 }
 0x137   :  { %v345_v50 = vmax.f32 %v257_v46, 0.0  ;;  %v4230_v46 = vld [vmem:[#allocation5 + $0x4] ss:$8 sps:$4 sm:$0xff]  }
 0x138   :  { %v371_v51 = vpack.c.bf16 %v347_v48, %v346_v47  ;;  %1558 = vmatprep.mubr.bf16.mxu0 %v4230_v46  ;;  %v4655_v48 = vld [vmem:[%s5986_s4] ss:$0 sm:$0xff] }
 0x139   :  { %v370_v52 = vpack.c.bf16 %v345_v50, %v344_v49  ;;  %v4142_v53 = vpop.f32.mrb[16].mxu0 }
 0x13a   :  { %v278_v54 = vadd.f32 %v4142_v53, %v4602_v60  ;;  %v269_v55 = vpop.f32.mrb[17].mxu0 }
 0x13b   :  { %v270_v56 = vadd.f32 %v4602_v60, %v269_v55  ;;  %v4143_v57 = vpop.f32.mrb[18].mxu0  ;;  %4176 = vmatprep.mubr.msk.bf16.mxu1 %vm419_vm0, %v370_v52 }
 0x13c   :  { %v281_v58 = vadd.f32 %v4143_v57, %v4602_v60  ;;  %v272_v59 = vpop.f32.mrb[19].mxu0  ;;  %4177 = vmatmul.mubr.msk.bf16.gmra.mrb[12].mxu1 %vm419_vm0, %v371_v51  ;;  %v350_v62 = vmax.f32 %v278_v54, 0.0 }
 0x13d   :  { %v273_v61 = vadd.f32 %v4602_v60, %v272_v59  ;;  %v348_v0 = vmax.f32 %v270_v56, 0.0 }
 0x13e   :  { %v351_v63 = vmax.f32 %v281_v58, 0.0 }
 0x13f   :  { %v349_v1 = vmax.f32 %v273_v61, 0.0 }
 0x140   :  { %v373_v2 = vpack.c.bf16 %v351_v63, %v350_v62 }
 0x141   :  { %v372_v3 = vpack.c.bf16 %v349_v1, %v348_v0  ;;  %v4146_v4 = vpop.f32.mrb[20].mxu0 }
 0x142   :  { %v294_v5 = vadd.f32 %v4146_v4, %v4602_v60  ;;  %v285_v6 = vpop.f32.mrb[21].mxu0 }
 0x143   :  { %v286_v7 = vadd.f32 %v4602_v60, %v285_v6  ;;  %v4147_v8 = vpop.f32.mrb[22].mxu0  ;;  %4180 = vmatprep.mubr.msk.bf16.mxu1 %vm419_vm0, %v372_v3 }
 0x144   :  { %v297_v9 = vadd.f32 %v4147_v8, %v4602_v60  ;;  %v288_v10 = vpop.f32.mrb[23].mxu0  ;;  %4181 = vmatmul.mubr.msk.bf16.gmra.mrb[16].mxu1 %vm419_vm0, %v373_v2  ;;  %v354_v12 = vmax.f32 %v294_v5, 0.0 }
 0x145   :  { %v289_v11 = vadd.f32 %v4602_v60, %v288_v10  ;;  %v352_v14 = vmax.f32 %v286_v7, 0.0 }
 0x146   :  { %v355_v13 = vmax.f32 %v297_v9, 0.0 }
 0x147   :  { %v353_v15 = vmax.f32 %v289_v11, 0.0 }
 0x148   :  { %v375_v16 = vpack.c.bf16 %v355_v13, %v354_v12 }
 0x149   :  { %v374_v17 = vpack.c.bf16 %v353_v15, %v352_v14  ;;  %v4150_v18 = vpop.f32.mrb[24].mxu0 }
 0x14a   :  { %v310_v19 = vadd.f32 %v4150_v18, %v4602_v60  ;;  %v301_v20 = vpop.f32.mrb[25].mxu0 }
 0x14b   :  { %v302_v21 = vadd.f32 %v4602_v60, %v301_v20  ;;  %v4151_v22 = vpop.f32.mrb[26].mxu0  ;;  %4184 = vmatprep.mubr.msk.bf16.mxu1 %vm419_vm0, %v374_v17 }
 0x14c   :  { %v313_v23 = vadd.f32 %v4151_v22, %v4602_v60  ;;  %v304_v24 = vpop.f32.mrb[27].mxu0  ;;  %4185 = vmatmul.mubr.msk.bf16.gmra.mrb[20].mxu1 %vm419_vm0, %v375_v16  ;;  %v358_v26 = vmax.f32 %v310_v19, 0.0 }
 0x14d   :  { %v305_v25 = vadd.f32 %v4602_v60, %v304_v24  ;;  %v356_v28 = vmax.f32 %v302_v21, 0.0 }
 0x14e   :  { %v359_v27 = vmax.f32 %v313_v23, 0.0 }
 0x14f   :  { %v357_v29 = vmax.f32 %v305_v25, 0.0 }
 0x150   :  { %v377_v30 = vpack.c.bf16 %v359_v27, %v358_v26 }
 0x151   :  { %v376_v31 = vpack.c.bf16 %v357_v29, %v356_v28  ;;  %v4154_v32 = vpop.f32.mrb[28].mxu0 }
 0x152   :  { %v326_v33 = vadd.f32 %v4154_v32, %v4602_v60  ;;  %v317_v34 = vpop.f32.mrb[29].mxu0 }
 0x153   :  { %v318_v35 = vadd.f32 %v4602_v60, %v317_v34  ;;  %v4155_v36 = vpop.f32.mrb[30].mxu0  ;;  %4188 = vmatprep.mubr.msk.bf16.mxu1 %vm419_vm0, %v376_v31 }
 0x154   :  { %v329_v37 = vadd.f32 %v4155_v36, %v4602_v60  ;;  %v320_v38 = vpop.f32.mrb[31].mxu0  ;;  %4189 = vmatmul.mubr.msk.bf16.gmra.mrb[24].mxu1 %vm419_vm0, %v377_v30  ;;  %v362_v40 = vmax.f32 %v326_v33, 0.0 }
 0x155   :  { %v321_v39 = vadd.f32 %v4602_v60, %v320_v38  ;;  %v360_v42 = vmax.f32 %v318_v35, 0.0 }
 0x156   :  { %v363_v41 = vmax.f32 %v329_v37, 0.0 }
 0x157   :  { %v361_v43 = vmax.f32 %v321_v39, 0.0 }
 0x158   :  { %v379_v44 = vpack.c.bf16 %v363_v41, %v362_v40 }
 0x159   :  { %v378_v45 = vpack.c.bf16 %v361_v43, %v360_v42 }
 0x15b   :  { %4192 = vmatprep.mubr.msk.bf16.mxu1 %vm419_vm0, %v378_v45 }
 0x15c   :  { %4193 = vmatmul.mubr.msk.bf16.gmra.mrb[28].mxu1 %vm419_vm0, %v379_v44 }
 0x15d   :  { %997 = vmatprep.mubr.bf16.mxu1 %v4230_v46 }
 0x1f7   :  { %v4166_v47 = vpop.f32.mrb[0].mxu1 }
 0x1f8   :  { %v502_v60 = vpop.f32.mrb[1].mxu1  ;;  %v4658_v50 = vadd.f32 %v4166_v47, %v4655_v48 }
 0x1f9   :  { %v4167_v49 = vpop.f32.mrb[2].mxu1  ;;  %v4664_v53 = vadd.f32 %v4655_v48, %v502_v60 }
 0x1fa   :  { %v4661_v51 = vadd.f32 %v4167_v49, %v4655_v48  ;;  %v505_v52 = vpop.f32.mrb[3].mxu1 }
 0x1fb   :  { %v4667_v54 = vadd.f32 %v4655_v48, %v505_v52 }
 0x1fc   :  { %v758_v55 = vpack.c.bf16 %v4661_v51, %v4658_v50 }
 0x1fd   :  { %v757_v56 = vpack.c.bf16 %v4667_v54, %v4664_v53 }
 0x1ff   :  { %v4170_v57 = vpop.f32.mrb[4].mxu1 }
 0x200   :  { %v518_v58 = vpop.f32.mrb[5].mxu1  ;;  %v4674_v61 = vadd.f32 %v4170_v57, %v4655_v48 }
 0x201   :  { %v4171_v59 = vpop.f32.mrb[6].mxu1  ;;  %v4680_v0 = vadd.f32 %v4655_v48, %v518_v58 }
 0x202   :  { %v4677_v62 = vadd.f32 %v4171_v59, %v4655_v48  ;;  %v521_v63 = vpop.f32.mrb[7].mxu1 }
 0x203   :  { %v4683_v1 = vadd.f32 %v4655_v48, %v521_v63 }
 0x204   :  { %v760_v2 = vpack.c.bf16 %v4677_v62, %v4674_v61 }
 0x205   :  { %v759_v3 = vpack.c.bf16 %v4683_v1, %v4680_v0 }
 0x207   :  { %v4174_v4 = vpop.f32.mrb[8].mxu1 }
 0x208   :  { %v534_v5 = vpop.f32.mrb[9].mxu1  ;;  %v4690_v7 = vadd.f32 %v4174_v4, %v4655_v48 }
 0x209   :  { %v4175_v6 = vpop.f32.mrb[10].mxu1  ;;  %v4696_v10 = vadd.f32 %v4655_v48, %v534_v5 }
 0x20a   :  { %v4693_v8 = vadd.f32 %v4175_v6, %v4655_v48  ;;  %v537_v9 = vpop.f32.mrb[11].mxu1 }
 0x20b   :  { %v4699_v11 = vadd.f32 %v4655_v48, %v537_v9 }
 0x20c   :  { %v762_v12 = vpack.c.bf16 %v4693_v8, %v4690_v7 }
 0x20d   :  { %v761_v13 = vpack.c.bf16 %v4699_v11, %v4696_v10 }
 0x20f   :  { %v4178_v14 = vpop.f32.mrb[12].mxu1 }
 0x210   :  { %v550_v15 = vpop.f32.mrb[13].mxu1  ;;  %v4706_v17 = vadd.f32 %v4178_v14, %v4655_v48  ;;  %v4785_v14 = vld [vmem:[#allocation5] ss:$8 sps:$4 sm:$0xff]  }
 0x211   :  { %v4179_v16 = vpop.f32.mrb[14].mxu1  ;;  %v4712_v20 = vadd.f32 %v4655_v48, %v550_v15  ;;  %v4787_v15 = vld [vmem:[#allocation5 + $0x14] ss:$8 sps:$4 sm:$0xff]  }
 0x212   :  { %v4709_v18 = vadd.f32 %v4179_v16, %v4655_v48  ;;  %v553_v19 = vpop.f32.mrb[15].mxu1  ;;  %v4797_v16 = vld [vmem:[#allocation5 + $0x20] ss:$8 sps:$4 sm:$0xff]  }
 0x213   :  { %v4715_v21 = vadd.f32 %v4655_v48, %v553_v19  ;;  %v4799_v19 = vld [vmem:[#allocation5 + $0x34] ss:$8 sps:$4 sm:$0xff]  }
 0x214   :  { %v764_v22 = vpack.c.bf16 %v4709_v18, %v4706_v17 }
 0x215   :  { %v763_v23 = vpack.c.bf16 %v4715_v21, %v4712_v20 }
 0x217   :  { %v4182_v24 = vpop.f32.mrb[16].mxu1 }
 0x218   :  { %v566_v25 = vpop.f32.mrb[17].mxu1  ;;  %v4722_v27 = vadd.f32 %v4182_v24, %v4655_v48  ;;  %v4809_v24 = vld [vmem:[#allocation5 + $0x40] ss:$8 sps:$4 sm:$0xff]  }
 0x219   :  { %v4183_v26 = vpop.f32.mrb[18].mxu1  ;;  %v4728_v30 = vadd.f32 %v4655_v48, %v566_v25  ;;  %v4811_v25 = vld [vmem:[#allocation5 + $0x54] ss:$8 sps:$4 sm:$0xff]  }
 0x21a   :  { %v4725_v28 = vadd.f32 %v4183_v26, %v4655_v48  ;;  %v569_v29 = vpop.f32.mrb[19].mxu1  ;;  %v4815_v26 = vld [vmem:[#allocation5 + $0x50] ss:$8 sps:$4 sm:$0xff]  }
 0x21b   :  { %v4731_v31 = vadd.f32 %v4655_v48, %v569_v29  ;;  %v4817_v29 = vld [vmem:[#allocation5 + $0x64] ss:$8 sps:$4 sm:$0xff]  }
 0x21c   :  { %v766_v32 = vpack.c.bf16 %v4725_v28, %v4722_v27 }
 0x21d   :  { %v765_v33 = vpack.c.bf16 %v4731_v31, %v4728_v30 }
 0x21f   :  { %v4186_v34 = vpop.f32.mrb[20].mxu1  ;;  %3660 = vmatprep.subr.bf16.mxu1 %v765_v33  ;;  %v4823_v33 = vld [vmem:[#allocation5 + $0x74] ss:$8 sps:$4 sm:$0xff]  }
 0x220   :  { %v582_v35 = vpop.f32.mrb[21].mxu1  ;;  %3661 = vmatpush3.bf16.msra.mxu1 %v757_v56  ;;  %v4738_v37 = vadd.f32 %v4186_v34, %v4655_v48  ;;  %v4827_v34 = vld [vmem:[#allocation5 + $0x70] ss:$8 sps:$4 sm:$0xff]  }
 0x221   :  { %v4187_v36 = vpop.f32.mrb[22].mxu1  ;;  %3662 = vmatprep.subr.bf16.mxu1 %v766_v32  ;;  %v4744_v40 = vadd.f32 %v4655_v48, %v582_v35  ;;  %v4821_v32 = vld [vmem:[#allocation5 + $0x60] ss:$8 sps:$4 sm:$0xff]   ;;  %v4829_v35 = vld [vmem:[#allocation5 + $0x84] ss:$8 sps:$4 sm:$0xff]  }
 0x222   :  { %v4741_v38 = vadd.f32 %v4187_v36, %v4655_v48  ;;  %v585_v39 = vpop.f32.mrb[23].mxu1  ;;  %6061 = vst [vmem:[#allocation9_spill] sm:$0xff] %v4829_v35  ;;  %v4833_v36 = vld [vmem:[#allocation5 + $0x80] ss:$8 sps:$4 sm:$0xff]  }
 0x223   :  { %v4747_v41 = vadd.f32 %v4655_v48, %v585_v39  ;;  %6062 = vst [vmem:[#allocation10_spill] sm:$0xff] %v4833_v36  ;;  %v4835_v39 = vld [vmem:[#allocation5 + $0x94] ss:$8 sps:$4 sm:$0xff]  }
 0x224   :  { %3663 = vmatpush3.bf16.msra.mxu1 %v758_v55  ;;  %v768_v42 = vpack.c.bf16 %v4741_v38, %v4738_v37  ;;  %6063 = vst [vmem:[#allocation11_spill] sm:$0xff] %v4835_v39 }
 0x225   :  { %v767_v43 = vpack.c.bf16 %v4747_v41, %v4744_v40 }
 0x227   :  { %v4190_v44 = vpop.f32.mrb[24].mxu1  ;;  %3664 = vmatprep.subr.bf16.mxu1 %v767_v43  ;;  %v4841_v43 = vld [vmem:[#allocation5 + $0xa4] ss:$8 sps:$4 sm:$0xff]  }
 0x228   :  { %v598_v45 = vpop.f32.mrb[25].mxu1  ;;  %3665 = vmatpush3.bf16.msra.mxu1 %v759_v3  ;;  %v4754_v47 = vadd.f32 %v4190_v44, %v4655_v48  ;;  %6065 = vst [vmem:[#allocation13_spill] sm:$0xff] %v4841_v43  ;;  %v4845_v44 = vld [vmem:[#allocation5 + $0xa0] ss:$8 sps:$4 sm:$0xff]  }
 0x229   :  { %v4191_v46 = vpop.f32.mrb[26].mxu1  ;;  %3666 = vmatprep.subr.bf16.mxu1 %v768_v42  ;;  %v4760_v52 = vadd.f32 %v4655_v48, %v598_v45  ;;  %v4839_v42 = vld [vmem:[#allocation5 + $0x90] ss:$8 sps:$4 sm:$0xff]   ;;  %6066 = vst [vmem:[#allocation14_spill] sm:$0xff] %v4845_v44  ;;  %v4847_v45 = vld [vmem:[#allocation5 + $0xb4] ss:$8 sps:$4 sm:$0xff]  }
 0x22a   :  { %v4757_v60 = vadd.f32 %v4191_v46, %v4655_v48  ;;  %v601_v49 = vpop.f32.mrb[27].mxu1  ;;  %6064 = vst [vmem:[#allocation12_spill] sm:$0xff] %v4839_v42  ;;  %6067 = vst [vmem:[#allocation15_spill] sm:$0xff] %v4847_v45  ;;  %v4851_v46 = vld [vmem:[#allocation5 + $0xb0] ss:$8 sps:$4 sm:$0xff]  }
 0x22b   :  { %v4763_v55 = vadd.f32 %v4655_v48, %v601_v49  ;;  %6068 = vst [vmem:[#allocation16_spill] sm:$0xff] %v4851_v46  ;;  %v4853_v49 = vld [vmem:[#allocation5 + $0xc4] ss:$8 sps:$4 sm:$0xff]  }
 0x22c   :  { %3667 = vmatpush3.bf16.msra.mxu1 %v760_v2  ;;  %v770_v56 = vpack.c.bf16 %v4757_v60, %v4754_v47  ;;  %6069 = vst [vmem:[#allocation17_spill] sm:$0xff] %v4853_v49 }
 0x22d   :  { %v769_v57 = vpack.c.bf16 %v4763_v55, %v4760_v52 }
 0x22f   :  { %v4194_v58 = vpop.f32.mrb[28].mxu1  ;;  %3668 = vmatprep.subr.bf16.mxu1 %v769_v57  ;;  %v4859_v57 = vld [vmem:[#allocation5 + $0xd4] ss:$8 sps:$4 sm:$0xff]  }
 0x230   :  { %v614_v59 = vpop.f32.mrb[29].mxu1  ;;  %3669 = vmatpush3.bf16.msra.mxu1 %v761_v13  ;;  %v4770_v3 = vadd.f32 %v4194_v58, %v4655_v48  ;;  %6071 = vst [vmem:[#allocation19_spill] sm:$0xff] %v4859_v57  ;;  %v4863_v58 = vld [vmem:[#allocation5 + $0xd0] ss:$8 sps:$4 sm:$0xff]  }
 0x231   :  { %v4195_v63 = vpop.f32.mrb[30].mxu1  ;;  %3670 = vmatprep.subr.bf16.mxu1 %v770_v56  ;;  %v4776_v2 = vadd.f32 %v4655_v48, %v614_v59  ;;  %v4857_v56 = vld [vmem:[#allocation5 + $0xc0] ss:$8 sps:$4 sm:$0xff]   ;;  %6072 = vst [vmem:[#allocation20_spill] sm:$0xff] %v4863_v58  ;;  %v4865_v59 = vld [vmem:[#allocation5 + $0xe4] ss:$8 sps:$4 sm:$0xff]  }
 0x232   :  { %v4773_v4 = vadd.f32 %v4195_v63, %v4655_v48  ;;  %v617_v5 = vpop.f32.mrb[31].mxu1  ;;  %6070 = vst [vmem:[#allocation18_spill] sm:$0xff] %v4857_v56  ;;  %6073 = vst [vmem:[#allocation21_spill] sm:$0xff] %v4865_v59  ;;  %v4869_v63 = vld [vmem:[#allocation5 + $0xe0] ss:$8 sps:$4 sm:$0xff]  }
 0x233   :  { %v4779_v6 = vadd.f32 %v4655_v48, %v617_v5  ;;  %v4791_v48 = vld [vmem:[#allocation5 + $0x10] ss:$8 sps:$4 sm:$0xff]   ;;  %6074 = vst [vmem:[#allocation22_spill] sm:$0xff] %v4869_v63  ;;  %v4871_v5 = vld [vmem:[#allocation5 + $0xf4] ss:$8 sps:$4 sm:$0xff]  }
 0x234   :  { %3671 = vmatpush3.bf16.msra.mxu1 %v762_v12  ;;  %v772_v9 = vpack.c.bf16 %v4773_v4, %v4770_v3  ;;  %v4793_v12 = vld [vmem:[#allocation5 + $0x24] ss:$8 sps:$4 sm:$0xff]   ;;  %6075 = vst [vmem:[#allocation23_spill] sm:$0xff] %v4871_v5 }
 0x235   :  { %v771_v13 = vpack.c.bf16 %v4779_v6, %v4776_v2 }
 0x237   :  { %3672 = vmatprep.subr.bf16.mxu1 %v771_v13 }
 0x238   :  { %3673 = vmatpush3.bf16.msra.mxu1 %v763_v23  ;;  %v4805_v23 = vld [vmem:[#allocation5 + $0x44] ss:$8 sps:$4 sm:$0xff]  }
 0x239   :  { %3674 = vmatprep.subr.bf16.mxu1 %v772_v9  ;;  %v4875_v9 = vld [vmem:[#allocation5 + $0xf0] ss:$8 sps:$4 sm:$0xff]  }
 0x23a   :  { %6076 = vst [vmem:[#allocation24_spill] sm:$0xff] %v4875_v9 }
 0x23c   :  { %3675 = vmatpush3.bf16.msra.mxu1 %v764_v22  ;;  %v4803_v22 = vld [vmem:[#allocation5 + $0x30] ss:$8 sps:$4 sm:$0xff]  }
 0x23f   :  { %998 = vmatmul.mubr.bf16.vlgmr.msra.gmra.mrb[32].mxu1 %v4785_v14 }
 0x240   :  { %1005 = vmatprep.mubr.bf16.mxu1 %v4787_v15 }
 0x247   :  { %1006 = vmatmul.mubr.bf16.gmra.mrb[36].mxu1 %v4791_v48 }
 0x248   :  { %1013 = vmatprep.mubr.bf16.mxu1 %v4793_v12 }
 0x24f   :  { %1014 = vmatmul.mubr.bf16.gmra.mrb[40].mxu1 %v4797_v16 }
 0x250   :  { %1021 = vmatprep.mubr.bf16.mxu1 %v4799_v19 }
 0x257   :  { %1022 = vmatmul.mubr.bf16.gmra.mrb[44].mxu1 %v4803_v22 }
 0x258   :  { %1029 = vmatprep.mubr.bf16.mxu1 %v4805_v23 }
 0x25f   :  { %1030 = vmatmul.mubr.bf16.gmra.mrb[48].mxu1 %v4809_v24 }
 0x260   :  { %1037 = vmatprep.mubr.bf16.mxu1 %v4811_v25 }
 0x267   :  { %1038 = vmatmul.mubr.bf16.gmra.mrb[52].mxu1 %v4815_v26 }
 0x268   :  { %1045 = vmatprep.mubr.bf16.mxu1 %v4817_v29 }
 0x26f   :  { %1046 = vmatmul.mubr.bf16.gmra.mrb[56].mxu1 %v4821_v32 }
 0x270   :  { %1053 = vmatprep.mubr.bf16.mxu1 %v4823_v33 }
 0x277   :  { %1054 = vmatmul.mubr.bf16.gmra.mrb[60].mxu1 %v4827_v34 }
 0x278   :  { %1061 = vmatprep.mubr.bf16.mxu1 %v4829_v35 }
 0x27f   :  { %1062 = vmatmul.mubr.bf16.gmra.mrb[64].mxu1 %v4833_v36 }
 0x280   :  { %1069 = vmatprep.mubr.bf16.mxu1 %v4835_v39 }
 0x287   :  { %1070 = vmatmul.mubr.bf16.gmra.mrb[68].mxu1 %v4839_v42 }
 0x288   :  { %1077 = vmatprep.mubr.bf16.mxu1 %v4841_v43 }
 0x28f   :  { %1078 = vmatmul.mubr.bf16.gmra.mrb[72].mxu1 %v4845_v44  ;;  %v4882_v44 = vmul.f32 0.1, %v4667_v54  ;;  %v4893_v54 = vmul.f32 0.1, %v4658_v50 }
 0x290   :  { %1085 = vmatprep.mubr.bf16.mxu1 %v4847_v45 }
 0x291   :  { %6078 = vst [vmem:[#allocation26_spill] sm:$0xff] %v4882_v44  ;;  %6079 = vst [vmem:[#allocation27_spill] sm:$0xff] %v4893_v54 }
 0x297   :  { %1086 = vmatmul.mubr.bf16.gmra.mrb[76].mxu1 %v4851_v46 }
 0x298   :  { %1093 = vmatprep.mubr.bf16.mxu1 %v4853_v49 }
 0x29f   :  { %1094 = vmatmul.mubr.bf16.gmra.mrb[80].mxu1 %v4857_v56 }
 0x2a0   :  { %1101 = vmatprep.mubr.bf16.mxu1 %v4859_v57 }
 0x2a7   :  { %1102 = vmatmul.mubr.bf16.gmra.mrb[84].mxu1 %v4863_v58 }
 0x2a8   :  { %1109 = vmatprep.mubr.bf16.mxu1 %v4865_v59  ;;  %v4879_v59 = vmul.f32 0.1, %v4664_v53 }
 0x2aa   :  { %6077 = vst [vmem:[#allocation25_spill] sm:$0xff] %v4879_v59 }
 0x2af   :  { %1110 = vmatmul.mubr.bf16.gmra.mrb[88].mxu1 %v4869_v63 }
 0x2b0   :  { %1117 = vmatprep.mubr.bf16.mxu1 %v4871_v5 }
 0x2b7   :  { %1118 = vmatmul.mubr.bf16.gmra.mrb[92].mxu1 %v4875_v9 }
 0x312   :  { %v3676_v13 = vpop.f32.mrb[32].mxu1 }
 0x313   :  { %v3677_v57 = vpop.f32.mrb[33].mxu1 }
 0x314   :  { %v3678_v56 = vadd.f32 %v3677_v57, %v3676_v13  ;;  %v3679_v49 = vpop.f32.mrb[34].mxu1 }
 0x315   :  { %v3680_v46 = vpop.f32.mrb[35].mxu1 }
 0x316   :  { %v1126_v58 = vmul.f32 0.9, %v3678_v56  ;;  %v3681_v45 = vadd.f32 %v3680_v46, %v3679_v49 }
 0x318   :  { %v1127_v63 = vmul.f32 0.9, %v3681_v45  ;;  %v4885_v5 = vadd.f32 %v4879_v59, %v1126_v58  ;;  %v4896_v45 = vmul.f32 0.1, %v4661_v51  ;;  %v4907_v51 = vmul.f32 0.1, %v4680_v0 }
 0x31a   :  { %v4888_v43 = vadd.f32 %v4882_v44, %v1127_v63  ;;  %v3682_v9 = vpop.f32.mrb[36].mxu1  ;;  %6080 = vst [vmem:[#allocation28_spill] sm:$0xff] %v4896_v45  ;;  %6081 = vst [vmem:[#allocation29_spill] sm:$0xff] %v4907_v51 }
 0x31b   :  { %v3683_v42 = vpop.f32.mrb[37].mxu1 }
 0x31c   :  { %v3684_v57 = vadd.f32 %v3683_v42, %v3682_v9  ;;  %v3685_v13 = vpop.f32.mrb[38].mxu1 }
 0x31d   :  { %v3686_v49 = vpop.f32.mrb[39].mxu1 }
 0x31e   :  { %v1128_v53 = vmul.f32 0.9, %v3684_v57  ;;  %v3687_v56 = vadd.f32 %v3686_v49, %v3685_v13 }
 0x320   :  { %v1129_v58 = vmul.f32 0.9, %v3687_v56  ;;  %v4899_v63 = vadd.f32 %v4893_v54, %v1128_v53  ;;  %v4910_v56 = vmul.f32 0.1, %v4683_v1  ;;  %v4921_v1 = vmul.f32 0.1, %v4674_v61 }
 0x322   :  { %v4902_v44 = vadd.f32 %v4896_v45, %v1129_v58  ;;  %v3688_v42 = vpop.f32.mrb[40].mxu1  ;;  %6082 = vst [vmem:[#allocation30_spill] sm:$0xff] %v4910_v56  ;;  %6083 = vst [vmem:[#allocation31_spill] sm:$0xff] %v4921_v1 }
 0x323   :  { %v3689_v9 = vpop.f32.mrb[41].mxu1 }
 0x324   :  { %v3690_v59 = vadd.f32 %v3689_v9, %v3688_v42  ;;  %v3691_v46 = vpop.f32.mrb[42].mxu1 }
 0x325   :  { %v3692_v13 = vpop.f32.mrb[43].mxu1 }
 0x326   :  { %v1130_v50 = vmul.f32 0.9, %v3690_v59  ;;  %v3693_v49 = vadd.f32 %v3692_v13, %v3691_v46 }
 0x328   :  { %v1131_v53 = vmul.f32 0.9, %v3693_v49  ;;  %v4913_v58 = vadd.f32 %v4907_v51, %v1130_v50  ;;  %v4924_v49 = vmul.f32 0.1, %v4677_v62  ;;  %v4935_v62 = vmul.f32 0.1, %v4696_v10 }
 0x32a   :  { %v4916_v45 = vadd.f32 %v4910_v56, %v1131_v53  ;;  %v3694_v42 = vpop.f32.mrb[44].mxu1  ;;  %6084 = vst [vmem:[#allocation32_spill] sm:$0xff] %v4924_v49  ;;  %6085 = vst [vmem:[#allocation33_spill] sm:$0xff] %v4935_v62 }
 0x32b   :  { %v3695_v9 = vpop.f32.mrb[45].mxu1 }
 0x32c   :  { %v3696_v54 = vadd.f32 %v3695_v9, %v3694_v42  ;;  %v3697_v57 = vpop.f32.mrb[46].mxu1 }
 0x32d   :  { %v3698_v46 = vpop.f32.mrb[47].mxu1 }
 0x32e   :  { %v1132_v0 = vmul.f32 0.9, %v3696_v54  ;;  %v3699_v13 = vadd.f32 %v3698_v46, %v3697_v57 }
 0x330   :  { %v1133_v50 = vmul.f32 0.9, %v3699_v13  ;;  %v4927_v53 = vadd.f32 %v4921_v1, %v1132_v0  ;;  %v4938_v13 = vmul.f32 0.1, %v4699_v11  ;;  %v4949_v11 = vmul.f32 0.1, %v4690_v7 }
 0x332   :  { %v4930_v56 = vadd.f32 %v4924_v49, %v1133_v50  ;;  %v3700_v42 = vpop.f32.mrb[48].mxu1  ;;  %6086 = vst [vmem:[#allocation34_spill] sm:$0xff] %v4938_v13  ;;  %6087 = vst [vmem:[#allocation35_spill] sm:$0xff] %v4949_v11 }
 0x333   :  { %v3701_v9 = vpop.f32.mrb[49].mxu1 }
 0x334   :  { %v3702_v51 = vadd.f32 %v3701_v9, %v3700_v42  ;;  %v3703_v59 = vpop.f32.mrb[50].mxu1 }
 0x335   :  { %v3704_v57 = vpop.f32.mrb[51].mxu1 }
 0x336   :  { %v1134_v61 = vmul.f32 0.9, %v3702_v51  ;;  %v3705_v46 = vadd.f32 %v3704_v57, %v3703_v59 }
 0x338   :  { %v1135_v0 = vmul.f32 0.9, %v3705_v46  ;;  %v4941_v50 = vadd.f32 %v4935_v62, %v1134_v61  ;;  %v4952_v46 = vmul.f32 0.1, %v4693_v8  ;;  %v4963_v8 = vmul.f32 0.1, %v4712_v20 }
 0x33a   :  { %v4944_v49 = vadd.f32 %v4938_v13, %v1135_v0  ;;  %v3706_v42 = vpop.f32.mrb[52].mxu1  ;;  %6088 = vst [vmem:[#allocation36_spill] sm:$0xff] %v4952_v46  ;;  %6089 = vst [vmem:[#allocation37_spill] sm:$0xff] %v4963_v8 }
 0x33b   :  { %v3707_v9 = vpop.f32.mrb[53].mxu1 }
 0x33c   :  { %v3708_v1 = vadd.f32 %v3707_v9, %v3706_v42  ;;  %v3709_v54 = vpop.f32.mrb[54].mxu1 }
 0x33d   :  { %v3710_v59 = vpop.f32.mrb[55].mxu1 }
 0x33e   :  { %v1136_v10 = vmul.f32 0.9, %v3708_v1  ;;  %v3711_v57 = vadd.f32 %v3710_v59, %v3709_v54 }
 0x340   :  { %v1137_v61 = vmul.f32 0.9, %v3711_v57  ;;  %v4955_v0 = vadd.f32 %v4949_v11, %v1136_v10  ;;  %v4966_v57 = vmul.f32 0.1, %v4715_v21  ;;  %v4977_v21 = vmul.f32 0.1, %v4706_v17 }
 0x342   :  { %v4958_v13 = vadd.f32 %v4952_v46, %v1137_v61  ;;  %v3712_v42 = vpop.f32.mrb[56].mxu1  ;;  %6090 = vst [vmem:[#allocation38_spill] sm:$0xff] %v4966_v57  ;;  %6091 = vst [vmem:[#allocation39_spill] sm:$0xff] %v4977_v21 }
 0x343   :  { %v3713_v9 = vpop.f32.mrb[57].mxu1 }
 0x344   :  { %v3714_v62 = vadd.f32 %v3713_v9, %v3712_v42  ;;  %v3715_v51 = vpop.f32.mrb[58].mxu1 }
 0x345   :  { %v3716_v54 = vpop.f32.mrb[59].mxu1 }
 0x346   :  { %v1138_v7 = vmul.f32 0.9, %v3714_v62  ;;  %v3717_v59 = vadd.f32 %v3716_v54, %v3715_v51 }
 0x348   :  { %v1139_v10 = vmul.f32 0.9, %v3717_v59  ;;  %v4969_v61 = vadd.f32 %v4963_v8, %v1138_v7  ;;  %v4980_v59 = vmul.f32 0.1, %v4709_v18  ;;  %v4991_v18 = vmul.f32 0.1, %v4728_v30 }
 0x349   :  { %v6093_v30 = vpack.c.bf16 %v4888_v43, %v4885_v5 }
 0x34a   :  { %v4972_v46 = vadd.f32 %v4966_v57, %v1139_v10  ;;  %v3718_v42 = vpop.f32.mrb[60].mxu1  ;;  %6092 = vst [vmem:[#allocation40_spill] sm:$0xff] %v4980_v59 }
 0x34b   :  { %v3719_v9 = vpop.f32.mrb[61].mxu1 }
 0x34c   :  { %v3720_v11 = vadd.f32 %v3719_v9, %v3718_v42  ;;  %v3721_v1 = vpop.f32.mrb[62].mxu1 }
 0x34d   :  { %v3722_v51 = vpop.f32.mrb[63].mxu1 }
 0x34e   :  { %v1140_v20 = vmul.f32 0.9, %v3720_v11  ;;  %v3723_v54 = vadd.f32 %v3722_v51, %v3721_v1 }
 0x350   :  { %v1141_v7 = vmul.f32 0.9, %v3723_v54  ;;  %v4983_v10 = vadd.f32 %v4977_v21, %v1140_v20  ;;  %v4994_v54 = vmul.f32 0.1, %v4731_v31  ;;  %v5002_v31 = vmul.f32 0.1, %v4722_v27 }
 0x351   :  { %v6094_v27 = vpack.c.bf16 %v4902_v44, %v4899_v63  ;;  %v5027_v63 = vmul.f32 0.1, %v4741_v38  ;;  %v5035_v38 = vmul.f32 0.1, %v4760_v52  ;;  %v6097_v52 = vpack.c.bf16 %v4944_v49, %v4941_v50 }
 0x352   :  { %v4986_v57 = vadd.f32 %v4980_v59, %v1141_v7  ;;  %v3724_v42 = vpop.f32.mrb[64].mxu1  ;;  %v5060_v50 = vmul.f32 0.1, %v4779_v6  ;;  %v5068_v6 = vmul.f32 0.1, %v4770_v3  ;;  %v6101_v3 = vld [vmem:[#allocation9_spill] sm:$0xff] }
 0x353   :  { %v3725_v9 = vpop.f32.mrb[65].mxu1 }
 0x354   :  { %v3726_v8 = vadd.f32 %v3725_v9, %v3724_v42  ;;  %v3727_v62 = vpop.f32.mrb[66].mxu1 }
 0x355   :  { %v3728_v1 = vpop.f32.mrb[67].mxu1 }
 0x356   :  { %v1142_v17 = vmul.f32 0.9, %v3726_v8  ;;  %v3729_v51 = vadd.f32 %v3728_v1, %v3727_v62  ;;  %v5005_v62 = vmul.f32 0.1, %v4725_v28  ;;  %v5013_v28 = vmul.f32 0.1, %v4744_v40 }
 0x357   :  { %v6095_v40 = vpack.c.bf16 %v4916_v45, %v4913_v58  ;;  %v5038_v58 = vmul.f32 0.1, %v4763_v55  ;;  %v5046_v55 = vmul.f32 0.1, %v4754_v47  ;;  %v6098_v47 = vpack.c.bf16 %v4958_v13, %v4955_v0 }
 0x358   :  { %v1143_v20 = vmul.f32 0.9, %v3729_v51  ;;  %v1238_v7 = vadd.f32 %v4991_v18, %v1142_v17  ;;  %v5071_v0 = vmul.f32 0.1, %v4773_v4  ;;  %v6102_v4 = vld [vmem:[#allocation10_spill] sm:$0xff] }
 0x35a   :  { %v1239_v59 = vadd.f32 %v4994_v54, %v1143_v20  ;;  %v3730_v21 = vpop.f32.mrb[68].mxu1 }
 0x35b   :  { %v3731_v42 = vpop.f32.mrb[69].mxu1 }
 0x35c   :  { %v3732_v9 = vadd.f32 %v3731_v42, %v3730_v21  ;;  %v3733_v39 = vpop.f32.mrb[70].mxu1  ;;  %v1326_v36 = vpack.c.bf16 %v1239_v59, %v1238_v7 }
 0x35d   :  { %v3734_v11 = vpop.f32.mrb[71].mxu1 }
 0x35e   :  { %v1144_v35 = vmul.f32 0.9, %v3732_v9  ;;  %v3735_v8 = vadd.f32 %v3734_v11, %v3733_v39  ;;  %3772 = vmatprep.subr.bf16.mxu0 %v1326_v36 }
 0x35f   :  { %3773 = vmatpush3.bf16.msra.mxu0 %v6093_v30 }
 0x360   :  { %v1145_v1 = vmul.f32 0.9, %v3735_v8  ;;  %v1240_v17 = vadd.f32 %v5002_v31, %v1144_v35  ;;  %v5016_v35 = vmul.f32 0.1, %v4747_v41  ;;  %v5024_v41 = vmul.f32 0.1, %v4738_v37 }
 0x361   :  { %v6096_v37 = vpack.c.bf16 %v4930_v56, %v4927_v53  ;;  %v5049_v53 = vmul.f32 0.1, %v4757_v60  ;;  %v5057_v60 = vmul.f32 0.1, %v4776_v2  ;;  %v6099_v2 = vpack.c.bf16 %v4972_v46, %v4969_v61 }
 0x362   :  { %v1241_v21 = vadd.f32 %v5005_v62, %v1145_v1  ;;  %v3736_v59 = vpop.f32.mrb[72].mxu1 }
 0x363   :  { %v3737_v51 = vpop.f32.mrb[73].mxu1 }
 0x364   :  { %v3738_v20 = vadd.f32 %v3737_v51, %v3736_v59  ;;  %v3739_v39 = vpop.f32.mrb[74].mxu1  ;;  %v1327_v36 = vpack.c.bf16 %v1241_v21, %v1240_v17 }
 0x365   :  { %v3740_v11 = vpop.f32.mrb[75].mxu1 }
 0x366   :  { %v1146_v7 = vmul.f32 0.9, %v3738_v20  ;;  %v3741_v43 = vadd.f32 %v3740_v11, %v3739_v39  ;;  %3774 = vmatprep.subr.bf16.mxu0 %v1327_v36 }
 0x367   :  { %3775 = vmatpush3.bf16.msra.mxu0 %v6094_v27 }
 0x368   :  { %v1147_v5 = vmul.f32 0.9, %v3741_v43  ;;  %v1242_v42 = vadd.f32 %v5013_v28, %v1146_v7 }
 0x36a   :  { %v1243_v9 = vadd.f32 %v5016_v35, %v1147_v5  ;;  %v3742_v8 = vpop.f32.mrb[76].mxu1 }
 0x36b   :  { %v3743_v30 = vpop.f32.mrb[77].mxu1 }
 0x36c   :  { %v3744_v1 = vadd.f32 %v3743_v30, %v3742_v8  ;;  %v3745_v17 = vpop.f32.mrb[78].mxu1  ;;  %v1328_v21 = vpack.c.bf16 %v1243_v9, %v1242_v42 }
 0x36d   :  { %v3746_v59 = vpop.f32.mrb[79].mxu1 }
 0x36e   :  { %v1148_v51 = vmul.f32 0.9, %v3744_v1  ;;  %v3747_v44 = vadd.f32 %v3746_v59, %v3745_v17  ;;  %3776 = vmatprep.subr.bf16.mxu0 %v1328_v21 }
 0x36f   :  { %3777 = vmatpush3.bf16.msra.mxu0 %v6095_v40 }
 0x370   :  { %v1149_v20 = vmul.f32 0.9, %v3747_v44  ;;  %v1244_v39 = vadd.f32 %v5024_v41, %v1148_v51 }
 0x372   :  { %v1245_v36 = vadd.f32 %v5027_v63, %v1149_v20  ;;  %v3748_v11 = vpop.f32.mrb[80].mxu1 }
 0x373   :  { %v3749_v7 = vpop.f32.mrb[81].mxu1 }
 0x374   :  { %v3750_v43 = vadd.f32 %v3749_v7, %v3748_v11  ;;  %v3751_v27 = vpop.f32.mrb[82].mxu1  ;;  %v1329_v5 = vpack.c.bf16 %v1245_v36, %v1244_v39 }
 0x375   :  { %v3752_v42 = vpop.f32.mrb[83].mxu1 }
 0x376   :  { %v1150_v9 = vmul.f32 0.9, %v3750_v43  ;;  %v3753_v45 = vadd.f32 %v3752_v42, %v3751_v27  ;;  %3778 = vmatprep.subr.bf16.mxu0 %v1329_v5 }
 0x377   :  { %3779 = vmatpush3.bf16.msra.mxu0 %v6096_v37 }
 0x378   :  { %v1151_v8 = vmul.f32 0.9, %v3753_v45  ;;  %v1246_v30 = vadd.f32 %v5035_v38, %v1150_v9 }
 0x37a   :  { %v1247_v1 = vadd.f32 %v5038_v58, %v1151_v8  ;;  %v3754_v17 = vpop.f32.mrb[84].mxu1 }
 0x37b   :  { %v3755_v21 = vpop.f32.mrb[85].mxu1 }
 0x37c   :  { %v3756_v59 = vadd.f32 %v3755_v21, %v3754_v17  ;;  %v3757_v51 = vpop.f32.mrb[86].mxu1  ;;  %v1330_v44 = vpack.c.bf16 %v1247_v1, %v1246_v30 }
 0x37d   :  { %v3758_v40 = vpop.f32.mrb[87].mxu1 }
 0x37e   :  { %v1152_v20 = vmul.f32 0.9, %v3756_v59  ;;  %v3759_v56 = vadd.f32 %v3758_v40, %v3757_v51  ;;  %3780 = vmatprep.subr.bf16.mxu0 %v1330_v44 }
 0x37f   :  { %3781 = vmatpush3.bf16.msra.mxu0 %v6097_v52 }
 0x380   :  { %v1153_v39 = vmul.f32 0.9, %v3759_v56  ;;  %v1248_v36 = vadd.f32 %v5046_v55, %v1152_v20 }
 0x382   :  { %v1249_v11 = vadd.f32 %v5049_v53, %v1153_v39  ;;  %v3760_v7 = vpop.f32.mrb[88].mxu1 }
 0x383   :  { %v3761_v43 = vpop.f32.mrb[89].mxu1 }
 0x384   :  { %v3762_v27 = vadd.f32 %v3761_v43, %v3760_v7  ;;  %v3763_v5 = vpop.f32.mrb[90].mxu1  ;;  %v1331_v42 = vpack.c.bf16 %v1249_v11, %v1248_v36  ;;  %v6100_v36 = vpack.c.bf16 %v4986_v57, %v4983_v10  ;;  %v4278_v43 = vld [vmem:[#allocation5 + $0x4] ss:$8 sps:$4 sm:$0xff]  }
 0x385   :  { %v3764_v9 = vpop.f32.mrb[91].mxu1  ;;  %2119 = vmatprep.mubr.bf16.mxu1 %v4278_v43 }
 0x386   :  { %v1154_v45 = vmul.f32 0.9, %v3762_v27  ;;  %v3765_v49 = vadd.f32 %v3764_v9, %v3763_v5  ;;  %3782 = vmatprep.subr.bf16.mxu0 %v1331_v42  ;;  %v6117_v5 = vld [vmem:[#allocation25_spill] sm:$0xff]  ;;  %v6118_v9 = vld [vmem:[#allocation26_spill] sm:$0xff] }
 0x387   :  { %3783 = vmatpush3.bf16.msra.mxu0 %v6098_v47 }
 0x388   :  { %v1155_v37 = vmul.f32 0.9, %v3765_v49  ;;  %v1250_v8 = vadd.f32 %v5057_v60, %v1154_v45 }
 0x38a   :  { %v1251_v30 = vadd.f32 %v5060_v50, %v1155_v37  ;;  %v3766_v1 = vpop.f32.mrb[92].mxu1 }
 0x38b   :  { %v3767_v17 = vpop.f32.mrb[93].mxu1 }
 0x38c   :  { %v3768_v21 = vadd.f32 %v3767_v17, %v3766_v1  ;;  %v3769_v59 = vpop.f32.mrb[94].mxu1  ;;  %v1332_v51 = vpack.c.bf16 %v1251_v30, %v1250_v8 }
 0x38d   :  { %v3770_v44 = vpop.f32.mrb[95].mxu1 }
 0x38e   :  { %v1156_v40 = vmul.f32 0.9, %v3768_v21  ;;  %v3771_v13 = vadd.f32 %v3770_v44, %v3769_v59  ;;  %3784 = vmatprep.subr.bf16.mxu0 %v1332_v51  ;;  %v6119_v51 = vld [vmem:[#allocation27_spill] sm:$0xff] }
 0x38f   :  { %3785 = vmatpush3.bf16.msra.mxu0 %v6099_v2 }
 0x390   :  { %v1157_v20 = vmul.f32 0.9, %v3771_v13  ;;  %v1252_v56 = vadd.f32 %v5068_v6, %v1156_v40  ;;  %v6120_v40 = vld [vmem:[#allocation28_spill] sm:$0xff] }
 0x392   :  { %v1253_v52 = vadd.f32 %v5071_v0, %v1157_v20 }
 0x394   :  { %v1333_v39 = vpack.c.bf16 %v1253_v52, %v1252_v56 }
 0x396   :  { %3786 = vmatprep.subr.bf16.mxu0 %v1333_v39 }
 0x397   :  { %3787 = vmatpush3.bf16.msra.mxu0 %v6100_v36 }
 0x39a   :  { %1559 = vmatmul.mubr.bf16.vlgmr.msra.gmra.mrb[32].mxu0 %v4785_v14  ;;  %v6103_v14 = vld [vmem:[#allocation11_spill] sm:$0xff] }
 0x39b   :  { %1566 = vmatprep.mubr.bf16.mxu0 %v4787_v15  ;;  %v6104_v15 = vld [vmem:[#allocation12_spill] sm:$0xff] }
 0x3a2   :  { %1567 = vmatmul.mubr.bf16.gmra.mrb[36].mxu0 %v4791_v48  ;;  %v6105_v48 = vld [vmem:[#allocation13_spill] sm:$0xff] }
 0x3a3   :  { %1574 = vmatprep.mubr.bf16.mxu0 %v4793_v12  ;;  %v6106_v12 = vld [vmem:[#allocation14_spill] sm:$0xff] }
 0x3aa   :  { %1575 = vmatmul.mubr.bf16.gmra.mrb[40].mxu0 %v4797_v16  ;;  %v6107_v16 = vld [vmem:[#allocation15_spill] sm:$0xff] }
 0x3ab   :  { %1582 = vmatprep.mubr.bf16.mxu0 %v4799_v19  ;;  %v6108_v19 = vld [vmem:[#allocation16_spill] sm:$0xff] }
 0x3b2   :  { %1583 = vmatmul.mubr.bf16.gmra.mrb[44].mxu0 %v4803_v22  ;;  %v6109_v22 = vld [vmem:[#allocation17_spill] sm:$0xff] }
 0x3b3   :  { %1590 = vmatprep.mubr.bf16.mxu0 %v4805_v23  ;;  %v6110_v23 = vld [vmem:[#allocation18_spill] sm:$0xff] }
 0x3ba   :  { %1591 = vmatmul.mubr.bf16.gmra.mrb[48].mxu0 %v4809_v24  ;;  %v6111_v24 = vld [vmem:[#allocation19_spill] sm:$0xff] }
 0x3bb   :  { %1598 = vmatprep.mubr.bf16.mxu0 %v4811_v25  ;;  %v6112_v25 = vld [vmem:[#allocation20_spill] sm:$0xff] }
 0x3c2   :  { %1599 = vmatmul.mubr.bf16.gmra.mrb[52].mxu0 %v4815_v26  ;;  %v6113_v26 = vld [vmem:[#allocation21_spill] sm:$0xff] }
 0x3c3   :  { %1606 = vmatprep.mubr.bf16.mxu0 %v4817_v29  ;;  %v6114_v29 = vld [vmem:[#allocation22_spill] sm:$0xff] }
 0x3ca   :  { %1607 = vmatmul.mubr.bf16.gmra.mrb[56].mxu0 %v4821_v32  ;;  %v6115_v32 = vld [vmem:[#allocation23_spill] sm:$0xff] }
 0x3cb   :  { %1614 = vmatprep.mubr.bf16.mxu0 %v4823_v33  ;;  %v6116_v33 = vld [vmem:[#allocation24_spill] sm:$0xff] }
 0x3d2   :  { %1615 = vmatmul.mubr.bf16.gmra.mrb[60].mxu0 %v4827_v34 }
 0x3d3   :  { %1622 = vmatprep.mubr.bf16.mxu0 %v6101_v3 }
 0x3da   :  { %1623 = vmatmul.mubr.bf16.gmra.mrb[64].mxu0 %v6102_v4 }
 0x3db   :  { %1630 = vmatprep.mubr.bf16.mxu0 %v6103_v14 }
 0x3e2   :  { %1631 = vmatmul.mubr.bf16.gmra.mrb[68].mxu0 %v6104_v15  ;;  %v6121_v15 = vld [vmem:[#allocation29_spill] sm:$0xff] }
 0x3e3   :  { %1638 = vmatprep.mubr.bf16.mxu0 %v6105_v48 }
 0x3ea   :  { %1639 = vmatmul.mubr.bf16.gmra.mrb[72].mxu0 %v6106_v12  ;;  %v6122_v12 = vld [vmem:[#allocation30_spill] sm:$0xff] }
 0x3eb   :  { %1646 = vmatprep.mubr.bf16.mxu0 %v6107_v16 }
 0x3f2   :  { %1647 = vmatmul.mubr.bf16.gmra.mrb[76].mxu0 %v6108_v19 }
 0x3f3   :  { %1654 = vmatprep.mubr.bf16.mxu0 %v6109_v22 }
 0x3fa   :  { %1655 = vmatmul.mubr.bf16.gmra.mrb[80].mxu0 %v6110_v23 }
 0x3fb   :  { %1662 = vmatprep.mubr.bf16.mxu0 %v6111_v24 }
 0x402   :  { %1663 = vmatmul.mubr.bf16.gmra.mrb[84].mxu0 %v6112_v25 }
 0x403   :  { %1670 = vmatprep.mubr.bf16.mxu0 %v6113_v26 }
 0x40a   :  { %1671 = vmatmul.mubr.bf16.gmra.mrb[88].mxu0 %v6114_v29 }
 0x40b   :  { %1678 = vmatprep.mubr.bf16.mxu0 %v6115_v32 }
 0x412   :  { %1679 = vmatmul.mubr.bf16.gmra.mrb[92].mxu0 %v6116_v33 }
 0x413   :  { %2680 = vmatprep.mubr.bf16.mxu0 %v4278_v43 }
 0x46d   :  { %v3788_v34 = vpop.f32.mrb[32].mxu0 }
 0x46e   :  { %v3789_v46 = vpop.f32.mrb[33].mxu0 }
 0x46f   :  { %v3790_v57 = vadd.f32 %v3789_v46, %v3788_v34  ;;  %v3791_v61 = vpop.f32.mrb[34].mxu0  ;;  %v6123_v34 = vld [vmem:[#allocation31_spill] sm:$0xff] }
 0x470   :  { %v3792_v10 = vpop.f32.mrb[35].mxu0 }
 0x471   :  { %v1687_v11 = vmul.f32 0.9, %v3790_v57  ;;  %v3793_v7 = vadd.f32 %v3792_v10, %v3791_v61  ;;  %v6124_v57 = vld [vmem:[#allocation32_spill] sm:$0xff] }
 0x473   :  { %v1688_v27 = vmul.f32 0.9, %v3793_v7  ;;  %v5110_v42 = vadd.f32 %v1687_v11, %v6117_v5 }
 0x475   :  { %v5113_v45 = vadd.f32 %v1688_v27, %v6118_v9  ;;  %v3794_v49 = vpop.f32.mrb[36].mxu0 }
 0x476   :  { %v3795_v47 = vpop.f32.mrb[37].mxu0 }
 0x477   :  { %v3796_v37 = vadd.f32 %v3795_v47, %v3794_v49  ;;  %v3797_v8 = vpop.f32.mrb[38].mxu0 }
 0x478   :  { %v3798_v1 = vpop.f32.mrb[39].mxu0 }
 0x479   :  { %v1689_v17 = vmul.f32 0.9, %v3796_v37  ;;  %v3799_v21 = vadd.f32 %v3798_v1, %v3797_v8  ;;  %v6125_v1 = vld [vmem:[#allocation33_spill] sm:$0xff] }
 0x47b   :  { %v1690_v59 = vmul.f32 0.9, %v3799_v21  ;;  %v5118_v44 = vadd.f32 %v1689_v17, %v6119_v51  ;;  %v6126_v21 = vld [vmem:[#allocation34_spill] sm:$0xff] }
 0x47d   :  { %v5121_v13 = vadd.f32 %v1690_v59, %v6120_v40  ;;  %v3800_v2 = vpop.f32.mrb[40].mxu0 }
 0x47e   :  { %v3801_v20 = vpop.f32.mrb[41].mxu0 }
 0x47f   :  { %v3802_v56 = vadd.f32 %v3801_v20, %v3800_v2  ;;  %v3803_v52 = vpop.f32.mrb[42].mxu0 }
 0x480   :  { %v3804_v36 = vpop.f32.mrb[43].mxu0 }
 0x481   :  { %v1691_v3 = vmul.f32 0.9, %v3802_v56  ;;  %v3805_v4 = vadd.f32 %v3804_v36, %v3803_v52 }
 0x483   :  { %v1692_v14 = vmul.f32 0.9, %v3805_v4  ;;  %v5126_v48 = vadd.f32 %v1691_v3, %v6121_v15 }
 0x485   :  { %v5129_v16 = vadd.f32 %v1692_v14, %v6122_v12  ;;  %v3806_v19 = vpop.f32.mrb[44].mxu0 }
 0x486   :  { %v3807_v22 = vpop.f32.mrb[45].mxu0 }
 0x487   :  { %v3808_v23 = vadd.f32 %v3807_v22, %v3806_v19  ;;  %v3809_v24 = vpop.f32.mrb[46].mxu0  ;;  %v6127_v22 = vld [vmem:[#allocation35_spill] sm:$0xff] }
 0x488   :  { %v3810_v26 = vpop.f32.mrb[47].mxu0 }
 0x489   :  { %v1693_v29 = vmul.f32 0.9, %v3808_v23  ;;  %v3811_v32 = vadd.f32 %v3810_v26, %v3809_v24  ;;  %v6128_v24 = vld [vmem:[#allocation36_spill] sm:$0xff] }
 0x48b   :  { %v1694_v33 = vmul.f32 0.9, %v3811_v32  ;;  %v5134_v46 = vadd.f32 %v1693_v29, %v6123_v34 }
 0x48d   :  { %v5137_v61 = vadd.f32 %v1694_v33, %v6124_v57  ;;  %v3812_v10 = vpop.f32.mrb[48].mxu0 }
 0x48e   :  { %v3813_v11 = vpop.f32.mrb[49].mxu0 }
 0x48f   :  { %v3814_v7 = vadd.f32 %v3813_v11, %v3812_v10  ;;  %v3815_v43 = vpop.f32.mrb[50].mxu0 }
 0x490   :  { %v3816_v49 = vpop.f32.mrb[51].mxu0 }
 0x491   :  { %v1695_v47 = vmul.f32 0.9, %v3814_v7  ;;  %v3817_v37 = vadd.f32 %v3816_v49, %v3815_v43 }
 0x493   :  { %v1696_v8 = vmul.f32 0.9, %v3817_v37  ;;  %v5142_v17 = vadd.f32 %v1695_v47, %v6125_v1  ;;  %v6129_v37 = vld [vmem:[#allocation37_spill] sm:$0xff] }
 0x495   :  { %v5145_v59 = vadd.f32 %v1696_v8, %v6126_v21  ;;  %v3818_v2 = vpop.f32.mrb[52].mxu0 }
 0x496   :  { %v3819_v20 = vpop.f32.mrb[53].mxu0 }
 0x497   :  { %v3820_v56 = vadd.f32 %v3819_v20, %v3818_v2  ;;  %v3821_v52 = vpop.f32.mrb[54].mxu0  ;;  %v6130_v2 = vld [vmem:[#allocation38_spill] sm:$0xff] }
 0x498   :  { %v3822_v3 = vpop.f32.mrb[55].mxu0 }
 0x499   :  { %v1697_v4 = vmul.f32 0.9, %v3820_v56  ;;  %v3823_v14 = vadd.f32 %v3822_v3, %v3821_v52 }
 0x49b   :  { %v1698_v19 = vmul.f32 0.9, %v3823_v14  ;;  %v5150_v23 = vadd.f32 %v1697_v4, %v6127_v22 }
 0x49d   :  { %v5153_v26 = vadd.f32 %v1698_v19, %v6128_v24  ;;  %v3824_v29 = vpop.f32.mrb[56].mxu0 }
 0x49e   :  { %v3825_v32 = vpop.f32.mrb[57].mxu0 }
 0x49f   :  { %v3826_v33 = vadd.f32 %v3825_v32, %v3824_v29  ;;  %v3827_v10 = vpop.f32.mrb[58].mxu0 }
 0x4a0   :  { %v3828_v7 = vpop.f32.mrb[59].mxu0 }
 0x4a1   :  { %v1699_v43 = vmul.f32 0.9, %v3826_v33  ;;  %v3829_v49 = vadd.f32 %v3828_v7, %v3827_v10  ;;  %v6131_v33 = vld [vmem:[#allocation39_spill] sm:$0xff]  ;;  %v6132_v7 = vld [vmem:[#allocation40_spill] sm:$0xff] }
 0x4a3   :  { %v1700_v47 = vmul.f32 0.9, %v3829_v49  ;;  %v5158_v8 = vadd.f32 %v1699_v43, %v6129_v37 }
 0x4a5   :  { %v5161_v20 = vadd.f32 %v1700_v47, %v6130_v2  ;;  %v3830_v56 = vpop.f32.mrb[60].mxu0 }
 0x4a6   :  { %v3831_v52 = vpop.f32.mrb[61].mxu0 }
 0x4a7   :  { %v3832_v3 = vadd.f32 %v3831_v52, %v3830_v56  ;;  %v3833_v4 = vpop.f32.mrb[62].mxu0 }
 0x4a8   :  { %v3834_v19 = vpop.f32.mrb[63].mxu0 }
 0x4a9   :  { %v1701_v29 = vmul.f32 0.9, %v3832_v3  ;;  %v3835_v32 = vadd.f32 %v3834_v19, %v3833_v4 }
 0x4ab   :  { %v1702_v11 = vmul.f32 0.9, %v3835_v32  ;;  %v5166_v10 = vadd.f32 %v1701_v29, %v6131_v33 }
 0x4ad   :  { %v5169_v43 = vadd.f32 %v1702_v11, %v6132_v7  ;;  %v3836_v49 = vpop.f32.mrb[64].mxu0 }
 0x4ae   :  { %v3837_v47 = vpop.f32.mrb[65].mxu0 }
 0x4af   :  { %v3838_v36 = vadd.f32 %v3837_v47, %v3836_v49  ;;  %v3839_v27 = vpop.f32.mrb[66].mxu0  ;;  %v6133_v47 = vpack.c.bf16 %v5113_v45, %v5110_v42 }
 0x4b0   :  { %v3840_v52 = vpop.f32.mrb[67].mxu0 }
 0x4b1   :  { %v1703_v25 = vmul.f32 0.9, %v3838_v36  ;;  %v3841_v14 = vadd.f32 %v3840_v52, %v3839_v27 }
 0x4b3   :  { %v1704_v39 = vmul.f32 0.9, %v3841_v14  ;;  %v1799_v3 = vadd.f32 %v1703_v25, %v4991_v18 }
 0x4b5   :  { %v1800_v4 = vadd.f32 %v1704_v39, %v4994_v54  ;;  %v3842_v19 = vpop.f32.mrb[68].mxu0 }
 0x4b6   :  { %v3843_v29 = vpop.f32.mrb[69].mxu0 }
 0x4b7   :  { %v3844_v32 = vadd.f32 %v3843_v29, %v3842_v19  ;;  %v3845_v11 = vpop.f32.mrb[70].mxu0  ;;  %v1887_v30 = vpack.c.bf16 %v1800_v4, %v1799_v3 }
 0x4b8   :  { %v3846_v7 = vpop.f32.mrb[71].mxu0 }
 0x4b9   :  { %v1705_v33 = vmul.f32 0.9, %v3844_v32  ;;  %v3847_v49 = vadd.f32 %v3846_v7, %v3845_v11  ;;  %3884 = vmatprep.subr.bf16.mxu1 %v1887_v30  ;;  %v6134_v30 = vpack.c.bf16 %v5121_v13, %v5118_v44 }
 0x4ba   :  { %3885 = vmatpush3.bf16.msra.mxu1 %v6133_v47 }
 0x4bb   :  { %v1706_v36 = vmul.f32 0.9, %v3847_v49  ;;  %v1801_v27 = vadd.f32 %v1705_v33, %v5002_v31 }
 0x4bd   :  { %v1802_v25 = vadd.f32 %v1706_v36, %v5005_v62  ;;  %v3848_v14 = vpop.f32.mrb[72].mxu0 }
 0x4be   :  { %v3849_v39 = vpop.f32.mrb[73].mxu0 }
 0x4bf   :  { %v3850_v52 = vadd.f32 %v3849_v39, %v3848_v14  ;;  %v3851_v56 = vpop.f32.mrb[74].mxu0  ;;  %v1888_v19 = vpack.c.bf16 %v1802_v25, %v1801_v27 }
 0x4c0   :  { %v3852_v29 = vpop.f32.mrb[75].mxu0 }
 0x4c1   :  { %v1707_v3 = vmul.f32 0.9, %v3850_v52  ;;  %v3853_v4 = vadd.f32 %v3852_v29, %v3851_v56  ;;  %3886 = vmatprep.subr.bf16.mxu1 %v1888_v19  ;;  %v6135_v56 = vpack.c.bf16 %v5129_v16, %v5126_v48 }
 0x4c2   :  { %3887 = vmatpush3.bf16.msra.mxu1 %v6134_v30 }
 0x4c3   :  { %v1708_v42 = vmul.f32 0.9, %v3853_v4  ;;  %v1803_v45 = vadd.f32 %v1707_v3, %v5013_v28 }
 0x4c5   :  { %v1804_v33 = vadd.f32 %v1708_v42, %v5016_v35  ;;  %v3854_v7 = vpop.f32.mrb[76].mxu0 }
 0x4c6   :  { %v3855_v32 = vpop.f32.mrb[77].mxu0 }
 0x4c7   :  { %v3856_v11 = vadd.f32 %v3855_v32, %v3854_v7  ;;  %v3857_v49 = vpop.f32.mrb[78].mxu0  ;;  %v1889_v47 = vpack.c.bf16 %v1804_v33, %v1803_v45  ;;  %v6136_v45 = vpack.c.bf16 %v5137_v61, %v5134_v46 }
 0x4c8   :  { %v3858_v36 = vpop.f32.mrb[79].mxu0 }
 0x4c9   :  { %v1709_v27 = vmul.f32 0.9, %v3856_v11  ;;  %v3859_v25 = vadd.f32 %v3858_v36, %v3857_v49  ;;  %3888 = vmatprep.subr.bf16.mxu1 %v1889_v47 }
 0x4ca   :  { %3889 = vmatpush3.bf16.msra.mxu1 %v6135_v56  ;;  %v6137_v56 = vpack.c.bf16 %v5145_v59, %v5142_v17 }
 0x4cb   :  { %v1710_v44 = vmul.f32 0.9, %v3859_v25  ;;  %v1805_v13 = vadd.f32 %v1709_v27, %v5024_v41 }
 0x4cd   :  { %v1806_v14 = vadd.f32 %v1710_v44, %v5027_v63  ;;  %v3860_v39 = vpop.f32.mrb[80].mxu0 }
 0x4ce   :  { %v3861_v52 = vpop.f32.mrb[81].mxu0 }
 0x4cf   :  { %v3862_v19 = vadd.f32 %v3861_v52, %v3860_v39  ;;  %v3863_v29 = vpop.f32.mrb[82].mxu0  ;;  %v1890_v3 = vpack.c.bf16 %v1806_v14, %v1805_v13 }
 0x4d0   :  { %v3864_v4 = vpop.f32.mrb[83].mxu0 }
 0x4d1   :  { %v1711_v30 = vmul.f32 0.9, %v3862_v19  ;;  %v3865_v42 = vadd.f32 %v3864_v4, %v3863_v29  ;;  %3890 = vmatprep.subr.bf16.mxu1 %v1890_v3 }
 0x4d2   :  { %3891 = vmatpush3.bf16.msra.mxu1 %v6136_v45 }
 0x4d3   :  { %v1712_v48 = vmul.f32 0.9, %v3865_v42  ;;  %v1807_v16 = vadd.f32 %v1711_v30, %v5035_v38  ;;  %v6138_v30 = vpack.c.bf16 %v5153_v26, %v5150_v23 }
 0x4d5   :  { %v1808_v33 = vadd.f32 %v1712_v48, %v5038_v58  ;;  %v3866_v7 = vpop.f32.mrb[84].mxu0 }
 0x4d6   :  { %v3867_v32 = vpop.f32.mrb[85].mxu0 }
 0x4d7   :  { %v3868_v11 = vadd.f32 %v3867_v32, %v3866_v7  ;;  %v3869_v49 = vpop.f32.mrb[86].mxu0  ;;  %v1891_v47 = vpack.c.bf16 %v1808_v33, %v1807_v16 }
 0x4d8   :  { %v3870_v36 = vpop.f32.mrb[87].mxu0 }
 0x4d9   :  { %v1713_v27 = vmul.f32 0.9, %v3868_v11  ;;  %v3871_v25 = vadd.f32 %v3870_v36, %v3869_v49  ;;  %3892 = vmatprep.subr.bf16.mxu1 %v1891_v47  ;;  %v6139_v47 = vpack.c.bf16 %v5161_v20, %v5158_v8  ;;  %v5219_v8 = vld [vmem:[#allocation5 + $0x10] ss:$8 sps:$4 sm:$0xff]   ;;  %v5221_v20 = vld [vmem:[#allocation5 + $0x24] ss:$8 sps:$4 sm:$0xff]  }
 0x4da   :  { %3893 = vmatpush3.bf16.msra.mxu1 %v6137_v56  ;;  %v6140_v56 = vpack.c.bf16 %v5169_v43, %v5166_v10  ;;  %v5231_v10 = vld [vmem:[#allocation5 + $0x30] ss:$8 sps:$4 sm:$0xff]   ;;  %v5233_v43 = vld [vmem:[#allocation5 + $0x44] ss:$8 sps:$4 sm:$0xff]  }
 0x4db   :  { %v1714_v46 = vmul.f32 0.9, %v3871_v25  ;;  %v1809_v61 = vadd.f32 %v1713_v27, %v5046_v55  ;;  %v5210_v25 = vld [vmem:[#allocation5] ss:$8 sps:$4 sm:$0xff]  }
 0x4dd   :  { %v1810_v44 = vadd.f32 %v1714_v46, %v5049_v53  ;;  %v3872_v13 = vpop.f32.mrb[88].mxu0  ;;  %v5215_v46 = vld [vmem:[#allocation5 + $0x14] ss:$8 sps:$4 sm:$0xff]  }
 0x4de   :  { %v3873_v14 = vpop.f32.mrb[89].mxu0 }
 0x4df   :  { %v3874_v39 = vadd.f32 %v3873_v14, %v3872_v13  ;;  %v3875_v52 = vpop.f32.mrb[90].mxu0  ;;  %v1892_v19 = vpack.c.bf16 %v1810_v44, %v1809_v61  ;;  %v5225_v61 = vld [vmem:[#allocation5 + $0x20] ss:$8 sps:$4 sm:$0xff]   ;;  %v5227_v44 = vld [vmem:[#allocation5 + $0x34] ss:$8 sps:$4 sm:$0xff]  }
 0x4e0   :  { %v3876_v29 = vpop.f32.mrb[91].mxu0  ;;  %v5237_v13 = vld [vmem:[#allocation5 + $0x40] ss:$8 sps:$4 sm:$0xff]   ;;  %v5239_v14 = vld [vmem:[#allocation5 + $0x54] ss:$8 sps:$4 sm:$0xff]  }
 0x4e1   :  { %v1715_v3 = vmul.f32 0.9, %v3874_v39  ;;  %v3877_v4 = vadd.f32 %v3876_v29, %v3875_v52  ;;  %3894 = vmatprep.subr.bf16.mxu1 %v1892_v19  ;;  %v5243_v39 = vld [vmem:[#allocation5 + $0x50] ss:$8 sps:$4 sm:$0xff]   ;;  %v5245_v52 = vld [vmem:[#allocation5 + $0x64] ss:$8 sps:$4 sm:$0xff]  }
 0x4e2   :  { %3895 = vmatpush3.bf16.msra.mxu1 %v6138_v30  ;;  %v5249_v19 = vld [vmem:[#allocation5 + $0x60] ss:$8 sps:$4 sm:$0xff]   ;;  %v5251_v29 = vld [vmem:[#allocation5 + $0x74] ss:$8 sps:$4 sm:$0xff]  }
 0x4e3   :  { %v1716_v17 = vmul.f32 0.9, %v3877_v4  ;;  %v1811_v59 = vadd.f32 %v1715_v3, %v5057_v60  ;;  %v5255_v3 = vld [vmem:[#allocation5 + $0x70] ss:$8 sps:$4 sm:$0xff]   ;;  %v5257_v4 = vld [vmem:[#allocation5 + $0x84] ss:$8 sps:$4 sm:$0xff]  }
 0x4e4   :  { %6141 = vst [vmem:[#allocation9_spill] sm:$0xff] %v5255_v3  ;;  %6142 = vst [vmem:[#allocation10_spill] sm:$0xff] %v5257_v4  ;;  %v5261_v30 = vld [vmem:[#allocation5 + $0x80] ss:$8 sps:$4 sm:$0xff]  }
 0x4e5   :  { %v1812_v42 = vadd.f32 %v1716_v17, %v5060_v50  ;;  %v3878_v45 = vpop.f32.mrb[92].mxu0  ;;  %6143 = vst [vmem:[#allocation11_spill] sm:$0xff] %v5261_v30  ;;  %v5263_v17 = vld [vmem:[#allocation5 + $0x94] ss:$8 sps:$4 sm:$0xff]  }
 0x4e6   :  { %v3879_v48 = vpop.f32.mrb[93].mxu0  ;;  %6144 = vst [vmem:[#allocation12_spill] sm:$0xff] %v5263_v17 }
 0x4e7   :  { %v3880_v16 = vadd.f32 %v3879_v48, %v3878_v45  ;;  %v3881_v33 = vpop.f32.mrb[94].mxu0  ;;  %v1893_v7 = vpack.c.bf16 %v1812_v42, %v1811_v59  ;;  %v5267_v59 = vld [vmem:[#allocation5 + $0x90] ss:$8 sps:$4 sm:$0xff]   ;;  %v5269_v42 = vld [vmem:[#allocation5 + $0xa4] ss:$8 sps:$4 sm:$0xff]  }
 0x4e8   :  { %v3882_v32 = vpop.f32.mrb[95].mxu0  ;;  %6145 = vst [vmem:[#allocation13_spill] sm:$0xff] %v5267_v59  ;;  %6146 = vst [vmem:[#allocation14_spill] sm:$0xff] %v5269_v42  ;;  %v5273_v45 = vld [vmem:[#allocation5 + $0xa0] ss:$8 sps:$4 sm:$0xff]  }
 0x4e9   :  { %v1717_v11 = vmul.f32 0.9, %v3880_v16  ;;  %v3883_v49 = vadd.f32 %v3882_v32, %v3881_v33  ;;  %3896 = vmatprep.subr.bf16.mxu1 %v1893_v7  ;;  %6147 = vst [vmem:[#allocation15_spill] sm:$0xff] %v5273_v45  ;;  %v5275_v48 = vld [vmem:[#allocation5 + $0xb4] ss:$8 sps:$4 sm:$0xff]  }
 0x4ea   :  { %3897 = vmatpush3.bf16.msra.mxu1 %v6139_v47  ;;  %6148 = vst [vmem:[#allocation16_spill] sm:$0xff] %v5275_v48  ;;  %v5279_v16 = vld [vmem:[#allocation5 + $0xb0] ss:$8 sps:$4 sm:$0xff]   ;;  %v5281_v33 = vld [vmem:[#allocation5 + $0xc4] ss:$8 sps:$4 sm:$0xff]  }
 0x4eb   :  { %v1718_v23 = vmul.f32 0.9, %v3883_v49  ;;  %v1813_v26 = vadd.f32 %v1717_v11, %v5068_v6  ;;  %6149 = vst [vmem:[#allocation17_spill] sm:$0xff] %v5279_v16  ;;  %6150 = vst [vmem:[#allocation18_spill] sm:$0xff] %v5281_v33  ;;  %v5285_v7 = vld [vmem:[#allocation5 + $0xc0] ss:$8 sps:$4 sm:$0xff]  }
 0x4ec   :  { %6151 = vst [vmem:[#allocation19_spill] sm:$0xff] %v5285_v7  ;;  %v5287_v32 = vld [vmem:[#allocation5 + $0xd4] ss:$8 sps:$4 sm:$0xff]   ;;  %v5291_v11 = vld [vmem:[#allocation5 + $0xd0] ss:$8 sps:$4 sm:$0xff]  }
 0x4ed   :  { %v1814_v36 = vadd.f32 %v1718_v23, %v5071_v0  ;;  %6152 = vst [vmem:[#allocation20_spill] sm:$0xff] %v5287_v32  ;;  %6153 = vst [vmem:[#allocation21_spill] sm:$0xff] %v5291_v11  ;;  %v5293_v49 = vld [vmem:[#allocation5 + $0xe4] ss:$8 sps:$4 sm:$0xff]   ;;  %v5297_v47 = vld [vmem:[#allocation5 + $0xe0] ss:$8 sps:$4 sm:$0xff]  }
 0x4ee   :  { %6154 = vst [vmem:[#allocation22_spill] sm:$0xff] %v5293_v49  ;;  %6155 = vst [vmem:[#allocation23_spill] sm:$0xff] %v5297_v47  ;;  %v4321_v23 = vld [vmem:[#allocation5 + $0xf4] ss:$8 sps:$4 sm:$0xff]  }
 0x4ef   :  { %v1894_v27 = vpack.c.bf16 %v1814_v36, %v1813_v26  ;;  %v5300_v26 = vld [vmem:[#allocation5 + $0xf0] ss:$8 sps:$4 sm:$0xff]  }
 0x4f1   :  { %3898 = vmatprep.subr.bf16.mxu1 %v1894_v27 }
 0x4f2   :  { %3899 = vmatpush3.bf16.msra.mxu1 %v6140_v56 }
 0x4f5   :  { %2120 = vmatmul.mubr.bf16.vlgmr.msra.gmra.mrb[96].mxu1 %v5210_v25 }
 0x4f6   :  { %2127 = vmatprep.mubr.bf16.mxu1 %v5215_v46 }
 0x4fd   :  { %2128 = vmatmul.mubr.bf16.gmra.mrb[100].mxu1 %v5219_v8 }
 0x4fe   :  { %2135 = vmatprep.mubr.bf16.mxu1 %v5221_v20 }
 0x505   :  { %2136 = vmatmul.mubr.bf16.gmra.mrb[104].mxu1 %v5225_v61 }
 0x506   :  { %2143 = vmatprep.mubr.bf16.mxu1 %v5227_v44 }
 0x50d   :  { %2144 = vmatmul.mubr.bf16.gmra.mrb[108].mxu1 %v5231_v10 }
 0x50e   :  { %2151 = vmatprep.mubr.bf16.mxu1 %v5233_v43 }
 0x515   :  { %2152 = vmatmul.mubr.bf16.gmra.mrb[112].mxu1 %v5237_v13 }
 0x516   :  { %2159 = vmatprep.mubr.bf16.mxu1 %v5239_v14 }
 0x51d   :  { %2160 = vmatmul.mubr.bf16.gmra.mrb[116].mxu1 %v5243_v39 }
 0x51e   :  { %2167 = vmatprep.mubr.bf16.mxu1 %v5245_v52 }
 0x525   :  { %2168 = vmatmul.mubr.bf16.gmra.mrb[120].mxu1 %v5249_v19 }
 0x526   :  { %2175 = vmatprep.mubr.bf16.mxu1 %v5251_v29 }
 0x52d   :  { %2176 = vmatmul.mubr.bf16.gmra.mrb[124].mxu1 %v5255_v3 }
 0x52e   :  { %2183 = vmatprep.mubr.bf16.mxu1 %v5257_v4 }
 0x535   :  { %2184 = vmatmul.mubr.bf16.gmra.mrb[128].mxu1 %v5261_v30 }
 0x536   :  { %2191 = vmatprep.mubr.bf16.mxu1 %v5263_v17 }
 0x53d   :  { %2192 = vmatmul.mubr.bf16.gmra.mrb[132].mxu1 %v5267_v59 }
 0x53e   :  { %2199 = vmatprep.mubr.bf16.mxu1 %v5269_v42 }
 0x545   :  { %2200 = vmatmul.mubr.bf16.gmra.mrb[136].mxu1 %v5273_v45 }
 0x546   :  { %2207 = vmatprep.mubr.bf16.mxu1 %v5275_v48 }
 0x54d   :  { %2208 = vmatmul.mubr.bf16.gmra.mrb[140].mxu1 %v5279_v16 }
 0x54e   :  { %2215 = vmatprep.mubr.bf16.mxu1 %v5281_v33 }
 0x555   :  { %2216 = vmatmul.mubr.bf16.gmra.mrb[144].mxu1 %v5285_v7 }
 0x556   :  { %2223 = vmatprep.mubr.bf16.mxu1 %v5287_v32 }
 0x55d   :  { %2224 = vmatmul.mubr.bf16.gmra.mrb[148].mxu1 %v5291_v11 }
 0x55e   :  { %2231 = vmatprep.mubr.bf16.mxu1 %v5293_v49 }
 0x565   :  { %2232 = vmatmul.mubr.bf16.gmra.mrb[152].mxu1 %v5297_v47 }
 0x566   :  { %2239 = vmatprep.mubr.bf16.mxu1 %v4321_v23 }
 0x56d   :  { %2240 = vmatmul.mubr.bf16.gmra.mrb[156].mxu1 %v5300_v26 }
 0x56e   :  { %2800 = vmatprep.mubr.bf16.mxu1 %v4321_v23 }
 0x5c8   :  { %v3900_v36 = vpop.f32.mrb[96].mxu1 }
 0x5c9   :  { %v3901_v27 = vpop.f32.mrb[97].mxu1 }
 0x5ca   :  { %v3902_v56 = vadd.f32 %v3901_v27, %v3900_v36  ;;  %v3903_v32 = vpop.f32.mrb[98].mxu1 }
 0x5cb   :  { %v3904_v7 = vpop.f32.mrb[99].mxu1 }
 0x5cc   :  { %v2248_v33 = vmul.f32 0.9, %v3902_v56  ;;  %v3905_v11 = vadd.f32 %v3904_v7, %v3903_v32 }
 0x5ce   :  { %v2249_v16 = vmul.f32 0.9, %v3905_v11  ;;  %v2344_v49 = vadd.f32 %v2248_v33, %v6117_v5 }
 0x5d0   :  { %v2345_v48 = vadd.f32 %v2249_v16, %v6118_v9  ;;  %v3906_v45 = vpop.f32.mrb[100].mxu1 }
 0x5d1   :  { %v3907_v47 = vpop.f32.mrb[101].mxu1 }
 0x5d2   :  { %v3908_v42 = vadd.f32 %v3907_v47, %v3906_v45  ;;  %v3909_v59 = vpop.f32.mrb[102].mxu1  ;;  %v5305_v17 = vpack.c.bf16 %v2345_v48, %v2344_v49 }
 0x5d3   :  { %v3910_v30 = vpop.f32.mrb[103].mxu1 }
 0x5d4   :  { %v2250_v23 = vmul.f32 0.9, %v3908_v42  ;;  %v3911_v4 = vadd.f32 %v3910_v30, %v3909_v59 }
 0x5d6   :  { %v2251_v3 = vmul.f32 0.9, %v3911_v4  ;;  %v2346_v36 = vadd.f32 %v2250_v23, %v6119_v51 }
 0x5d8   :  { %v2347_v27 = vadd.f32 %v2251_v3, %v6120_v40  ;;  %v3912_v7 = vpop.f32.mrb[104].mxu1 }
 0x5d9   :  { %v3913_v32 = vpop.f32.mrb[105].mxu1 }
 0x5da   :  { %v3914_v11 = vadd.f32 %v3913_v32, %v3912_v7  ;;  %v3915_v33 = vpop.f32.mrb[106].mxu1  ;;  %v5309_v56 = vpack.c.bf16 %v2347_v27, %v2346_v36 }
 0x5db   :  { %v3916_v16 = vpop.f32.mrb[107].mxu1 }
 0x5dc   :  { %v2252_v9 = vmul.f32 0.9, %v3914_v11  ;;  %v3917_v45 = vadd.f32 %v3916_v16, %v3915_v33 }
 0x5de   :  { %v2253_v47 = vmul.f32 0.9, %v3917_v45  ;;  %v2348_v48 = vadd.f32 %v2252_v9, %v6121_v15 }
 0x5e0   :  { %v2349_v42 = vadd.f32 %v2253_v47, %v6122_v12  ;;  %v3918_v30 = vpop.f32.mrb[108].mxu1 }
 0x5e1   :  { %v3919_v4 = vpop.f32.mrb[109].mxu1 }
 0x5e2   :  { %v3920_v59 = vadd.f32 %v3919_v4, %v3918_v30  ;;  %v3921_v49 = vpop.f32.mrb[110].mxu1  ;;  %v5313_v23 = vpack.c.bf16 %v2349_v42, %v2348_v48 }
 0x5e3   :  { %v3922_v3 = vpop.f32.mrb[111].mxu1 }
 0x5e4   :  { %v2254_v40 = vmul.f32 0.9, %v3920_v59  ;;  %v3923_v7 = vadd.f32 %v3922_v3, %v3921_v49 }
 0x5e6   :  { %v2255_v32 = vmul.f32 0.9, %v3923_v7  ;;  %v2350_v36 = vadd.f32 %v2254_v40, %v6123_v34 }
 0x5e8   :  { %v2351_v27 = vadd.f32 %v2255_v32, %v6124_v57  ;;  %v3924_v11 = vpop.f32.mrb[112].mxu1 }
 0x5e9   :  { %v3925_v33 = vpop.f32.mrb[113].mxu1 }
 0x5ea   :  { %v3926_v16 = vadd.f32 %v3925_v33, %v3924_v11  ;;  %v3927_v9 = vpop.f32.mrb[114].mxu1  ;;  %v5317_v45 = vpack.c.bf16 %v2351_v27, %v2350_v36 }
 0x5eb   :  { %v3928_v47 = vpop.f32.mrb[115].mxu1 }
 0x5ec   :  { %v2256_v12 = vmul.f32 0.9, %v3926_v16  ;;  %v3929_v30 = vadd.f32 %v3928_v47, %v3927_v9 }
 0x5ee   :  { %v2257_v4 = vmul.f32 0.9, %v3929_v30  ;;  %v2352_v48 = vadd.f32 %v2256_v12, %v6125_v1 }
 0x5f0   :  { %v2353_v42 = vadd.f32 %v2257_v4, %v6126_v21  ;;  %v3930_v59 = vpop.f32.mrb[116].mxu1 }
 0x5f1   :  { %v3931_v49 = vpop.f32.mrb[117].mxu1 }
 0x5f2   :  { %v3932_v3 = vadd.f32 %v3931_v49, %v3930_v59  ;;  %v3933_v40 = vpop.f32.mrb[118].mxu1  ;;  %v5321_v7 = vpack.c.bf16 %v2353_v42, %v2352_v48 }
 0x5f3   :  { %v3934_v32 = vpop.f32.mrb[119].mxu1 }
 0x5f4   :  { %v2258_v57 = vmul.f32 0.9, %v3932_v3  ;;  %v3935_v11 = vadd.f32 %v3934_v32, %v3933_v40 }
 0x5f6   :  { %v2259_v33 = vmul.f32 0.9, %v3935_v11  ;;  %v2354_v36 = vadd.f32 %v2258_v57, %v6127_v22  ;;  %v6157_v22 = vld [vmem:[#allocation40_spill] sm:$0xff] }
 0x5f8   :  { %v2355_v27 = vadd.f32 %v2259_v33, %v6128_v24  ;;  %v3936_v16 = vpop.f32.mrb[120].mxu1 }
 0x5f9   :  { %v3937_v9 = vpop.f32.mrb[121].mxu1 }
 0x5fa   :  { %v3938_v47 = vadd.f32 %v3937_v9, %v3936_v16  ;;  %v3939_v12 = vpop.f32.mrb[122].mxu1  ;;  %v5325_v30 = vpack.c.bf16 %v2355_v27, %v2354_v36  ;;  %v6156_v36 = vld [vmem:[#allocation39_spill] sm:$0xff] }
 0x5fb   :  { %v3940_v4 = vpop.f32.mrb[123].mxu1 }
 0x5fc   :  { %v2260_v21 = vmul.f32 0.9, %v3938_v47  ;;  %v3941_v59 = vadd.f32 %v3940_v4, %v3939_v12 }
 0x5fe   :  { %v2261_v49 = vmul.f32 0.9, %v3941_v59  ;;  %v2356_v48 = vadd.f32 %v2260_v21, %v6129_v37 }
 0x600   :  { %v2357_v42 = vadd.f32 %v2261_v49, %v6130_v2  ;;  %v3942_v3 = vpop.f32.mrb[124].mxu1 }
 0x601   :  { %v3943_v40 = vpop.f32.mrb[125].mxu1 }
 0x602   :  { %v3944_v32 = vadd.f32 %v3943_v40, %v3942_v3  ;;  %v3945_v57 = vpop.f32.mrb[126].mxu1  ;;  %v5329_v11 = vpack.c.bf16 %v2357_v42, %v2356_v48 }
 0x603   :  { %v3946_v33 = vpop.f32.mrb[127].mxu1 }
 0x604   :  { %v2262_v24 = vmul.f32 0.9, %v3944_v32  ;;  %v3947_v16 = vadd.f32 %v3946_v33, %v3945_v57 }
 0x606   :  { %v2263_v9 = vmul.f32 0.9, %v3947_v16  ;;  %v2358_v27 = vadd.f32 %v2262_v24, %v6156_v36 }
 0x608   :  { %v2359_v47 = vadd.f32 %v2263_v9, %v6157_v22  ;;  %v3948_v12 = vpop.f32.mrb[128].mxu1 }
 0x609   :  { %v3949_v4 = vpop.f32.mrb[129].mxu1 }
 0x60a   :  { %v3950_v59 = vadd.f32 %v3949_v4, %v3948_v12  ;;  %v3951_v21 = vpop.f32.mrb[130].mxu1  ;;  %v5333_v37 = vpack.c.bf16 %v2359_v47, %v2358_v27 }
 0x60b   :  { %v3952_v49 = vpop.f32.mrb[131].mxu1 }
 0x60c   :  { %v2264_v2 = vmul.f32 0.9, %v3950_v59  ;;  %v3953_v3 = vadd.f32 %v3952_v49, %v3951_v21 }
 0x60e   :  { %v2265_v40 = vmul.f32 0.9, %v3953_v3  ;;  %v2360_v48 = vadd.f32 %v2264_v2, %v4991_v18 }
 0x610   :  { %v2361_v42 = vadd.f32 %v2265_v40, %v4994_v54  ;;  %v3954_v32 = vpop.f32.mrb[132].mxu1 }
 0x611   :  { %v3955_v57 = vpop.f32.mrb[133].mxu1 }
 0x612   :  { %v3956_v33 = vadd.f32 %v3955_v57, %v3954_v32  ;;  %v3957_v24 = vpop.f32.mrb[134].mxu1  ;;  %v2448_v16 = vpack.c.bf16 %v2361_v42, %v2360_v48 }
 0x613   :  { %v3958_v9 = vpop.f32.mrb[135].mxu1 }
 0x614   :  { %v2266_v22 = vmul.f32 0.9, %v3956_v33  ;;  %v3959_v36 = vadd.f32 %v3958_v9, %v3957_v24  ;;  %3996 = vmatprep.subr.bf16.mxu0 %v2448_v16  ;;  %4196 = vmatprep.subr.bf16.mxu1 %v2448_v16 }
 0x615   :  { %3997 = vmatpush3.bf16.msra.mxu0 %v5305_v17  ;;  %4204 = vmatpush3.bf16.msra.mxu1 %v5305_v17 }
 0x616   :  { %v2267_v27 = vmul.f32 0.9, %v3959_v36  ;;  %v2362_v47 = vadd.f32 %v2266_v22, %v5002_v31 }
 0x618   :  { %v2363_v2 = vadd.f32 %v2267_v27, %v5005_v62  ;;  %v3960_v12 = vpop.f32.mrb[136].mxu1 }
 0x619   :  { %v3961_v4 = vpop.f32.mrb[137].mxu1 }
 0x61a   :  { %v3962_v59 = vadd.f32 %v3961_v4, %v3960_v12  ;;  %v3963_v21 = vpop.f32.mrb[138].mxu1  ;;  %v2449_v49 = vpack.c.bf16 %v2363_v2, %v2362_v47 }
 0x61b   :  { %v3964_v3 = vpop.f32.mrb[139].mxu1 }
 0x61c   :  { %v2268_v40 = vmul.f32 0.9, %v3962_v59  ;;  %v3965_v48 = vadd.f32 %v3964_v3, %v3963_v21  ;;  %3998 = vmatprep.subr.bf16.mxu0 %v2449_v49  ;;  %4197 = vmatprep.subr.bf16.mxu1 %v2449_v49 }
 0x61d   :  { %3999 = vmatpush3.bf16.msra.mxu0 %v5309_v56  ;;  %4205 = vmatpush3.bf16.msra.mxu1 %v5309_v56 }
 0x61e   :  { %v2269_v17 = vmul.f32 0.9, %v3965_v48  ;;  %v2364_v36 = vadd.f32 %v2268_v40, %v5013_v28 }
 0x620   :  { %v2365_v22 = vadd.f32 %v2269_v17, %v5016_v35  ;;  %v3966_v42 = vpop.f32.mrb[140].mxu1 }
 0x621   :  { %v3967_v32 = vpop.f32.mrb[141].mxu1 }
 0x622   :  { %v3968_v57 = vadd.f32 %v3967_v32, %v3966_v42  ;;  %v3969_v33 = vpop.f32.mrb[142].mxu1  ;;  %v2450_v24 = vpack.c.bf16 %v2365_v22, %v2364_v36 }
 0x623   :  { %v3970_v16 = vpop.f32.mrb[143].mxu1 }
 0x624   :  { %v2270_v9 = vmul.f32 0.9, %v3968_v57  ;;  %v3971_v27 = vadd.f32 %v3970_v16, %v3969_v33  ;;  %4000 = vmatprep.subr.bf16.mxu0 %v2450_v24  ;;  %4198 = vmatprep.subr.bf16.mxu1 %v2450_v24 }
 0x625   :  { %4001 = vmatpush3.bf16.msra.mxu0 %v5313_v23  ;;  %4206 = vmatpush3.bf16.msra.mxu1 %v5313_v23 }
 0x626   :  { %v2271_v56 = vmul.f32 0.9, %v3971_v27  ;;  %v2366_v47 = vadd.f32 %v2270_v9, %v5024_v41 }
 0x628   :  { %v2367_v2 = vadd.f32 %v2271_v56, %v5027_v63  ;;  %v3972_v12 = vpop.f32.mrb[144].mxu1 }
 0x629   :  { %v3973_v4 = vpop.f32.mrb[145].mxu1 }
 0x62a   :  { %v3974_v59 = vadd.f32 %v3973_v4, %v3972_v12  ;;  %v3975_v21 = vpop.f32.mrb[146].mxu1  ;;  %v2451_v49 = vpack.c.bf16 %v2367_v2, %v2366_v47 }
 0x62b   :  { %v3976_v3 = vpop.f32.mrb[147].mxu1 }
 0x62c   :  { %v2272_v40 = vmul.f32 0.9, %v3974_v59  ;;  %v3977_v48 = vadd.f32 %v3976_v3, %v3975_v21  ;;  %4002 = vmatprep.subr.bf16.mxu0 %v2451_v49  ;;  %4199 = vmatprep.subr.bf16.mxu1 %v2451_v49 }
 0x62d   :  { %4003 = vmatpush3.bf16.msra.mxu0 %v5317_v45  ;;  %4207 = vmatpush3.bf16.msra.mxu1 %v5317_v45 }
 0x62e   :  { %v2273_v23 = vmul.f32 0.9, %v3977_v48  ;;  %v2368_v17 = vadd.f32 %v2272_v40, %v5035_v38 }
 0x630   :  { %v2369_v36 = vadd.f32 %v2273_v23, %v5038_v58  ;;  %v3978_v22 = vpop.f32.mrb[148].mxu1 }
 0x631   :  { %v3979_v42 = vpop.f32.mrb[149].mxu1 }
 0x632   :  { %v3980_v32 = vadd.f32 %v3979_v42, %v3978_v22  ;;  %v3981_v57 = vpop.f32.mrb[150].mxu1  ;;  %v2452_v33 = vpack.c.bf16 %v2369_v36, %v2368_v17 }
 0x633   :  { %v3982_v24 = vpop.f32.mrb[151].mxu1 }
 0x634   :  { %v2274_v16 = vmul.f32 0.9, %v3980_v32  ;;  %v3983_v9 = vadd.f32 %v3982_v24, %v3981_v57  ;;  %4004 = vmatprep.subr.bf16.mxu0 %v2452_v33  ;;  %4200 = vmatprep.subr.bf16.mxu1 %v2452_v33 }
 0x635   :  { %4005 = vmatpush3.bf16.msra.mxu0 %v5321_v7  ;;  %4208 = vmatpush3.bf16.msra.mxu1 %v5321_v7 }
 0x636   :  { %v2275_v45 = vmul.f32 0.9, %v3983_v9  ;;  %v2370_v27 = vadd.f32 %v2274_v16, %v5046_v55 }
 0x638   :  { %v2371_v56 = vadd.f32 %v2275_v45, %v5049_v53  ;;  %v3984_v47 = vpop.f32.mrb[152].mxu1 }
 0x639   :  { %v3985_v2 = vpop.f32.mrb[153].mxu1 }
 0x63a   :  { %v3986_v12 = vadd.f32 %v3985_v2, %v3984_v47  ;;  %v3987_v4 = vpop.f32.mrb[154].mxu1  ;;  %v2453_v59 = vpack.c.bf16 %v2371_v56, %v2370_v27 }
 0x63b   :  { %v3988_v21 = vpop.f32.mrb[155].mxu1 }
 0x63c   :  { %v2276_v49 = vmul.f32 0.9, %v3986_v12  ;;  %v3989_v3 = vadd.f32 %v3988_v21, %v3987_v4  ;;  %4006 = vmatprep.subr.bf16.mxu0 %v2453_v59  ;;  %4201 = vmatprep.subr.bf16.mxu1 %v2453_v59 }
 0x63d   :  { %4007 = vmatpush3.bf16.msra.mxu0 %v5325_v30  ;;  %4209 = vmatpush3.bf16.msra.mxu1 %v5325_v30 }
 0x63e   :  { %v2277_v7 = vmul.f32 0.9, %v3989_v3  ;;  %v2372_v40 = vadd.f32 %v2276_v49, %v5057_v60 }
 0x640   :  { %v2373_v48 = vadd.f32 %v2277_v7, %v5060_v50  ;;  %v3990_v23 = vpop.f32.mrb[156].mxu1 }
 0x641   :  { %v3991_v17 = vpop.f32.mrb[157].mxu1 }
 0x642   :  { %v3992_v36 = vadd.f32 %v3991_v17, %v3990_v23  ;;  %v3993_v22 = vpop.f32.mrb[158].mxu1  ;;  %v2454_v42 = vpack.c.bf16 %v2373_v48, %v2372_v40  ;;  %v6173_v17 = vld [vmem:[#allocation26_spill] sm:$0xff] }
 0x643   :  { %v3994_v32 = vpop.f32.mrb[159].mxu1 }
 0x644   :  { %v2278_v57 = vmul.f32 0.9, %v3992_v36  ;;  %v3995_v33 = vadd.f32 %v3994_v32, %v3993_v22  ;;  %4008 = vmatprep.subr.bf16.mxu0 %v2454_v42  ;;  %4202 = vmatprep.subr.bf16.mxu1 %v2454_v42 }
 0x645   :  { %4009 = vmatpush3.bf16.msra.mxu0 %v5329_v11  ;;  %4210 = vmatpush3.bf16.msra.mxu1 %v5329_v11 }
 0x646   :  { %v2279_v30 = vmul.f32 0.9, %v3995_v33  ;;  %v2374_v24 = vadd.f32 %v2278_v57, %v5068_v6 }
 0x648   :  { %v2375_v16 = vadd.f32 %v2279_v30, %v5071_v0 }
 0x64a   :  { %v2455_v9 = vpack.c.bf16 %v2375_v16, %v2374_v24 }
 0x64c   :  { %4010 = vmatprep.subr.bf16.mxu0 %v2455_v9  ;;  %4203 = vmatprep.subr.bf16.mxu1 %v2455_v9 }
 0x64d   :  { %4011 = vmatpush3.bf16.msra.mxu0 %v5333_v37  ;;  %4211 = vmatpush3.bf16.msra.mxu1 %v5333_v37  ;;  %v6158_v37 = vld [vmem:[#allocation9_spill] sm:$0xff] }
 0x650   :  { %2681 = vmatmul.mubr.bf16.vlgmr.msra.gmra.mrb[96].mxu0 %v5210_v25  ;;  %2801 = vmatmul.mubr.bf16.vlgmr.msra.gmra.mrb[160].mxu1 %v5300_v26  ;;  %v6159_v25 = vld [vmem:[#allocation10_spill] sm:$0xff]  ;;  %v3001_v26 = vlaneseq }
 0x651   :  { %2688 = vmatprep.mubr.bf16.mxu0 %v5215_v46  ;;  %v6160_v46 = vld [vmem:[#allocation11_spill] sm:$0xff] }
 0x652   :  { %v5397_v47 = vand.u32 127, %v3001_v26 }
 0x654   :  { %vm3003_vm1 = vcmp.lt.s32.totalorder %v5397_v47, 7 }
 0x658   :  { %2689 = vmatmul.mubr.bf16.gmra.mrb[100].mxu0 %v5219_v8  ;;  %v6161_v8 = vld [vmem:[#allocation12_spill] sm:$0xff] }
 0x659   :  { %2696 = vmatprep.mubr.bf16.mxu0 %v5221_v20  ;;  %v6162_v20 = vld [vmem:[#allocation13_spill] sm:$0xff] }
 0x660   :  { %2697 = vmatmul.mubr.bf16.gmra.mrb[104].mxu0 %v5225_v61  ;;  %v6163_v61 = vld [vmem:[#allocation14_spill] sm:$0xff] }
 0x661   :  { %2704 = vmatprep.mubr.bf16.mxu0 %v5227_v44  ;;  %v6164_v44 = vld [vmem:[#allocation15_spill] sm:$0xff] }
 0x668   :  { %2705 = vmatmul.mubr.bf16.gmra.mrb[108].mxu0 %v5231_v10  ;;  %v6165_v10 = vld [vmem:[#allocation16_spill] sm:$0xff] }
 0x669   :  { %2712 = vmatprep.mubr.bf16.mxu0 %v5233_v43  ;;  %v6166_v43 = vld [vmem:[#allocation17_spill] sm:$0xff] }
 0x670   :  { %2713 = vmatmul.mubr.bf16.gmra.mrb[112].mxu0 %v5237_v13  ;;  %v6167_v13 = vld [vmem:[#allocation18_spill] sm:$0xff] }
 0x671   :  { %2720 = vmatprep.mubr.bf16.mxu0 %v5239_v14  ;;  %v6168_v14 = vld [vmem:[#allocation19_spill] sm:$0xff] }
 0x678   :  { %2721 = vmatmul.mubr.bf16.gmra.mrb[116].mxu0 %v5243_v39  ;;  %v6169_v39 = vld [vmem:[#allocation20_spill] sm:$0xff] }
 0x679   :  { %2728 = vmatprep.mubr.bf16.mxu0 %v5245_v52  ;;  %v6170_v52 = vld [vmem:[#allocation21_spill] sm:$0xff] }
 0x680   :  { %2729 = vmatmul.mubr.bf16.gmra.mrb[120].mxu0 %v5249_v19  ;;  %v6171_v19 = vld [vmem:[#allocation22_spill] sm:$0xff] }
 0x681   :  { %2736 = vmatprep.mubr.bf16.mxu0 %v5251_v29  ;;  %v6172_v29 = vld [vmem:[#allocation23_spill] sm:$0xff] }
 0x688   :  { %2737 = vmatmul.mubr.bf16.gmra.mrb[124].mxu0 %v6158_v37 }
 0x689   :  { %2744 = vmatprep.mubr.bf16.mxu0 %v6159_v25  ;;  %v6174_v25 = vld [vmem:[#allocation28_spill] sm:$0xff] }
 0x690   :  { %2745 = vmatmul.mubr.bf16.gmra.mrb[128].mxu0 %v6160_v46 }
 0x691   :  { %2752 = vmatprep.mubr.bf16.mxu0 %v6161_v8 }
 0x698   :  { %2753 = vmatmul.mubr.bf16.gmra.mrb[132].mxu0 %v6162_v20 }
 0x699   :  { %2760 = vmatprep.mubr.bf16.mxu0 %v6163_v61 }
 0x6a0   :  { %2761 = vmatmul.mubr.bf16.gmra.mrb[136].mxu0 %v6164_v44 }
 0x6a1   :  { %2768 = vmatprep.mubr.bf16.mxu0 %v6165_v10 }
 0x6a8   :  { %2769 = vmatmul.mubr.bf16.gmra.mrb[140].mxu0 %v6166_v43 }
 0x6a9   :  { %2776 = vmatprep.mubr.bf16.mxu0 %v6167_v13 }
 0x6b0   :  { %2777 = vmatmul.mubr.bf16.gmra.mrb[144].mxu0 %v6168_v14 }
 0x6b1   :  { %2784 = vmatprep.mubr.bf16.mxu0 %v6169_v39 }
 0x6b8   :  { %2785 = vmatmul.mubr.bf16.gmra.mrb[148].mxu0 %v6170_v52 }
 0x6b9   :  { %2792 = vmatprep.mubr.bf16.mxu0 %v6171_v19  ;;  %v6175_v19 = vld [vmem:[#allocation30_spill] sm:$0xff] }
 0x6c0   :  { %2793 = vmatmul.mubr.bf16.gmra.mrb[152].mxu0 %v6172_v29 }
 0x723   :  { %v4012_v11 = vpop.f32.mrb[96].mxu0  ;;  %v4102_v45 = vpop.f32.mrb[160].mxu1 }
 0x724   :  { %v4013_v27 = vpop.f32.mrb[97].mxu0  ;;  %v4103_v56 = vpop.f32.mrb[161].mxu1 }
 0x725   :  { %v4014_v2 = vadd.f32 %v4013_v27, %v4012_v11  ;;  %v5399_v12 = vadd.f32 %v4103_v56, %v4102_v45  ;;  %v4015_v4 = vpop.f32.mrb[98].mxu0  ;;  %v4105_v59 = vpop.f32.mrb[162].mxu1 }
 0x726   :  { %v4016_v21 = vpop.f32.mrb[99].mxu0  ;;  %v4106_v49 = vpop.f32.mrb[163].mxu1 }
 0x727   :  { %v2809_v3 = vmul.f32 0.9, %v4014_v2  ;;  %v4017_v7 = vadd.f32 %v4016_v21, %v4015_v4  ;;  %v5401_v40 = vadd.f32 %v4106_v49, %v4105_v59 }
 0x729   :  { %v2905_v48 = vadd.f32 %v2809_v3, %v6117_v5  ;;  %v2810_v23 = vmul.f32 0.9, %v4017_v7  ;;  %v6176_v3 = vld [vmem:[#allocation32_spill] sm:$0xff] }
 0x72b   :  { %v2906_v36 = vadd.f32 %v2810_v23, %v6173_v17  ;;  %v4018_v22 = vpop.f32.mrb[100].mxu0  ;;  %v5408_v42 = vsel %vm3003_vm1, %v2905_v48, -1e+30 }
 0x72c   :  { %v4019_v32 = vpop.f32.mrb[101].mxu0  ;;  %3036 = vmax.xlane.f32.xlu0 %v5408_v42 }
 0x72d   :  { %v4020_v57 = vadd.f32 %v4019_v32, %v4018_v22  ;;  %v4021_v33 = vpop.f32.mrb[102].mxu0  ;;  %v5413_v9 = vsel %vm3003_vm1, %v2906_v36, -1e+30 }
 0x72e   :  { %v4022_v30 = vpop.f32.mrb[103].mxu0 }
 0x72f   :  { %v2811_v24 = vmul.f32 0.9, %v4020_v57  ;;  %v4023_v16 = vadd.f32 %v4022_v30, %v4021_v33 }
 0x730   :  { %3038 = vmax.xlane.f32.xlu0 %v5413_v9 }
 0x731   :  { %v2907_v5 = vadd.f32 %v2811_v24, %v6119_v51  ;;  %v2812_v37 = vmul.f32 0.9, %v4023_v16  ;;  %v6177_v16 = vld [vmem:[#allocation34_spill] sm:$0xff] }
 0x733   :  { %v2908_v46 = vadd.f32 %v2812_v37, %v6174_v25  ;;  %v4024_v8 = vpop.f32.mrb[104].mxu0  ;;  %v5420_v20 = vsel %vm3003_vm1, %v2907_v5, -1e+30 }
 0x734   :  { %v4025_v61 = vpop.f32.mrb[105].mxu0  ;;  %3040 = vmax.xlane.f32.xlu1 %v5420_v20 }
 0x735   :  { %v4026_v44 = vadd.f32 %v4025_v61, %v4024_v8  ;;  %v4027_v10 = vpop.f32.mrb[106].mxu0  ;;  %v5425_v39 = vsel %vm3003_vm1, %v2908_v46, -1e+30 }
 0x736   :  { %v4028_v43 = vpop.f32.mrb[107].mxu0 }
 0x737   :  { %v2813_v13 = vmul.f32 0.9, %v4026_v44  ;;  %v4029_v14 = vadd.f32 %v4028_v43, %v4027_v10 }
 0x738   :  { %3042 = vmax.xlane.f32.xlu1 %v5425_v39 }
 0x739   :  { %v2909_v51 = vadd.f32 %v2813_v13, %v6121_v15  ;;  %v2814_v52 = vmul.f32 0.9, %v4029_v14  ;;  %v6178_v13 = vld [vmem:[#allocation35_spill] sm:$0xff] }
 0x73b   :  { %v2910_v29 = vadd.f32 %v2814_v52, %v6175_v19  ;;  %v4030_v26 = vpop.f32.mrb[108].mxu0  ;;  %v5432_v11 = vsel %vm3003_vm1, %v2909_v51, -1e+30  ;;  %v6179_v52 = vld [vmem:[#allocation36_spill] sm:$0xff] }
 0x73c   :  { %v4031_v45 = vpop.f32.mrb[109].mxu0  ;;  %3044 = vmax.xlane.f32.xlu0 %v5432_v11 }
 0x73d   :  { %v4032_v27 = vadd.f32 %v4031_v45, %v4030_v26  ;;  %v4033_v56 = vpop.f32.mrb[110].mxu0  ;;  %v5437_v2 = vsel %vm3003_vm1, %v2910_v29, -1e+30 }
 0x73e   :  { %v4034_v4 = vpop.f32.mrb[111].mxu0  ;;  %3046 = vmax.xlane.f32.xlu1 %v5437_v2 }
 0x73f   :  { %v2815_v15 = vmul.f32 0.9, %v4032_v27  ;;  %v4035_v59 = vadd.f32 %v4034_v4, %v4033_v56 }
 0x741   :  { %v2911_v21 = vadd.f32 %v2815_v15, %v6123_v34  ;;  %v2816_v49 = vmul.f32 0.9, %v4035_v59 }
 0x743   :  { %v2912_v7 = vadd.f32 %v2816_v49, %v6176_v3  ;;  %v4036_v48 = vpop.f32.mrb[112].mxu0  ;;  %v5444_v23 = vsel %vm3003_vm1, %v2911_v21, -1e+30  ;;  %v6180_v49 = vld [vmem:[#allocation37_spill] sm:$0xff] }
 0x744   :  { %v4037_v17 = vpop.f32.mrb[113].mxu0  ;;  %3048 = vmax.xlane.f32.xlu0 %v5444_v23 }
 0x745   :  { %v4038_v36 = vadd.f32 %v4037_v17, %v4036_v48  ;;  %v4039_v22 = vpop.f32.mrb[114].mxu0  ;;  %v5449_v32 = vsel %vm3003_vm1, %v2912_v7, -1e+30  ;;  %v6181_v48 = vld [vmem:[#allocation38_spill] sm:$0xff] }
 0x746   :  { %v4040_v57 = vpop.f32.mrb[115].mxu0  ;;  %3050 = vmax.xlane.f32.xlu1 %v5449_v32 }
 0x747   :  { %v2817_v34 = vmul.f32 0.9, %v4038_v36  ;;  %v4041_v33 = vadd.f32 %v4040_v57, %v4039_v22 }
 0x749   :  { %v2913_v30 = vadd.f32 %v2817_v34, %v6125_v1  ;;  %v2818_v24 = vmul.f32 0.9, %v4041_v33 }
 0x74b   :  { %v2914_v5 = vadd.f32 %v2818_v24, %v6177_v16  ;;  %v4042_v37 = vpop.f32.mrb[116].mxu0  ;;  %v5456_v25 = vsel %vm3003_vm1, %v2913_v30, -1e+30 }
 0x74c   :  { %v4043_v46 = vpop.f32.mrb[117].mxu0  ;;  %3052 = vmax.xlane.f32.xlu0 %v5456_v25 }
 0x74d   :  { %v4044_v8 = vadd.f32 %v4043_v46, %v4042_v37  ;;  %v4045_v61 = vpop.f32.mrb[118].mxu0  ;;  %v5461_v44 = vsel %vm3003_vm1, %v2914_v5, -1e+30  ;;  %v6182_v37 = vld [vmem:[#allocation39_spill] sm:$0xff] }
 0x74e   :  { %v4046_v10 = vpop.f32.mrb[119].mxu0  ;;  %3054 = vmax.xlane.f32.xlu1 %v5461_v44 }
 0x74f   :  { %v2819_v1 = vmul.f32 0.9, %v4044_v8  ;;  %v4047_v43 = vadd.f32 %v4046_v10, %v4045_v61  ;;  %v6183_v61 = vld [vmem:[#allocation40_spill] sm:$0xff] }
 0x751   :  { %v2915_v14 = vadd.f32 %v2819_v1, %v6178_v13  ;;  %v2820_v51 = vmul.f32 0.9, %v4047_v43 }
 0x753   :  { %v2916_v19 = vadd.f32 %v2820_v51, %v6179_v52  ;;  %v4048_v29 = vpop.f32.mrb[120].mxu0  ;;  %v5468_v26 = vsel %vm3003_vm1, %v2915_v14, -1e+30 }
 0x754   :  { %v4049_v45 = vpop.f32.mrb[121].mxu0  ;;  %3056 = vmax.xlane.f32.xlu0 %v5468_v26 }
 0x755   :  { %v4050_v27 = vadd.f32 %v4049_v45, %v4048_v29  ;;  %v4051_v56 = vpop.f32.mrb[122].mxu0  ;;  %v5473_v4 = vsel %vm3003_vm1, %v2916_v19, -1e+30 }
 0x756   :  { %v4052_v15 = vpop.f32.mrb[123].mxu0  ;;  %3058 = vmax.xlane.f32.xlu1 %v5473_v4 }
 0x757   :  { %v2821_v59 = vmul.f32 0.9, %v4050_v27  ;;  %v4053_v21 = vadd.f32 %v4052_v15, %v4051_v56 }
 0x759   :  { %v2917_v3 = vadd.f32 %v2821_v59, %v6180_v49  ;;  %v2822_v7 = vmul.f32 0.9, %v4053_v21 }
 0x75b   :  { %v2918_v17 = vadd.f32 %v2822_v7, %v6181_v48  ;;  %v4054_v36 = vpop.f32.mrb[124].mxu0  ;;  %v5480_v22 = vsel %vm3003_vm1, %v2917_v3, -1e+30 }
 0x75c   :  { %v4055_v57 = vpop.f32.mrb[125].mxu0  ;;  %3060 = vmax.xlane.f32.xlu0 %v5480_v22 }
 0x75d   :  { %v4056_v34 = vadd.f32 %v4055_v57, %v4054_v36  ;;  %v4057_v33 = vpop.f32.mrb[126].mxu0  ;;  %v5485_v30 = vsel %vm3003_vm1, %v2918_v17, -1e+30 }
 0x75e   :  { %v4058_v24 = vpop.f32.mrb[127].mxu0  ;;  %3062 = vmax.xlane.f32.xlu1 %v5485_v30 }
 0x75f   :  { %v2823_v16 = vmul.f32 0.9, %v4056_v34  ;;  %v4059_v5 = vadd.f32 %v4058_v24, %v4057_v33 }
 0x761   :  { %v2919_v46 = vadd.f32 %v2823_v16, %v6182_v37  ;;  %v2824_v8 = vmul.f32 0.9, %v4059_v5 }
 0x763   :  { %v2920_v10 = vadd.f32 %v2824_v8, %v6183_v61  ;;  %v4060_v1 = vpop.f32.mrb[128].mxu0  ;;  %v5492_v43 = vsel %vm3003_vm1, %v2919_v46, -1e+30 }
 0x764   :  { %v4061_v13 = vpop.f32.mrb[129].mxu0  ;;  %3064 = vmax.xlane.f32.xlu0 %v5492_v43 }
 0x765   :  { %v4062_v14 = vadd.f32 %v4061_v13, %v4060_v1  ;;  %v4063_v51 = vpop.f32.mrb[130].mxu0  ;;  %v5497_v52 = vsel %vm3003_vm1, %v2920_v10, -1e+30 }
 0x766   :  { %v4064_v19 = vpop.f32.mrb[131].mxu0  ;;  %3066 = vmax.xlane.f32.xlu1 %v5497_v52 }
 0x767   :  { %v2825_v29 = vmul.f32 0.9, %v4062_v14  ;;  %v4065_v45 = vadd.f32 %v4064_v19, %v4063_v51 }
 0x769   :  { %v2921_v27 = vadd.f32 %v2825_v29, %v4991_v18  ;;  %v2826_v56 = vmul.f32 0.9, %v4065_v45 }
 0x76b   :  { %v2922_v15 = vadd.f32 %v2826_v56, %v4994_v54  ;;  %v4066_v59 = vpop.f32.mrb[132].mxu0  ;;  %v5504_v21 = vsel %vm3003_vm1, %v2921_v27, -1e+30 }
 0x76c   :  { %v4067_v49 = vpop.f32.mrb[133].mxu0  ;;  %3068 = vmax.xlane.f32.xlu0 %v5504_v21 }
 0x76d   :  { %v4068_v3 = vadd.f32 %v4067_v49, %v4066_v59  ;;  %v4069_v7 = vpop.f32.mrb[134].mxu0  ;;  %v5509_v48 = vsel %vm3003_vm1, %v2922_v15, -1e+30 }
 0x76e   :  { %v4070_v17 = vpop.f32.mrb[135].mxu0  ;;  %3070 = vmax.xlane.f32.xlu1 %v5509_v48 }
 0x76f   :  { %v2827_v18 = vmul.f32 0.9, %v4068_v3  ;;  %v4071_v36 = vadd.f32 %v4070_v17, %v4069_v7 }
 0x771   :  { %v2923_v54 = vadd.f32 %v2827_v18, %v5002_v31  ;;  %v2828_v57 = vmul.f32 0.9, %v4071_v36 }
 0x773   :  { %v2924_v34 = vadd.f32 %v2828_v57, %v5005_v62  ;;  %v4072_v33 = vpop.f32.mrb[136].mxu0  ;;  %v5516_v24 = vsel %vm3003_vm1, %v2923_v54, -1e+30 }
 0x774   :  { %v4073_v16 = vpop.f32.mrb[137].mxu0  ;;  %3072 = vmax.xlane.f32.xlu0 %v5516_v24 }
 0x775   :  { %v4074_v5 = vadd.f32 %v4073_v16, %v4072_v33  ;;  %v4075_v37 = vpop.f32.mrb[138].mxu0  ;;  %v5521_v46 = vsel %vm3003_vm1, %v2924_v34, -1e+30 }
 0x776   :  { %v4076_v8 = vpop.f32.mrb[139].mxu0  ;;  %3074 = vmax.xlane.f32.xlu1 %v5521_v46 }
 0x777   :  { %v2829_v31 = vmul.f32 0.9, %v4074_v5  ;;  %v4077_v61 = vadd.f32 %v4076_v8, %v4075_v37 }
 0x779   :  { %v2925_v62 = vadd.f32 %v2829_v31, %v5013_v28  ;;  %v2830_v10 = vmul.f32 0.9, %v4077_v61 }
 0x77b   :  { %v2926_v1 = vadd.f32 %v2830_v10, %v5016_v35  ;;  %v4078_v13 = vpop.f32.mrb[140].mxu0  ;;  %v5528_v14 = vsel %vm3003_vm1, %v2925_v62, -1e+30 }
 0x77c   :  { %v4079_v51 = vpop.f32.mrb[141].mxu0  ;;  %3076 = vmax.xlane.f32.xlu0 %v5528_v14 }
 0x77d   :  { %v4080_v19 = vadd.f32 %v4079_v51, %v4078_v13  ;;  %v4081_v29 = vpop.f32.mrb[142].mxu0  ;;  %v5533_v45 = vsel %vm3003_vm1, %v2926_v1, -1e+30 }
 0x77e   :  { %v4082_v27 = vpop.f32.mrb[143].mxu0  ;;  %3078 = vmax.xlane.f32.xlu1 %v5533_v45 }
 0x77f   :  { %v2831_v28 = vmul.f32 0.9, %v4080_v19  ;;  %v4083_v56 = vadd.f32 %v4082_v27, %v4081_v29 }
 0x781   :  { %v2927_v35 = vadd.f32 %v2831_v28, %v5024_v41  ;;  %v2832_v15 = vmul.f32 0.9, %v4083_v56 }
 0x783   :  { %v2928_v59 = vadd.f32 %v2832_v15, %v5027_v63  ;;  %v4084_v49 = vpop.f32.mrb[144].mxu0  ;;  %v5540_v3 = vsel %vm3003_vm1, %v2927_v35, -1e+30 }
 0x784   :  { %v4085_v7 = vpop.f32.mrb[145].mxu0  ;;  %3080 = vmax.xlane.f32.xlu0 %v5540_v3 }
 0x785   :  { %v4086_v17 = vadd.f32 %v4085_v7, %v4084_v49  ;;  %v4087_v18 = vpop.f32.mrb[146].mxu0  ;;  %v5545_v36 = vsel %vm3003_vm1, %v2928_v59, -1e+30  ;;  %v2840_v59 = vmul.f32 0.9, %v5401_v40 }
 0x786   :  { %v4088_v54 = vpop.f32.mrb[147].mxu0  ;;  %3082 = vmax.xlane.f32.xlu1 %v5545_v36 }
 0x787   :  { %v2833_v41 = vmul.f32 0.9, %v4086_v17  ;;  %v4089_v57 = vadd.f32 %v4088_v54, %v4087_v18 }
 0x789   :  { %v2929_v63 = vadd.f32 %v2833_v41, %v5035_v38  ;;  %v2834_v34 = vmul.f32 0.9, %v4089_v57  ;;  %v2936_v41 = vadd.f32 %v2840_v59, %v5071_v0 }
 0x78b   :  { %v2930_v33 = vadd.f32 %v2834_v34, %v5038_v58  ;;  %v4090_v16 = vpop.f32.mrb[148].mxu0  ;;  %v5552_v5 = vsel %vm3003_vm1, %v2929_v63, -1e+30 }
 0x78c   :  { %v4091_v37 = vpop.f32.mrb[149].mxu0  ;;  %3084 = vmax.xlane.f32.xlu0 %v5552_v5 }
 0x78d   :  { %v4092_v8 = vadd.f32 %v4091_v37, %v4090_v16  ;;  %v4093_v31 = vpop.f32.mrb[150].mxu0  ;;  %v5557_v61 = vsel %vm3003_vm1, %v2930_v33, -1e+30 }
 0x78e   :  { %v4094_v62 = vpop.f32.mrb[151].mxu0  ;;  %3086 = vmax.xlane.f32.xlu1 %v5557_v61 }
 0x78f   :  { %v2835_v38 = vmul.f32 0.9, %v4092_v8  ;;  %v4095_v10 = vadd.f32 %v4094_v62, %v4093_v31 }
 0x791   :  { %v2931_v58 = vadd.f32 %v2835_v38, %v5046_v55  ;;  %v2836_v1 = vmul.f32 0.9, %v4095_v10  ;;  %v2839_v55 = vmul.f32 0.9, %v5399_v12 }
 0x793   :  { %v2932_v13 = vadd.f32 %v2836_v1, %v5049_v53  ;;  %v4096_v51 = vpop.f32.mrb[152].mxu0  ;;  %v5564_v19 = vsel %vm3003_vm1, %v2931_v58, -1e+30  ;;  %v2935_v17 = vadd.f32 %v2839_v55, %v5068_v6 }
 0x794   :  { %v4097_v29 = vpop.f32.mrb[153].mxu0  ;;  %3088 = vmax.xlane.f32.xlu0 %v5564_v19 }
 0x795   :  { %v4098_v27 = vadd.f32 %v4097_v29, %v4096_v51  ;;  %v4099_v28 = vpop.f32.mrb[154].mxu0  ;;  %v5569_v56 = vsel %vm3003_vm1, %v2932_v13, -1e+30 }
 0x796   :  { %v4100_v35 = vpop.f32.mrb[155].mxu0  ;;  %3090 = vmax.xlane.f32.xlu1 %v5569_v56 }
 0x797   :  { %v2837_v53 = vmul.f32 0.9, %v4098_v27  ;;  %v4101_v15 = vadd.f32 %v4100_v35, %v4099_v28 }
 0x799   :  { %v2933_v49 = vadd.f32 %v2837_v53, %v5057_v60  ;;  %v2838_v7 = vmul.f32 0.9, %v4101_v15  ;;  %v5590_v60 = vsel %vm3003_vm1, %v2935_v17, -1e+30 }
 0x79b   :  { %v2934_v18 = vadd.f32 %v2838_v7, %v5060_v50  ;;  %v5579_v54 = vsel %vm3003_vm1, %v2933_v49, -1e+30  ;;  %v5595_v50 = vsel %vm3003_vm1, %v2936_v41, -1e+30 }
 0x79c   :  { %3092 = vmax.xlane.f32.xlu0 %v5579_v54 }
 0x79d   :  { %v5585_v12 = vsel %vm3003_vm1, %v2934_v18, -1e+30 }
 0x79e   :  { %3094 = vmax.xlane.f32.xlu1 %v5585_v12 }
 0x7a0   :  { %3096 = vmax.xlane.f32.xlu0 %v5590_v60 }
 0x7a2   :  { %3098 = vmax.xlane.f32.xlu1 %v5595_v50 }
 0x7b9   :  { %v3037_v6 = vpop.xlane.xlu0 %3036 }
 0x7ba   :  { %v5599_v0 = vsub.f32 %v5408_v42, %v3037_v6 }
 0x7bc   :  { %v3132_v40 = vmul.f32 1.442695, %v5599_v0 }
 0x7bd   :  { %v3039_v57 = vpop.xlane.xlu0 %3038 }
 0x7be   :  { %4324 = vpow2.f32 %v3132_v40  ;;  %v5603_v63 = vsub.f32 %v5413_v9, %v3039_v57 }
 0x7c0   :  { %v3134_v34 = vmul.f32 1.442695, %v5603_v63 }
 0x7c1   :  { %v3041_v33 = vpop.xlane.xlu1 %3040 }
 0x7c2   :  { %4326 = vpow2.f32 %v3134_v34  ;;  %v5607_v16 = vsub.f32 %v5420_v20, %v3041_v33 }
 0x7c4   :  { %v3136_v37 = vmul.f32 1.442695, %v5607_v16 }
 0x7c5   :  { %v3043_v8 = vpop.xlane.xlu1 %3042 }
 0x7c6   :  { %4328 = vpow2.f32 %v3136_v37  ;;  %v5611_v42 = vsub.f32 %v5425_v39, %v3043_v8 }
 0x7c8   :  { %v4325_v31 = vpop.eup %4324  ;;  %v3138_v62 = vmul.f32 1.442695, %v5611_v42 }
 0x7c9   :  { %v3045_v38 = vpop.xlane.xlu0 %3044  ;;  %v3196_v9 = vsel %vm3003_vm1, %v4325_v31, 0.0 }
 0x7ca   :  { %4330 = vpow2.f32 %v3138_v62  ;;  %v5617_v10 = vsub.f32 %v5432_v11, %v3045_v38  ;;  %3228 = vadd.xlane.f32.xlu0 %v3196_v9 }
 0x7cb   :  { %v3047_v20 = vpop.xlane.xlu1 %3046 }
 0x7cc   :  { %v4327_v58 = vpop.eup %4326  ;;  %v3140_v1 = vmul.f32 1.442695, %v5617_v10  ;;  %v5621_v13 = vsub.f32 %v5437_v2, %v3047_v20 }
 0x7cd   :  { %v3197_v39 = vsel %vm3003_vm1, %v4327_v58, 0.0 }
 0x7ce   :  { %4332 = vpow2.f32 %v3140_v1  ;;  %v3142_v51 = vmul.f32 1.442695, %v5621_v13  ;;  %3230 = vadd.xlane.f32.xlu1 %v3197_v39 }
 0x7d0   :  { %v4329_v29 = vpop.eup %4328  ;;  %4334 = vpow2.f32 %v3142_v51 }
 0x7d1   :  { %v3049_v27 = vpop.xlane.xlu0 %3048  ;;  %v3198_v11 = vsel %vm3003_vm1, %v4329_v29, 0.0 }
 0x7d2   :  { %v5629_v28 = vsub.f32 %v5444_v23, %v3049_v27  ;;  %3232 = vadd.xlane.f32.xlu0 %v3198_v11 }
 0x7d3   :  { %v3051_v35 = vpop.xlane.xlu1 %3050 }
 0x7d4   :  { %v4331_v2 = vpop.eup %4330  ;;  %v3144_v55 = vmul.f32 1.442695, %v5629_v28  ;;  %v5633_v53 = vsub.f32 %v5449_v32, %v3051_v35 }
 0x7d5   :  { %v3199_v15 = vsel %vm3003_vm1, %v4331_v2, 0.0 }
 0x7d6   :  { %4336 = vpow2.f32 %v3144_v55  ;;  %v3146_v59 = vmul.f32 1.442695, %v5633_v53  ;;  %3234 = vadd.xlane.f32.xlu1 %v3199_v15 }
 0x7d8   :  { %v4333_v49 = vpop.eup %4332  ;;  %4338 = vpow2.f32 %v3146_v59 }
 0x7d9   :  { %v3053_v7 = vpop.xlane.xlu0 %3052  ;;  %v3200_v23 = vsel %vm3003_vm1, %v4333_v49, 0.0 }
 0x7da   :  { %v4335_v17 = vpop.eup %4334  ;;  %v5641_v18 = vsub.f32 %v5456_v25, %v3053_v7  ;;  %3236 = vadd.xlane.f32.xlu0 %v3200_v23 }
 0x7db   :  { %v3055_v32 = vpop.xlane.xlu1 %3054  ;;  %v3201_v41 = vsel %vm3003_vm1, %v4335_v17, 0.0 }
 0x7dc   :  { %v3148_v6 = vmul.f32 1.442695, %v5641_v18  ;;  %v5647_v40 = vsub.f32 %v5461_v44, %v3055_v32  ;;  %3238 = vadd.xlane.f32.xlu1 %v3201_v41 }
 0x7de   :  { %4340 = vpow2.f32 %v3148_v6  ;;  %v3150_v57 = vmul.f32 1.442695, %v5647_v40 }
 0x7e0   :  { %v4337_v34 = vpop.eup %4336  ;;  %4342 = vpow2.f32 %v3150_v57 }
 0x7e1   :  { %v3057_v33 = vpop.xlane.xlu0 %3056  ;;  %v3202_v25 = vsel %vm3003_vm1, %v4337_v34, 0.0 }
 0x7e2   :  { %v4339_v37 = vpop.eup %4338  ;;  %v5653_v8 = vsub.f32 %v5468_v26, %v3057_v33  ;;  %3240 = vadd.xlane.f32.xlu0 %v3202_v25 }
 0x7e3   :  { %v3059_v31 = vpop.xlane.xlu1 %3058  ;;  %v3203_v44 = vsel %vm3003_vm1, %v4339_v37, 0.0 }
 0x7e4   :  { %v3152_v62 = vmul.f32 1.442695, %v5653_v8  ;;  %v5659_v38 = vsub.f32 %v5473_v4, %v3059_v31  ;;  %3242 = vadd.xlane.f32.xlu1 %v3203_v44 }
 0x7e6   :  { %4344 = vpow2.f32 %v3152_v62  ;;  %v3154_v9 = vmul.f32 1.442695, %v5659_v38 }
 0x7e8   :  { %v4341_v20 = vpop.eup %4340  ;;  %4346 = vpow2.f32 %v3154_v9 }
 0x7e9   :  { %v3061_v58 = vpop.xlane.xlu0 %3060  ;;  %v3204_v26 = vsel %vm3003_vm1, %v4341_v20, 0.0 }
 0x7ea   :  { %v4343_v1 = vpop.eup %4342  ;;  %v5665_v39 = vsub.f32 %v5480_v22, %v3061_v58  ;;  %3244 = vadd.xlane.f32.xlu0 %v3204_v26 }
 0x7eb   :  { %v3063_v51 = vpop.xlane.xlu1 %3062  ;;  %v3205_v4 = vsel %vm3003_vm1, %v4343_v1, 0.0 }
 0x7ec   :  { %v3156_v29 = vmul.f32 1.442695, %v5665_v39  ;;  %v5671_v27 = vsub.f32 %v5485_v30, %v3063_v51  ;;  %3246 = vadd.xlane.f32.xlu1 %v3205_v4 }
 0x7ee   :  { %4348 = vpow2.f32 %v3156_v29  ;;  %v3158_v11 = vmul.f32 1.442695, %v5671_v27 }
 0x7f0   :  { %v4345_v35 = vpop.eup %4344  ;;  %4350 = vpow2.f32 %v3158_v11 }
 0x7f1   :  { %v3065_v2 = vpop.xlane.xlu0 %3064  ;;  %v3206_v22 = vsel %vm3003_vm1, %v4345_v35, 0.0 }
 0x7f2   :  { %v4347_v55 = vpop.eup %4346  ;;  %v5677_v15 = vsub.f32 %v5492_v43, %v3065_v2  ;;  %3248 = vadd.xlane.f32.xlu0 %v3206_v22 }
 0x7f3   :  { %v3067_v59 = vpop.xlane.xlu1 %3066  ;;  %v3207_v30 = vsel %vm3003_vm1, %v4347_v55, 0.0 }
 0x7f4   :  { %v3160_v49 = vmul.f32 1.442695, %v5677_v15  ;;  %v5683_v7 = vsub.f32 %v5497_v52, %v3067_v59  ;;  %3250 = vadd.xlane.f32.xlu1 %v3207_v30 }
 0x7f6   :  { %4352 = vpow2.f32 %v3160_v49  ;;  %v3162_v23 = vmul.f32 1.442695, %v5683_v7 }
 0x7f8   :  { %v4349_v17 = vpop.eup %4348  ;;  %4354 = vpow2.f32 %v3162_v23 }
 0x7f9   :  { %v3069_v32 = vpop.xlane.xlu0 %3068  ;;  %v3208_v43 = vsel %vm3003_vm1, %v4349_v17, 0.0 }
 0x7fa   :  { %v4351_v41 = vpop.eup %4350  ;;  %v5689_v6 = vsub.f32 %v5504_v21, %v3069_v32  ;;  %3252 = vadd.xlane.f32.xlu0 %v3208_v43 }
 0x7fb   :  { %v3071_v57 = vpop.xlane.xlu1 %3070  ;;  %v3209_v52 = vsel %vm3003_vm1, %v4351_v41, 0.0 }
 0x7fc   :  { %v3164_v34 = vmul.f32 1.442695, %v5689_v6  ;;  %v5695_v33 = vsub.f32 %v5509_v48, %v3071_v57  ;;  %3254 = vadd.xlane.f32.xlu1 %v3209_v52 }
 0x7fe   :  { %4356 = vpow2.f32 %v3164_v34  ;;  %v3166_v25 = vmul.f32 1.442695, %v5695_v33 }
 0x800   :  { %v4353_v37 = vpop.eup %4352  ;;  %4358 = vpow2.f32 %v3166_v25 }
 0x801   :  { %v3073_v31 = vpop.xlane.xlu0 %3072  ;;  %v3210_v21 = vsel %vm3003_vm1, %v4353_v37, 0.0 }
 0x802   :  { %v4355_v44 = vpop.eup %4354  ;;  %v5701_v62 = vsub.f32 %v5516_v24, %v3073_v31  ;;  %3256 = vadd.xlane.f32.xlu0 %v3210_v21 }
 0x803   :  { %v3075_v9 = vpop.xlane.xlu1 %3074  ;;  %v3211_v48 = vsel %vm3003_vm1, %v4355_v44, 0.0 }
 0x804   :  { %v3168_v20 = vmul.f32 1.442695, %v5701_v62  ;;  %v5707_v58 = vsub.f32 %v5521_v46, %v3075_v9  ;;  %3258 = vadd.xlane.f32.xlu1 %v3211_v48 }
 0x806   :  { %4360 = vpow2.f32 %v3168_v20  ;;  %v3170_v26 = vmul.f32 1.442695, %v5707_v58 }
 0x808   :  { %v4357_v1 = vpop.eup %4356  ;;  %4362 = vpow2.f32 %v3170_v26 }
 0x809   :  { %v3077_v51 = vpop.xlane.xlu0 %3076  ;;  %v3212_v24 = vsel %vm3003_vm1, %v4357_v1, 0.0 }
 0x80a   :  { %v4359_v4 = vpop.eup %4358  ;;  %v5713_v29 = vsub.f32 %v5528_v14, %v3077_v51  ;;  %3260 = vadd.xlane.f32.xlu0 %v3212_v24 }
 0x80b   :  { %v3079_v11 = vpop.xlane.xlu1 %3078  ;;  %v3213_v46 = vsel %vm3003_vm1, %v4359_v4, 0.0 }
 0x80c   :  { %v3172_v35 = vmul.f32 1.442695, %v5713_v29  ;;  %v5719_v2 = vsub.f32 %v5533_v45, %v3079_v11  ;;  %3262 = vadd.xlane.f32.xlu1 %v3213_v46 }
 0x80e   :  { %4364 = vpow2.f32 %v3172_v35  ;;  %v3174_v22 = vmul.f32 1.442695, %v5719_v2 }
 0x810   :  { %v4361_v55 = vpop.eup %4360  ;;  %4366 = vpow2.f32 %v3174_v22 }
 0x811   :  { %v3081_v59 = vpop.xlane.xlu0 %3080  ;;  %v3214_v14 = vsel %vm3003_vm1, %v4361_v55, 0.0 }
 0x812   :  { %v4363_v30 = vpop.eup %4362  ;;  %v5725_v49 = vsub.f32 %v5540_v3, %v3081_v59  ;;  %3264 = vadd.xlane.f32.xlu0 %v3214_v14 }
 0x813   :  { %v3083_v23 = vpop.xlane.xlu1 %3082  ;;  %v3215_v45 = vsel %vm3003_vm1, %v4363_v30, 0.0 }
 0x814   :  { %v3176_v17 = vmul.f32 1.442695, %v5725_v49  ;;  %v5731_v32 = vsub.f32 %v5545_v36, %v3083_v23  ;;  %3266 = vadd.xlane.f32.xlu1 %v3215_v45 }
 0x816   :  { %4368 = vpow2.f32 %v3176_v17  ;;  %v3178_v43 = vmul.f32 1.442695, %v5731_v32 }
 0x818   :  { %v4365_v41 = vpop.eup %4364  ;;  %4370 = vpow2.f32 %v3178_v43 }
 0x819   :  { %v3085_v57 = vpop.xlane.xlu0 %3084  ;;  %v3216_v3 = vsel %vm3003_vm1, %v4365_v41, 0.0 }
 0x81a   :  { %v4367_v52 = vpop.eup %4366  ;;  %v5737_v34 = vsub.f32 %v5552_v5, %v3085_v57  ;;  %3268 = vadd.xlane.f32.xlu0 %v3216_v3 }
 0x81b   :  { %v3087_v25 = vpop.xlane.xlu1 %3086  ;;  %v3217_v36 = vsel %vm3003_vm1, %v4367_v52, 0.0 }
 0x81c   :  { %v3180_v37 = vmul.f32 1.442695, %v5737_v34  ;;  %v5743_v31 = vsub.f32 %v5557_v61, %v3087_v25  ;;  %3270 = vadd.xlane.f32.xlu1 %v3217_v36 }
 0x81e   :  { %4372 = vpow2.f32 %v3180_v37  ;;  %v3182_v21 = vmul.f32 1.442695, %v5743_v31 }
 0x820   :  { %v4369_v44 = vpop.eup %4368  ;;  %4374 = vpow2.f32 %v3182_v21 }
 0x821   :  { %v3089_v9 = vpop.xlane.xlu0 %3088  ;;  %v3218_v5 = vsel %vm3003_vm1, %v4369_v44, 0.0 }
 0x822   :  { %v4371_v48 = vpop.eup %4370  ;;  %v5749_v20 = vsub.f32 %v5564_v19, %v3089_v9  ;;  %3272 = vadd.xlane.f32.xlu0 %v3218_v5 }
 0x823   :  { %v3091_v26 = vpop.xlane.xlu1 %3090  ;;  %v3219_v61 = vsel %vm3003_vm1, %v4371_v48, 0.0 }
 0x824   :  { %v3184_v1 = vmul.f32 1.442695, %v5749_v20  ;;  %v5755_v51 = vsub.f32 %v5569_v56, %v3091_v26  ;;  %3274 = vadd.xlane.f32.xlu1 %v3219_v61 }
 0x826   :  { %4376 = vpow2.f32 %v3184_v1  ;;  %v3186_v24 = vmul.f32 1.442695, %v5755_v51 }
 0x828   :  { %v4373_v4 = vpop.eup %4372  ;;  %4378 = vpow2.f32 %v3186_v24 }
 0x829   :  { %v3093_v11 = vpop.xlane.xlu0 %3092  ;;  %v3220_v19 = vsel %vm3003_vm1, %v4373_v4, 0.0 }
 0x82a   :  { %v4375_v46 = vpop.eup %4374  ;;  %v5761_v35 = vsub.f32 %v5579_v54, %v3093_v11  ;;  %3276 = vadd.xlane.f32.xlu0 %v3220_v19 }
 0x82b   :  { %v3095_v22 = vpop.xlane.xlu1 %3094  ;;  %v3221_v56 = vsel %vm3003_vm1, %v4375_v46, 0.0 }
 0x82c   :  { %v3188_v55 = vmul.f32 1.442695, %v5761_v35  ;;  %v5767_v59 = vsub.f32 %v5585_v12, %v3095_v22  ;;  %3278 = vadd.xlane.f32.xlu1 %v3221_v56 }
 0x82d   :  { %v3097_v14 = vpop.xlane.xlu0 %3096 }
 0x82e   :  { %4380 = vpow2.f32 %v3188_v55  ;;  %v3190_v30 = vmul.f32 1.442695, %v5767_v59  ;;  %v5771_v23 = vsub.f32 %v5590_v60, %v3097_v14 }
 0x82f   :  { %v3099_v54 = vpop.xlane.xlu1 %3098 }
 0x830   :  { %v4377_v45 = vpop.eup %4376  ;;  %4382 = vpow2.f32 %v3190_v30  ;;  %v3192_v17 = vmul.f32 1.442695, %v5771_v23  ;;  %v5775_v43 = vsub.f32 %v5595_v50, %v3099_v54 }
 0x831   :  { %v3222_v12 = vsel %vm3003_vm1, %v4377_v45, 0.0 }
 0x832   :  { %v4379_v41 = vpop.eup %4378  ;;  %4384 = vpow2.f32 %v3192_v17  ;;  %v3194_v57 = vmul.f32 1.442695, %v5775_v43  ;;  %3280 = vadd.xlane.f32.xlu0 %v3222_v12 }
 0x833   :  { %v3223_v60 = vsel %vm3003_vm1, %v4379_v41, 0.0 }
 0x834   :  { %4386 = vpow2.f32 %v3194_v57  ;;  %3282 = vadd.xlane.f32.xlu1 %v3223_v60 }
 0x838   :  { %v4381_v3 = vpop.eup %4380 }
 0x839   :  { %v3224_v52 = vsel %vm3003_vm1, %v4381_v3, 0.0 }
 0x83a   :  { %v4383_v25 = vpop.eup %4382  ;;  %3284 = vadd.xlane.f32.xlu0 %v3224_v52 }
 0x83b   :  { %v3225_v50 = vsel %vm3003_vm1, %v4383_v25, 0.0 }
 0x83c   :  { %v4385_v36 = vpop.eup %4384  ;;  %3286 = vadd.xlane.f32.xlu1 %v3225_v50 }
 0x83d   :  { %v3226_v37 = vsel %vm3003_vm1, %v4385_v36, 0.0 }
 0x83e   :  { %v4387_v21 = vpop.eup %4386  ;;  %3288 = vadd.xlane.f32.xlu0 %v3226_v37 }
 0x83f   :  { %v3227_v44 = vsel %vm3003_vm1, %v4387_v21, 0.0 }
 0x840   :  { %3290 = vadd.xlane.f32.xlu1 %v3227_v44 }
 0x857   :  { %v3229_v9 = vpop.xlane.xlu0 %3228 }
 0x858   :  { %4388 = vlog2.f32 %v3229_v9 }
 0x85b   :  { %v3231_v5 = vpop.xlane.xlu1 %3230 }
 0x85c   :  { %4390 = vlog2.f32 %v3231_v5 }
 0x85f   :  { %v3233_v48 = vpop.xlane.xlu0 %3232 }
 0x860   :  { %4392 = vlog2.f32 %v3233_v48 }
 0x862   :  { %v4389_v26 = vpop.eup %4388 }
 0x863   :  { %v3293_v61 = vmul.f32 0.6931472, %v4389_v26  ;;  %v3235_v1 = vpop.xlane.xlu1 %3234 }
 0x864   :  { %4394 = vlog2.f32 %v3235_v1 }
 0x865   :  { %v3356_v24 = vsub.f32 %v5599_v0, %v3293_v61 }
 0x866   :  { %v4391_v4 = vpop.eup %4390 }
 0x867   :  { %v3388_v11 = vsel %vm3003_vm1, %v3356_v24, 0.0  ;;  %v3295_v19 = vmul.f32 0.6931472, %v4391_v4  ;;  %v3237_v46 = vpop.xlane.xlu0 %3236 }
 0x868   :  { %3420 = vst [vmem:[%s5988_s6] sm:$0xff] %v3388_v11  ;;  %4396 = vlog2.f32 %v3237_v46 }
 0x869   :  { %v3357_v22 = vsub.f32 %v5603_v63, %v3295_v19  ;;  %v3239_v56 = vpop.xlane.xlu1 %3238 }
 0x86a   :  { %v4393_v55 = vpop.eup %4392  ;;  %4398 = vlog2.f32 %v3239_v56 }
 0x86b   :  { %v3389_v14 = vsel %vm3003_vm1, %v3357_v22, 0.0  ;;  %v3297_v0 = vmul.f32 0.6931472, %v4393_v55 }
 0x86c   :  { %3421 = vst [vmem:[%s5988_s6 + $0x8] sm:$0xff] %v3389_v14 }
 0x86d   :  { %v3358_v30 = vsub.f32 %v5607_v16, %v3297_v0 }
 0x86e   :  { %v4395_v54 = vpop.eup %4394 }
 0x86f   :  { %v3390_v45 = vsel %vm3003_vm1, %v3358_v30, 0.0  ;;  %v3299_v17 = vmul.f32 0.6931472, %v4395_v54  ;;  %v3241_v12 = vpop.xlane.xlu0 %3240 }
 0x870   :  { %3422 = vst [vmem:[%s5988_s6 + $0x10] sm:$0xff] %v3390_v45  ;;  %4400 = vlog2.f32 %v3241_v12 }
 0x871   :  { %v3359_v63 = vsub.f32 %v5611_v42, %v3299_v17  ;;  %v3243_v41 = vpop.xlane.xlu1 %3242 }
 0x872   :  { %v4397_v57 = vpop.eup %4396  ;;  %4402 = vlog2.f32 %v3243_v41 }
 0x873   :  { %v3391_v60 = vsel %vm3003_vm1, %v3359_v63, 0.0  ;;  %v3301_v16 = vmul.f32 0.6931472, %v4397_v57 }
 0x874   :  { %v4399_v3 = vpop.eup %4398  ;;  %3423 = vst [vmem:[%s5988_s6 + $0x18] sm:$0xff] %v3391_v60 }
 0x875   :  { %v3360_v52 = vsub.f32 %v5617_v10, %v3301_v16  ;;  %v3303_v25 = vmul.f32 0.6931472, %v4399_v3 }
 0x877   :  { %v3392_v50 = vsel %vm3003_vm1, %v3360_v52, 0.0  ;;  %v3361_v42 = vsub.f32 %v5621_v13, %v3303_v25  ;;  %v3245_v36 = vpop.xlane.xlu0 %3244 }
 0x878   :  { %3424 = vst [vmem:[%s5988_s6 + $0x20] sm:$0xff] %v3392_v50  ;;  %4404 = vlog2.f32 %v3245_v36 }
 0x879   :  { %v3393_v37 = vsel %vm3003_vm1, %v3361_v42, 0.0  ;;  %v3247_v21 = vpop.xlane.xlu1 %3246 }
 0x87a   :  { %v4401_v44 = vpop.eup %4400  ;;  %3425 = vst [vmem:[%s5988_s6 + $0x28] sm:$0xff] %v3393_v37  ;;  %4406 = vlog2.f32 %v3247_v21 }
 0x87b   :  { %v3305_v10 = vmul.f32 0.6931472, %v4401_v44 }
 0x87c   :  { %v4403_v9 = vpop.eup %4402 }
 0x87d   :  { %v3362_v13 = vsub.f32 %v5629_v28, %v3305_v10  ;;  %v3307_v5 = vmul.f32 0.6931472, %v4403_v9 }
 0x87f   :  { %v3394_v48 = vsel %vm3003_vm1, %v3362_v13, 0.0  ;;  %v3363_v26 = vsub.f32 %v5633_v53, %v3307_v5  ;;  %v3249_v61 = vpop.xlane.xlu0 %3248 }
 0x880   :  { %3426 = vst [vmem:[%s5988_s6 + $0x30] sm:$0xff] %v3394_v48  ;;  %4408 = vlog2.f32 %v3249_v61 }
 0x881   :  { %v3395_v1 = vsel %vm3003_vm1, %v3363_v26, 0.0  ;;  %v3251_v24 = vpop.xlane.xlu1 %3250 }
 0x882   :  { %v4405_v4 = vpop.eup %4404  ;;  %3427 = vst [vmem:[%s5988_s6 + $0x38] sm:$0xff] %v3395_v1  ;;  %4410 = vlog2.f32 %v3251_v24 }
 0x883   :  { %v3309_v28 = vmul.f32 0.6931472, %v4405_v4 }
 0x884   :  { %v4407_v11 = vpop.eup %4406 }
 0x885   :  { %v3364_v53 = vsub.f32 %v5641_v18, %v3309_v28  ;;  %v3311_v19 = vmul.f32 0.6931472, %v4407_v11 }
 0x887   :  { %v3396_v46 = vsel %vm3003_vm1, %v3364_v53, 0.0  ;;  %v3365_v22 = vsub.f32 %v5647_v40, %v3311_v19  ;;  %v3253_v56 = vpop.xlane.xlu0 %3252 }
 0x888   :  { %3428 = vst [vmem:[%s5988_s6 + $0x40] sm:$0xff] %v3396_v46  ;;  %4412 = vlog2.f32 %v3253_v56 }
 0x889   :  { %v3397_v55 = vsel %vm3003_vm1, %v3365_v22, 0.0  ;;  %v3255_v14 = vpop.xlane.xlu1 %3254 }
 0x88a   :  { %v4409_v0 = vpop.eup %4408  ;;  %3429 = vst [vmem:[%s5988_s6 + $0x48] sm:$0xff] %v3397_v55  ;;  %4414 = vlog2.f32 %v3255_v14 }
 0x88b   :  { %v3313_v18 = vmul.f32 0.6931472, %v4409_v0 }
 0x88c   :  { %v4411_v30 = vpop.eup %4410 }
 0x88d   :  { %v3366_v40 = vsub.f32 %v5653_v8, %v3313_v18  ;;  %v3315_v54 = vmul.f32 0.6931472, %v4411_v30 }
 0x88f   :  { %v3398_v45 = vsel %vm3003_vm1, %v3366_v40, 0.0  ;;  %v3367_v17 = vsub.f32 %v5659_v38, %v3315_v54  ;;  %v3257_v12 = vpop.xlane.xlu0 %3256 }
 0x890   :  { %3430 = vst [vmem:[%s5988_s6 + $0x50] sm:$0xff] %v3398_v45  ;;  %4416 = vlog2.f32 %v3257_v12 }
 0x891   :  { %v3399_v63 = vsel %vm3003_vm1, %v3367_v17, 0.0  ;;  %v3259_v41 = vpop.xlane.xlu1 %3258 }
 0x892   :  { %v4413_v57 = vpop.eup %4412  ;;  %3431 = vst [vmem:[%s5988_s6 + $0x58] sm:$0xff] %v3399_v63  ;;  %4418 = vlog2.f32 %v3259_v41 }
 0x893   :  { %v3317_v8 = vmul.f32 0.6931472, %v4413_v57 }
 0x894   :  { %v4415_v60 = vpop.eup %4414 }
 0x895   :  { %v3368_v38 = vsub.f32 %v5665_v39, %v3317_v8  ;;  %v3319_v16 = vmul.f32 0.6931472, %v4415_v60 }
 0x897   :  { %v3400_v3 = vsel %vm3003_vm1, %v3368_v38, 0.0  ;;  %v3369_v52 = vsub.f32 %v5671_v27, %v3319_v16  ;;  %v3261_v25 = vpop.xlane.xlu0 %3260 }
 0x898   :  { %3432 = vst [vmem:[%s5988_s6 + $0x60] sm:$0xff] %v3400_v3  ;;  %4420 = vlog2.f32 %v3261_v25 }
 0x899   :  { %v3401_v50 = vsel %vm3003_vm1, %v3369_v52, 0.0  ;;  %v3263_v42 = vpop.xlane.xlu1 %3262 }
 0x89a   :  { %v4417_v36 = vpop.eup %4416  ;;  %3433 = vst [vmem:[%s5988_s6 + $0x68] sm:$0xff] %v3401_v50  ;;  %4422 = vlog2.f32 %v3263_v42 }
 0x89b   :  { %v3321_v39 = vmul.f32 0.6931472, %v4417_v36 }
 0x89c   :  { %v4419_v37 = vpop.eup %4418 }
 0x89d   :  { %v3370_v27 = vsub.f32 %v5677_v15, %v3321_v39  ;;  %v3323_v21 = vmul.f32 0.6931472, %v4419_v37 }
 0x89f   :  { %v3402_v44 = vsel %vm3003_vm1, %v3370_v27, 0.0  ;;  %v3371_v10 = vsub.f32 %v5683_v7, %v3323_v21  ;;  %v3265_v9 = vpop.xlane.xlu0 %3264 }
 0x8a0   :  { %3434 = vst [vmem:[%s5988_s6 + $0x70] sm:$0xff] %v3402_v44  ;;  %4424 = vlog2.f32 %v3265_v9 }
 0x8a1   :  { %v3403_v13 = vsel %vm3003_vm1, %v3371_v10, 0.0  ;;  %v3267_v5 = vpop.xlane.xlu1 %3266 }
 0x8a2   :  { %v4421_v48 = vpop.eup %4420  ;;  %3435 = vst [vmem:[%s5988_s6 + $0x78] sm:$0xff] %v3403_v13  ;;  %4426 = vlog2.f32 %v3267_v5 }
 0x8a3   :  { %v3325_v15 = vmul.f32 0.6931472, %v4421_v48 }
 0x8a4   :  { %v4423_v26 = vpop.eup %4422 }
 0x8a5   :  { %v3372_v7 = vsub.f32 %v5689_v6, %v3325_v15  ;;  %v3327_v61 = vmul.f32 0.6931472, %v4423_v26 }
 0x8a7   :  { %v3404_v1 = vsel %vm3003_vm1, %v3372_v7, 0.0  ;;  %v3373_v24 = vsub.f32 %v5695_v33, %v3327_v61  ;;  %v3269_v4 = vpop.xlane.xlu0 %3268 }
 0x8a8   :  { %3436 = vst [vmem:[%s5988_s6 + $0x80] sm:$0xff] %v3404_v1  ;;  %4428 = vlog2.f32 %v3269_v4 }
 0x8a9   :  { %v3405_v28 = vsel %vm3003_vm1, %v3373_v24, 0.0  ;;  %v3271_v11 = vpop.xlane.xlu1 %3270 }
 0x8aa   :  { %v4425_v53 = vpop.eup %4424  ;;  %3437 = vst [vmem:[%s5988_s6 + $0x88] sm:$0xff] %v3405_v28  ;;  %4430 = vlog2.f32 %v3271_v11 }
 0x8ab   :  { %v3329_v6 = vmul.f32 0.6931472, %v4425_v53 }
 0x8ac   :  { %v4427_v19 = vpop.eup %4426 }
 0x8ad   :  { %v3374_v33 = vsub.f32 %v5701_v62, %v3329_v6  ;;  %v3331_v46 = vmul.f32 0.6931472, %v4427_v19 }
 0x8af   :  { %v3406_v22 = vsel %vm3003_vm1, %v3374_v33, 0.0  ;;  %v3375_v56 = vsub.f32 %v5707_v58, %v3331_v46  ;;  %v3273_v55 = vpop.xlane.xlu0 %3272 }
 0x8b0   :  { %3438 = vst [vmem:[%s5988_s6 + $0x90] sm:$0xff] %v3406_v22  ;;  %4432 = vlog2.f32 %v3273_v55 }
 0x8b1   :  { %v3407_v14 = vsel %vm3003_vm1, %v3375_v56, 0.0  ;;  %v3275_v0 = vpop.xlane.xlu1 %3274 }
 0x8b2   :  { %v4429_v18 = vpop.eup %4428  ;;  %3439 = vst [vmem:[%s5988_s6 + $0x98] sm:$0xff] %v3407_v14  ;;  %4434 = vlog2.f32 %v3275_v0 }
 0x8b3   :  { %v3333_v62 = vmul.f32 0.6931472, %v4429_v18 }
 0x8b4   :  { %v4431_v30 = vpop.eup %4430 }
 0x8b5   :  { %v3376_v58 = vsub.f32 %v5713_v29, %v3333_v62  ;;  %v3335_v40 = vmul.f32 0.6931472, %v4431_v30 }
 0x8b7   :  { %v3408_v54 = vsel %vm3003_vm1, %v3376_v58, 0.0  ;;  %v3377_v45 = vsub.f32 %v5719_v2, %v3335_v40  ;;  %v3277_v17 = vpop.xlane.xlu0 %3276 }
 0x8b8   :  { %3440 = vst [vmem:[%s5988_s6 + $0xa0] sm:$0xff] %v3408_v54  ;;  %4436 = vlog2.f32 %v3277_v17 }
 0x8b9   :  { %v3409_v12 = vsel %vm3003_vm1, %v3377_v45, 0.0  ;;  %v3279_v63 = vpop.xlane.xlu1 %3278 }
 0x8ba   :  { %v4433_v41 = vpop.eup %4432  ;;  %3441 = vst [vmem:[%s5988_s6 + $0xa8] sm:$0xff] %v3409_v12  ;;  %4438 = vlog2.f32 %v3279_v63 }
 0x8bb   :  { %v3337_v29 = vmul.f32 0.6931472, %v4433_v41 }
 0x8bc   :  { %v4435_v57 = vpop.eup %4434 }
 0x8bd   :  { %v3378_v2 = vsub.f32 %v5725_v49, %v3337_v29  ;;  %v3339_v8 = vmul.f32 0.6931472, %v4435_v57 }
 0x8bf   :  { %v3410_v60 = vsel %vm3003_vm1, %v3378_v2, 0.0  ;;  %v3379_v38 = vsub.f32 %v5731_v32, %v3339_v8  ;;  %v3281_v16 = vpop.xlane.xlu0 %3280 }
 0x8c0   :  { %3442 = vst [vmem:[%s5988_s6 + $0xb0] sm:$0xff] %v3410_v60  ;;  %4440 = vlog2.f32 %v3281_v16 }
 0x8c1   :  { %v3411_v3 = vsel %vm3003_vm1, %v3379_v38, 0.0  ;;  %v3283_v52 = vpop.xlane.xlu1 %3282 }
 0x8c2   :  { %v4437_v25 = vpop.eup %4436  ;;  %3443 = vst [vmem:[%s5988_s6 + $0xb8] sm:$0xff] %v3411_v3  ;;  %4442 = vlog2.f32 %v3283_v52 }
 0x8c3   :  { %v3341_v49 = vmul.f32 0.6931472, %v4437_v25 }
 0x8c4   :  { %v4439_v50 = vpop.eup %4438 }
 0x8c5   :  { %v3380_v32 = vsub.f32 %v5737_v34, %v3341_v49  ;;  %v3343_v42 = vmul.f32 0.6931472, %v4439_v50 }
 0x8c7   :  { %v3412_v36 = vsel %vm3003_vm1, %v3380_v32, 0.0  ;;  %v3381_v39 = vsub.f32 %v5743_v31, %v3343_v42  ;;  %v3285_v37 = vpop.xlane.xlu0 %3284 }
 0x8c8   :  { %3444 = vst [vmem:[%s5988_s6 + $0xc0] sm:$0xff] %v3412_v36  ;;  %4444 = vlog2.f32 %v3285_v37 }
 0x8c9   :  { %v3413_v27 = vsel %vm3003_vm1, %v3381_v39, 0.0  ;;  %v3287_v21 = vpop.xlane.xlu1 %3286 }
 0x8ca   :  { %v4441_v44 = vpop.eup %4440  ;;  %3445 = vst [vmem:[%s5988_s6 + $0xc8] sm:$0xff] %v3413_v27  ;;  %4446 = vlog2.f32 %v3287_v21 }
 0x8cb   :  { %v3345_v34 = vmul.f32 0.6931472, %v4441_v44  ;;  %v3289_v10 = vpop.xlane.xlu0 %3288 }
 0x8cc   :  { %v4443_v9 = vpop.eup %4442  ;;  %4448 = vlog2.f32 %v3289_v10 }
 0x8cd   :  { %v3382_v31 = vsub.f32 %v5749_v20, %v3345_v34  ;;  %v3347_v13 = vmul.f32 0.6931472, %v4443_v9  ;;  %v3291_v5 = vpop.xlane.xlu1 %3290 }
 0x8ce   :  { %4450 = vlog2.f32 %v3291_v5 }
 0x8cf   :  { %v3414_v48 = vsel %vm3003_vm1, %v3382_v31, 0.0  ;;  %v3383_v15 = vsub.f32 %v5755_v51, %v3347_v13 }
 0x8d0   :  { %3446 = vst [vmem:[%s5988_s6 + $0xd0] sm:$0xff] %v3414_v48 }
 0x8d1   :  { %v3415_v26 = vsel %vm3003_vm1, %v3383_v15, 0.0 }
 0x8d2   :  { %v4445_v7 = vpop.eup %4444  ;;  %3447 = vst [vmem:[%s5988_s6 + $0xd8] sm:$0xff] %v3415_v26 }
 0x8d3   :  { %v3349_v20 = vmul.f32 0.6931472, %v4445_v7 }
 0x8d4   :  { %v4447_v61 = vpop.eup %4446 }
 0x8d5   :  { %v3384_v1 = vsub.f32 %v5761_v35, %v3349_v20  ;;  %v3351_v24 = vmul.f32 0.6931472, %v4447_v61 }
 0x8d6   :  { %v4449_v4 = vpop.eup %4448 }
 0x8d7   :  { %v3416_v51 = vsel %vm3003_vm1, %v3384_v1, 0.0  ;;  %v3385_v28 = vsub.f32 %v5767_v59, %v3351_v24  ;;  %v3353_v11 = vmul.f32 0.6931472, %v4449_v4 }
 0x8d8   :  { %v4451_v53 = vpop.eup %4450  ;;  %3448 = vst [vmem:[%s5988_s6 + $0xe0] sm:$0xff] %v3416_v51 }
 0x8d9   :  { %v3417_v6 = vsel %vm3003_vm1, %v3385_v28, 0.0  ;;  %v3386_v19 = vsub.f32 %v5771_v23, %v3353_v11  ;;  %v3355_v33 = vmul.f32 0.6931472, %v4451_v53 }
 0x8da   :  { %3449 = vst [vmem:[%s5988_s6 + $0xe8] sm:$0xff] %v3417_v6 }
 0x8db   :  { %v3418_v35 = vsel %vm3003_vm1, %v3386_v19, 0.0  ;;  %v3387_v59 = vsub.f32 %v5775_v43, %v3355_v33 }
 0x8dc   :  { %3450 = vst [vmem:[%s5988_s6 + $0xf0] sm:$0xff] %v3418_v35 }
 0x8dd   :  { %v3419_v46 = vsel %vm3003_vm1, %v3387_v59, 0.0 }
 0x8de   :  { %3451 = vst [vmem:[%s5988_s6 + $0xf8] sm:$0xff] %v3419_v46 }
 0x8df   :  { %3456 = vsyncpa [#allocation4], 1 }
 0x8e0   :  { %3457 = vsyncpa [#allocation6], 1 }

</bundles_post_ra>
